<compile_context>
chip_gen: v5e
topology: v5e:2x2
jax: 0.10.0
libtpu: 0.0.40
codegen_flags: <defaults>
</compile_context>

<pallas_src>
import functools

import jax
import jax.numpy as jnp
from jax.experimental import pallas as pl
from jax.experimental.pallas import tpu as pltpu


def _contranorm_flash_kernel(xq_ref, xk_ref, o_ref,
                             l_sc, acc_sc, qn_sc, *, scale):
    ki = pl.program_id(2)

    # ---- init: first key tile for this (batch, query-tile) ------------------
    @pl.when(ki == 0)
    def _():
        xq = xq_ref[...].astype(jnp.float32)                       # (Tq, D)
        # F.normalize eps: clamp ||x|| at 1e-12  <=>  clamp ||x||^2 at 1e-24.
        inv_q = jax.lax.rsqrt(jnp.maximum(
            jnp.sum(xq * xq, axis=-1, keepdims=True), 1e-24))      # EUP rsqrt
        qn_sc[...] = (xq * inv_q).astype(qn_sc.dtype)              # bf16 MXU operand
        l_sc[...] = jnp.zeros(l_sc.shape, jnp.float32)
        acc_sc[...] = jnp.zeros(acc_sc.shape, jnp.float32)

    # ---- per-key-tile work ---------------------------------------------------
    xk = xk_ref[...]                                               # (Tk, D)
    xk_f32 = xk.astype(jnp.float32)
    inv_k = jax.lax.rsqrt(jnp.maximum(
        jnp.sum(xk_f32 * xk_f32, axis=-1, keepdims=True), 1e-24))
    kn = (xk_f32 * inv_k).astype(jnp.bfloat16)

    # NT matmul on bf16 operands with f32 accumulation: contracts the D axes
    # of both operands directly -> no materialized transpose of the key tile.
    s = jax.lax.dot_general(
        qn_sc[...], kn,
        dimension_numbers=(((1,), (1,)), ((), ())),
        preferred_element_type=jnp.float32)                        # (Tq, Tk)

    # Rows of qn / kn are unit-L2, so |s| <= ~1: exp cannot overflow and the
    # whole online-max / rescale machinery is unnecessary.  bf16 exp uses the
    # native bf16 EUP path on v6e/v7x (v5e transparently lowers via f32).
    p = jnp.exp(s.astype(jnp.bfloat16))                            # (Tq, Tk)
    l_sc[...] += jnp.sum(p.astype(jnp.float32), axis=-1, keepdims=True)
    acc_sc[...] += jnp.dot(p, xk.astype(jnp.bfloat16),
                           preferred_element_type=jnp.float32)

    # ---- finalize: last key tile --------------------------------------------
    @pl.when(ki == pl.num_programs(2) - 1)
    def _():
        xq = xq_ref[...].astype(jnp.float32)
        inv_l = pl.reciprocal(l_sc[...], approx=True)              # EUP vrcp
        out = (1.0 + scale) * xq - scale * (acc_sc[...] * inv_l)
        o_ref[...] = out.astype(o_ref.dtype)


def _contranorm_ref(x, scale):
    """Pure-JAX reference (also the fallback for tiny / unaligned shapes)."""
    if scale == 0.0:
        return x
    xf = x.astype(jnp.float32)
    norm = jnp.sqrt(jnp.sum(xf * xf, axis=2, keepdims=True))
    x_n = xf / jnp.maximum(norm, 1e-12)
    sim = jnp.einsum("bld,bmd->blm", x_n, x_n)
    sim = jax.nn.softmax(sim, axis=2)
    out = (1.0 + scale) * xf - scale * jnp.einsum("blm,bmd->bld", sim, xf)
    return out.astype(x.dtype)


def _pick_tile(L, preferred):
    """Largest multiple of 128 that divides L and is <= min(preferred, L)."""
    t = min(preferred, L)
    t -= t % 128
    while t >= 128:
        if L % t == 0:
            return t
        t -= 128
    return None


def contranorm(x, scale, center=False, *, block_q=1024, block_k=512):
    """ContraNorm forward.  x: (B, L, D).

    `center` is accepted for API parity; the PyTorch forward in the spec never
    uses it.
    """
    if scale == 0.0:
        return x
    B, L, D = x.shape

    # Tiny / unaligned problems: per-grid-step overhead (~0.35 us), masked
    # partial stores and lane-sparse MXU passes would dominate -- let XLA's
    # fused path handle them.
    if D % 128 != 0 or L % 128 != 0:
        return _contranorm_ref(x, scale)

    # v7x megacore: keep >= 2 independent (batch x query-tile) programs on the
    # 'parallel' grid axes so both TensorCores get work.
    bq = block_q
    if B == 1 and L >= 256:
        bq = min(bq, L // 2)
    tq = _pick_tile(L, bq)
    tk = _pick_tile(L, block_k)
    if tq is None or tk is None:
        return _contranorm_ref(x, scale)

    kernel = functools.partial(_contranorm_flash_kernel, scale=float(scale))

    grid = (B, L // tq, L // tk)
    return pl.pallas_call(
        kernel,
        out_shape=jax.ShapeDtypeStruct((B, L, D), x.dtype),
        grid_spec=pltpu.PrefetchScalarGridSpec(
            num_scalar_prefetch=0,
            grid=grid,
            in_specs=[
                # query tile of x: constant across the key (reduction) axis
                pl.BlockSpec((pl.Squeezed(), tq, D),
                             lambda b, qi, ki: (b, qi, 0)),
                # key tile of x: streamed along the reduction axis
                # TODO(synk): add pipeline_mode=pl.Buffered(3) if profiles show
                # the key DMA exposed on v5e/v6e (VMEM headroom is ample).
                pl.BlockSpec((pl.Squeezed(), tk, D),
                             lambda b, qi, ki: (b, ki, 0)),
            ],
            out_specs=pl.BlockSpec((pl.Squeezed(), tq, D),
                                   lambda b, qi, ki: (b, qi, 0)),
            scratch_shapes=[
                pltpu.VMEM((tq, 1), jnp.float32),     # softmax denominator l
                pltpu.VMEM((tq, D), jnp.float32),     # output accumulator
                pltpu.VMEM((tq, D), jnp.bfloat16),    # normalized query tile
            ],
        ),
        compiler_params=pltpu.CompilerParams(
            # batch + query tiles: independent work for megacore / pipelining;
            # key tiles: sequential softmax-denominator reduction.
            dimension_semantics=("parallel", "parallel", "arbitrary"),
            # Well under v7x's 64 MiB physical VMEM; above the 16/32 MiB
            # scoped defaults so large Tq/Tk tiles never get down-tiled.
            vmem_limit_bytes=48 * 1024 * 1024,
        ),
    )(x, x)


if __name__ == "__main__":
    # ContraNorm has no learnable parameters; only hyperparameters scale/center.
    scale = 0.1
    center = False

    B, L, D = 2, 512, 128
    key = jax.random.PRNGKey(0)
    x = jax.random.normal(key, (B, L, D), dtype=jnp.float32)
    ref = _contranorm_ref(x, scale)

    # Multi-tile call: several query tiles AND key tiles, exercising the
    # streaming denominator accumulation across the 'arbitrary' key axis.
    out = jax.block_until_ready(
        contranorm(x, scale, center, block_q=256, block_k=128))
    assert out.shape == (B, L, D)
    # bf16 MXU operands + bf16 exp + approx EUP reciprocal -> slightly looser
    # tolerance than bit-exact f32.
    err = jnp.max(jnp.abs(out - ref))
    assert jnp.allclose(out, ref, atol=2e-3, rtol=2e-3), f"max abs err = {err}"

    # Default tiling (Tq = Tk = 512 for this shape).
    out_d = jax.block_until_ready(contranorm(x, scale, center))
    err_d = jnp.max(jnp.abs(out_d - ref))
    assert jnp.allclose(out_d, ref, atol=2e-3, rtol=2e-3), f"max abs err = {err_d}"

    # Tiny-shape path (dispatches to the fused XLA implementation).
    xs = jax.random.normal(jax.random.PRNGKey(1), (2, 8, 32), dtype=jnp.float32)
    outs = jax.block_until_ready(contranorm(xs, scale, center))
    assert jnp.allclose(outs, _contranorm_ref(xs, scale), atol=1e-5, rtol=1e-5)

    # scale == 0.0 path: identity.
    out0 = jax.block_until_ready(contranorm(x, 0.0, center))
    assert jnp.array_equal(out0, x)

    print("KERNEL_OK")
</pallas_src>

<mosaic_0001>
module attributes {stable_mosaic.version = 11 : i64} {
  func.func @_contranorm_flash_kernel(%arg0: i32, %arg1: i32, %arg2: i32, %arg3: memref<1x256x128xf32, #tpu.memory_space<vmem>>, %arg4: memref<1x128x128xf32, #tpu.memory_space<vmem>>, %arg5: memref<1x256x128xf32, #tpu.memory_space<vmem>>, %arg6: memref<256x1xf32, #tpu.memory_space<vmem>>, %arg7: memref<256x128xf32, #tpu.memory_space<vmem>>, %arg8: memref<256x128xbf16, #tpu.memory_space<vmem>>) attributes {dimension_semantics = [#tpu.dimension_semantics<parallel>, #tpu.dimension_semantics<parallel>, #tpu.dimension_semantics<arbitrary>], iteration_bounds = array<i64: 2, 2, 4>, scalar_prefetch = 0 : i64, scratch_operands = 3 : i64, tpu.core_type = #tpu.core_type<tc>, window_params = [{transform_indices = @transform_0, window_bounds = array<i64: 1, 256, 128>}, {transform_indices = @transform_1, window_bounds = array<i64: 1, 128, 128>}, {transform_indices = @transform_2, window_bounds = array<i64: 1, 256, 128>}]} {
    %c0_i32 = arith.constant 0 : i32
    %0 = arith.cmpi eq, %arg2, %c0_i32 : i32
    %1 = arith.extui %0 : i1 to i32
    %c0_i32_0 = arith.constant 0 : i32
    %2 = arith.cmpi ne, %1, %c0_i32_0 : i32
    scf.if %2 {
      %c0_18 = arith.constant 0 : index
      %c0_19 = arith.constant 0 : index
      %c0_20 = arith.constant 0 : index
      %32 = vector.load %arg3[%c0_18, %c0_19, %c0_20] : memref<1x256x128xf32, #tpu.memory_space<vmem>>, vector<1x256x128xf32>
      %33 = vector.shape_cast %32 : vector<1x256x128xf32> to vector<256x128xf32>
      %34 = arith.mulf %33, %33 : vector<256x128xf32>
      %cst_21 = arith.constant dense<0.000000e+00> : vector<256xf32>
      %35 = vector.multi_reduction <add>, %34, %cst_21 [1] : vector<256x128xf32> to vector<256xf32>
      %36 = vector.shape_cast %35 : vector<256xf32> to vector<256x1xf32>
      %cst_22 = arith.constant 1.000000e-24 : f32
      %37 = vector.broadcast %cst_22 : f32 to vector<256x1xf32>
      %38 = arith.maximumf %36, %37 : vector<256x1xf32>
      %39 = math.rsqrt %38 : vector<256x1xf32>
      %40 = vector.broadcast %39 : vector<256x1xf32> to vector<256x128xf32>
      %41 = arith.mulf %33, %40 : vector<256x128xf32>
      %42 = arith.truncf %41 : vector<256x128xf32> to vector<256x128xbf16>
      %c0_23 = arith.constant 0 : index
      %c0_24 = arith.constant 0 : index
      %43 = vector.load %arg8[%c0_23, %c0_24] : memref<256x128xbf16, #tpu.memory_space<vmem>>, vector<256x128xbf16>
      tpu.vector_store %arg8[%c0_23, %c0_24], %42 {strides = array<i32>} : memref<256x128xbf16, #tpu.memory_space<vmem>>, vector<256x128xbf16>,
      %cst_25 = arith.constant 0.000000e+00 : f32
      %44 = vector.broadcast %cst_25 : f32 to vector<256x1xf32>
      %c0_26 = arith.constant 0 : index
      %c0_27 = arith.constant 0 : index
      %45 = vector.load %arg6[%c0_26, %c0_27] : memref<256x1xf32, #tpu.memory_space<vmem>>, vector<256x1xf32>
      tpu.vector_store %arg6[%c0_26, %c0_27], %44 {strides = array<i32>} : memref<256x1xf32, #tpu.memory_space<vmem>>, vector<256x1xf32>,
      %cst_28 = arith.constant 0.000000e+00 : f32
      %46 = vector.broadcast %cst_28 : f32 to vector<256x128xf32>
      %c0_29 = arith.constant 0 : index
      %c0_30 = arith.constant 0 : index
      %47 = vector.load %arg7[%c0_29, %c0_30] : memref<256x128xf32, #tpu.memory_space<vmem>>, vector<256x128xf32>
      tpu.vector_store %arg7[%c0_29, %c0_30], %46 {strides = array<i32>} : memref<256x128xf32, #tpu.memory_space<vmem>>, vector<256x128xf32>,
    } else {
    }
    %c0 = arith.constant 0 : index
    %c0_1 = arith.constant 0 : index
    %c0_2 = arith.constant 0 : index
    %3 = vector.load %arg4[%c0, %c0_1, %c0_2] : memref<1x128x128xf32, #tpu.memory_space<vmem>>, vector<1x128x128xf32>
    %4 = vector.shape_cast %3 : vector<1x128x128xf32> to vector<128x128xf32>
    %5 = arith.mulf %4, %4 : vector<128x128xf32>
    %cst = arith.constant dense<0.000000e+00> : vector<128xf32>
    %6 = vector.multi_reduction <add>, %5, %cst [1] : vector<128x128xf32> to vector<128xf32>
    %7 = vector.shape_cast %6 : vector<128xf32> to vector<128x1xf32>
    %cst_3 = arith.constant 1.000000e-24 : f32
    %8 = vector.broadcast %cst_3 : f32 to vector<128x1xf32>
    %9 = arith.maximumf %7, %8 : vector<128x1xf32>
    %10 = math.rsqrt %9 : vector<128x1xf32>
    %11 = vector.broadcast %10 : vector<128x1xf32> to vector<128x128xf32>
    %12 = arith.mulf %4, %11 : vector<128x128xf32>
    %13 = arith.truncf %12 : vector<128x128xf32> to vector<128x128xbf16>
    %c0_4 = arith.constant 0 : index
    %c0_5 = arith.constant 0 : index
    %14 = vector.load %arg8[%c0_4, %c0_5] : memref<256x128xbf16, #tpu.memory_space<vmem>>, vector<256x128xbf16>
    %cst_6 = arith.constant dense<0.000000e+00> : vector<256x128xf32>
    %15 = tpu.matmul %14, %13, %cst_6 {dimension_numbers = #tpu.dot_dimension_numbers<[1], [1], [0], [0], [0, 0, 1, 0], [], []>} : vector<256x128xbf16>, vector<128x128xbf16>, vector<256x128xf32> -> vector<256x128xf32>
    %16 = arith.truncf %15 : vector<256x128xf32> to vector<256x128xbf16>
    %17 = math.exp %16 : vector<256x128xbf16>
    %c0_7 = arith.constant 0 : index
    %c0_8 = arith.constant 0 : index
    %18 = vector.load %arg6[%c0_7, %c0_8] : memref<256x1xf32, #tpu.memory_space<vmem>>, vector<256x1xf32>
    %19 = arith.extf %17 : vector<256x128xbf16> to vector<256x128xf32>
    %cst_9 = arith.constant dense<0.000000e+00> : vector<256xf32>
    %20 = vector.multi_reduction <add>, %19, %cst_9 [1] : vector<256x128xf32> to vector<256xf32>
    %21 = vector.shape_cast %20 : vector<256xf32> to vector<256x1xf32>
    %22 = arith.addf %18, %21 : vector<256x1xf32>
    %c0_10 = arith.constant 0 : index
    %c0_11 = arith.constant 0 : index
    %23 = vector.load %arg6[%c0_10, %c0_11] : memref<256x1xf32, #tpu.memory_space<vmem>>, vector<256x1xf32>
    tpu.vector_store %arg6[%c0_10, %c0_11], %22 {strides = array<i32>} : memref<256x1xf32, #tpu.memory_space<vmem>>, vector<256x1xf32>,
    %c0_12 = arith.constant 0 : index
    %c0_13 = arith.constant 0 : index
    %24 = vector.load %arg7[%c0_12, %c0_13] : memref<256x128xf32, #tpu.memory_space<vmem>>, vector<256x128xf32>
    %25 = arith.truncf %4 : vector<128x128xf32> to vector<128x128xbf16>
    %cst_14 = arith.constant dense<0.000000e+00> : vector<256x128xf32>
    %26 = tpu.matmul %17, %25, %cst_14 {dimension_numbers = #tpu.dot_dimension_numbers<[1], [0], [0], [1], [0, 0, 1, 1], [], []>} : vector<256x128xbf16>, vector<128x128xbf16>, vector<256x128xf32> -> vector<256x128xf32>
    %27 = arith.addf %24, %26 : vector<256x128xf32>
    %c0_15 = arith.constant 0 : index
    %c0_16 = arith.constant 0 : index
    %28 = vector.load %arg7[%c0_15, %c0_16] : memref<256x128xf32, #tpu.memory_space<vmem>>, vector<256x128xf32>
    tpu.vector_store %arg7[%c0_15, %c0_16], %27 {strides = array<i32>} : memref<256x128xf32, #tpu.memory_space<vmem>>, vector<256x128xf32>,
    %c3_i32 = arith.constant 3 : i32
    %29 = arith.cmpi eq, %arg2, %c3_i32 : i32
    %30 = arith.extui %29 : i1 to i32
    %c0_i32_17 = arith.constant 0 : i32
    %31 = arith.cmpi ne, %30, %c0_i32_17 : i32
    scf.if %31 {
      %c0_18 = arith.constant 0 : index
      %c0_19 = arith.constant 0 : index
      %c0_20 = arith.constant 0 : index
      %32 = vector.load %arg3[%c0_18, %c0_19, %c0_20] : memref<1x256x128xf32, #tpu.memory_space<vmem>>, vector<1x256x128xf32>
      %33 = vector.shape_cast %32 : vector<1x256x128xf32> to vector<256x128xf32>
      %c0_21 = arith.constant 0 : index
      %c0_22 = arith.constant 0 : index
      %34 = vector.load %arg6[%c0_21, %c0_22] : memref<256x1xf32, #tpu.memory_space<vmem>>, vector<256x1xf32>
      %35 = tpu.reciprocal %34 {approx = true} : vector<256x1xf32> -> vector<256x1xf32>
      %cst_23 = arith.constant 1.100000e+00 : f32
      %36 = vector.broadcast %cst_23 : f32 to vector<256x128xf32>
      %37 = arith.mulf %36, %33 : vector<256x128xf32>
      %c0_24 = arith.constant 0 : index
      %c0_25 = arith.constant 0 : index
      %38 = vector.load %arg7[%c0_24, %c0_25] : memref<256x128xf32, #tpu.memory_space<vmem>>, vector<256x128xf32>
      %39 = vector.broadcast %35 : vector<256x1xf32> to vector<256x128xf32>
      %40 = arith.mulf %38, %39 : vector<256x128xf32>
      %cst_26 = arith.constant 1.000000e-01 : f32
      %41 = vector.broadcast %cst_26 : f32 to vector<256x128xf32>
      %42 = arith.mulf %41, %40 : vector<256x128xf32>
      %43 = arith.subf %37, %42 : vector<256x128xf32>
      %c0_27 = arith.constant 0 : index
      %c0_28 = arith.constant 0 : index
      %c0_29 = arith.constant 0 : index
      %44 = vector.load %arg5[%c0_27, %c0_28, %c0_29] : memref<1x256x128xf32, #tpu.memory_space<vmem>>, vector<1x256x128xf32>
      %45 = vector.shape_cast %44 : vector<1x256x128xf32> to vector<256x128xf32>
      %46 = vector.shape_cast %43 : vector<256x128xf32> to vector<1x256x128xf32>
      tpu.vector_store %arg5[%c0_27, %c0_28, %c0_29], %46 {strides = array<i32>} : memref<1x256x128xf32, #tpu.memory_space<vmem>>, vector<1x256x128xf32>,
    } else {
    }
    return
  }
  func.func @transform_0(%arg0: i32, %arg1: i32, %arg2: i32) -> (i32, i32, i32) {
    %c0_i32 = arith.constant 0 : i32
    %c0_i32_0 = arith.constant 0 : i32
    return %arg0, %arg1, %c0_i32 : i32, i32, i32
  }
  func.func @transform_1(%arg0: i32, %arg1: i32, %arg2: i32) -> (i32, i32, i32) {
    %c0_i32 = arith.constant 0 : i32
    %c0_i32_0 = arith.constant 0 : i32
    return %arg0, %arg2, %c0_i32 : i32, i32, i32
  }
  func.func @transform_2(%arg0: i32, %arg1: i32, %arg2: i32) -> (i32, i32, i32) {
    %c0_i32 = arith.constant 0 : i32
    %c0_i32_0 = arith.constant 0 : i32
    return %arg0, %arg1, %c0_i32 : i32, i32, i32
  }
}

</mosaic_0001>

<bundles_post_ra>
// kernel: tpu_custom_call.1
= control target key start
LH: loop header
LB: loop body
LE: loop exit
PB: predicated region body
PF: predicated region fallthrough
CT: control target
= control target key end

     0   :  { %s4811_s0 = inlined_call_operand.hbm [shape: f32[2,512,128], index: 0, kind: input, shape index: {}]   ;;  %s4812_s1 = inlined_call_operand.hbm [shape: f32[2,512,128], index: 1, kind: input, shape index: {}]   ;;  %s4813_s2 = inlined_call_operand.hbm [shape: f32[2,512,128], index: 2, kind: output, shape index: {}]  }
   0x1   :  { %4826 = sst [smem:[#allocation24_spill]] %s4811_s0 }
   0x2   :  { %4827 = sst [smem:[#allocation25_spill]] %s4813_s2 }
   0x3   :  { %7 = vsyncpa [#allocation6], 0 }
   0x4   :  { %9 = vsyncpa [#allocation6 + $0x1], 0 }
   0x5   :  { %10 = vsyncpa [#allocation9], 0 }
   0x6   :  { %12 = vsyncpa [#allocation9 + $0x1], 0 }
   0x7   :  { %13 = vsyncpa [#allocation7], 0 }
   0x8   :  { %15 = vsyncpa [#allocation7 + $0x1], 0  ;;  %s3266_s9 = smov 0   ;;  %s3268_s10 = smov 0  }
   0x9   :  { %s3270_s11 = smov 0   ;;  %s3272_s12 = smov 0  }
   0xa   :  { %s3274_s13 = smov 0   ;;  %s3276_s14 = smov 0  }
   0xb   :  { %s3278_s15 = smov 0   ;;  %s3280_s16 = smov 0  }
   0xc   :  { %s3282_s17 = smov 0   ;;  %s3284_s18 = smov 0  }
   0xd   :  { %s3286_s19 = smov 0   ;;  %s3288_s20 = smov 0  }
   0xe   :  { %s3290_s21 = smov 0  }
   0xf LB: > { %4828 = sst [smem:[#allocation14_spill]] %s3207_s12  ;;  %s2470_s22 = sadd.s32 4294967295, %s3243_s21   ;;  %s3243_s21 = sphi %s3290_s21, %s21_s21   ;;  %s3239_s20 = sphi %s3288_s20, %s4919_s20   ;;  %s3235_s19 = sphi %s3286_s19, %s4910_s19   ;;  %s3231_s18 = sphi %s3284_s18, %s4909_s18   ;;  %s3227_s17 = sphi %s3282_s17, %s4918_s17   ;;  %s3223_s16 = sphi %s3280_s16, %s4908_s16   ;;  %s3219_s15 = sphi %s3278_s15, %s4917_s15   ;;  %s3215_s14 = sphi %s3276_s14, %s4916_s14   ;;  %s3211_s13 = sphi %s3274_s13, %s4915_s13   ;;  %s3207_s12 = sphi %s3272_s12, %s4914_s12   ;;  %s3203_s11 = sphi %s3270_s11, %s4913_s11   ;;  %s3199_s10 = sphi %s3268_s10, %s4912_s10   ;;  %s3195_s9 = sphi %s3266_s9, %s4911_s9  }
  0x10   : > { %4829 = sst [smem:[#allocation15_spill]] %s3219_s15  ;;  %s2471_s23 = sadd.s32 4294967294, %s3243_s21  }
  0x11   : > { %4830 = sst [smem:[#allocation16_spill]] %s3223_s16  ;;  %p56_p0 = scmp.ne.s32.totalorder %s3215_s14, %s3211_s13 }
  0x12   : > { %4831 = sst [smem:[#allocation17_spill]] %s3227_s17  ;;  %p57_p1 = scmp.eq.s32.totalorder %s3243_s21, 0 }
  0x13   : > { %4832 = sst [smem:[#allocation18_spill]] %s3231_s18  ;;  %p62_p2 = scmp.ne.s32.totalorder %s3211_s13, %s3207_s12 }
  0x14   : > { %4833 = sst [smem:[#allocation19_spill]] %s3235_s19  ;;  %p3341_p3 = scmp.eq.s32.totalorder %s2470_s22, 0 }
  0x15   : > { %p116_p4 = scmp.eq.s32.totalorder %s2470_s22, 15  ;;  %p3347_p5 = por %p57_p1, %p56_p0 }
  0x16   : > { %p122_p6 = scmp.eq.s32.totalorder %s2471_s23, 15  ;;  %p3353_p7 = por %p3341_p3, %p62_p2 }
  0x17   : > { %p3357_p8 = por %p116_p4, %p56_p0  ;;  %p2702_p10 = scmp.lt.s32.totalorder %s3243_s21, 16 }
  0x18   : > { %p3361_p9 = por %p122_p6, %p62_p2  ;;  %s142_s4 = sand.u32 1, %s3215_s14  }
  0x19   : > { %s4837_s30 = scalar_select %p3357_p8, 1, 0 }
  0x1a   : > { %s4839_s3 = scalar_select %p3361_p9, 1, 0 }
  0x1b   : > { %4838 = sst [smem:[#allocation20_spill]] %s4837_s30  ;;  %s2474_s5 = sshll.u32 %s142_s4, 8 }
  0x1c   : > { %4840 = sst [smem:[#allocation21_spill]] %s4839_s3  ;;  %s2475_s6 = sshll.u32 %s3235_s19, 5 }
  0x1d   : > { %s4815_s7 = sshll.u32 %s3239_s20, 6  ;;  %s146_s8 = scalar_lea.vmem [#allocation5], %s2474_s5 }
  0x1e   : > { %s156_s22 = sshll.u32 %s146_s8, 4  ;;  %s151_s23 = sadd.s32 %s4815_s7, %s2475_s6  ;;  %s157_s22 = int_to_ptr.vmem [resolvable:$true] %s156_s22 }
  0x1f   : > { %s2477_s26 = sshll.u32 %s151_s23, 3  ;;  %p2692_p11 = pnand %p2702_p10, %p3347_p5 }
  0x20   : > { %s4841_s0 = sld [smem:[#allocation24_spill]]  ;;  %s143_s6 = scalar_lea.sflag [#allocation6], %s142_s4 }
  0x21   : > { %s4816_s8 = smov 128   ;;  %s4817_s7 = smov 8  }
  0x22   : > { %p2482_p12 = scmp.ge.s32.totalorder %s3243_s21, 1  ;;  %p188_p13 = scmp.lt.s32.totalorder %s3243_s21, 17 }
  0x23   : > { %s33_s25 = sadd.s32 1, %s3231_s18  ;;  %p84_p4 = scmp.ne.s32.totalorder %s3203_s11, %s3199_s10 }
  0x24   : > { %p3383_p0 = pnand %p2482_p12, %p188_p13  ;;  %p34_p2 = scmp.ge.s32.totalorder %s33_s25, 4 }
  0x25   : > { %p90_p5 = scmp.ne.s32.totalorder %s3199_s10, %s3195_s9  ;;  %s4844_s28 = sadd.s32 1, %s3235_s19 }
  0x26   : > { %s153_s3 = scalar_lea.hbm %s4841_s0, %s2477_s26  ;;  %s4921_s25 = smov (%p34_p2, %s33_s25), 0 }
  0x27   : > { %s154_s5 = sshll.u32 %s153_s3, 4  ;;  %4843 = sst [smem:[#allocation22_spill]] %s4921_s25  ;;  %s155_s5 = int_to_ptr.hbm [resolvable:$true] %s154_s5 }
  0x28   : > { %2694 = dma.hbm_to_vmem [thread:$0]  (!%p2692_p11), %s155_s5, 4096, %s157_s22, %s143_s6, %s4816_s8, %s4816_s8, %s4817_s7  }
  0x29   : > { %s4923_s28 = smov (!%p34_p2, %s4844_s28), %s3235_s19  ;;  %s73_s3 = ssub.s32 %s3231_s18, %s4921_s25 }
  0x2a   : > { %p3402_p6 = por %p84_p4, %p57_p1  ;;  %p38_p11 = scmp.ge.s32.totalorder %s4923_s28, 2 }
  0x2b   : > { %p3408_p12 = por %p90_p5, %p3341_p3  ;;  %s166_s23 = sand.u32 1, %s3203_s11  }
  0x2c   : > { %s2479_s9 = sshll.u32 %s3231_s18, 4  ;;  %s4925_s28 = smov (%p38_p11, %s4923_s28), 0 }
  0x2d   : > { %4847 = sst [smem:[#allocation23_spill]] %s4925_s28  ;;  %s4848_s5 = sadd.s32 1, %s3239_s20 }
  0x2e   : > { %s4927_s5 = smov (!%p38_p11, %s4848_s5), %s3239_s20  ;;  %s45_s6 = ssub.s32 %s3235_s19, %s4925_s28 }
  0x2f   : > { %p42_p1 = scmp.ge.s32.totalorder %s4927_s5, 2  ;;  %s2478_s8 = sshll.u32 %s166_s23, 7 }
  0x30   : > { %s4849_s7 = sshll.u32 %s3239_s20, 6  ;;  %s170_s0 = scalar_lea.vmem [#allocation8], %s2478_s8 }
  0x31   : > { %s175_s27 = sadd.s32 %s2479_s9, %s4849_s7  ;;  %s4929_s5 = smov (%p42_p1, %s4927_s5), 0 }
  0x32   : > { %s2481_s26 = sshll.u32 %s175_s27, 3  ;;  %s180_s25 = sshll.u32 %s170_s0, 4  ;;  %s181_s25 = int_to_ptr.vmem [resolvable:$true] %s180_s25 }
  0x33   : > { %s44_s18 = ssub.s32 %s3239_s20, %s4929_s5  ;;  %s177_s28 = scalar_lea.hbm %s4812_s1, %s2481_s26 }
  0x34   : > { %s46_s19 = sor.u32 %s45_s6, %s44_s18  ;;  %s74_s30 = sor.u32 %s73_s3, %s44_s18 }
  0x35   : > { %p47_p3 = scmp.eq.s32.totalorder %s46_s19, 0  ;;  %p75_p13 = scmp.eq.s32.totalorder %s74_s30, 0 }
  0x36   : > { %s178_s17 = sshll.u32 %s177_s28, 4  ;;  %s4850_s7 = sadd.s32 1, %s3215_s14  ;;  %s179_s17 = int_to_ptr.hbm [resolvable:$true] %s178_s17 }
  0x37   : > { %s3433_s9 = scalar_select %p47_p3, %s3215_s14, %s4850_s7  }
  0x38   : > { %s4851_s16 = sadd.s32 1, %s3203_s11  ;;  %p2695_p2 = pnand %p2702_p10, %p3402_p6 }
  0x39   : > { %s3438_s15 = scalar_select %p75_p13, %s3203_s11, %s4851_s16  }
  0x3a   : > { %s167_s0 = scalar_lea.sflag [#allocation9], %s166_s23  ;;  %s4852_s8 = smov 8  }
  0x3b   : > { %s4853_s2 = smov 128   ;;  %192 = sbr.rel (%p3383_p0) target bundleno = 1233 (0x4d1), region = 28 }
  0x3c   : > { %2697 = dma.hbm_to_vmem [thread:$0]  (!%p2695_p2), %s179_s17, 2048, %s181_s25, %s167_s0, %s4853_s2, %s4853_s2, %s4852_s8  }
  0x3d   : > { %s3450_s12 = sand.u32 (!%p3383_p0), 1, %s3211_s13  }
  0x3e   : > { %s2483_s16 = sshll.u32 (!%p3383_p0), %s3450_s12, 8  ;;  %s195_s18 = scalar_lea.sflag (!%p3383_p0), [#allocation6], %s3450_s12 }
  0x3f   : > { %s3454_s19 = scalar_lea.vmem (!%p3383_p0), [#allocation5], %s2483_s16 }
  0x40   : > { %3182 = dma.done.wait (%p3353_p7), %s195_s18, 4096  }
  0x41   : > { %3184 = vsyncadd (%p3353_p7), %s195_s18, 4294963200  ;;  %s204_s17 = sand.u32 1, %s3199_s10  }
  0x42   : > { %s2484_s30 = sshll.u32 %s204_s17, 7  ;;  %s205_s24 = scalar_lea.sflag [#allocation9], %s204_s17 }
  0x43   : > { %s3461_s25 = scalar_lea.vmem [#allocation8], %s2484_s30 }
  0x44   : > { %3186 = dma.done.wait (%p3408_p12), %s205_s24, 2048  }
  0x45   : > { %3188 = vsyncadd (%p3408_p12), %s205_s24, 4294965248  ;;  %s3467_s26 = scalar_lea.vmem [#allocation10], %s2483_s16  ;;  %s4854_s28 = sld [smem:[#allocation15_spill]] }
  0x4b   : > { %p2486_p10 = scmp.ne.s32.totalorder %s4854_s28, 0 }
  0x4d   : > { %241 = sbr.rel (%p2486_p10) target bundleno = 355 (0x163), region = 40 }
  0x52   : > { %v3471_v0 = vld [vmem:[%s3454_s19 + $0x20] sm:$0xff]  ;;  %v3474_v1 = vld [vmem:[%s3454_s19 + $0x10] sm:$0xff]  ;;  %v3486_v6 = vld [vmem:[%s3454_s19 + $0x28] sm:$0xff] }
  0x53   : > { %v3477_v2 = vld [vmem:[%s3454_s19] sm:$0xff]  ;;  %v278_v3 = vmul.f32 %v3471_v0, %v3471_v0  ;;  %v276_v4 = vmul.f32 %v3474_v1, %v3474_v1  ;;  %v3489_v7 = vld [vmem:[%s3454_s19 + $0x18] sm:$0xff]  ;;  %v3492_v8 = vld [vmem:[%s3454_s19 + $0x8] sm:$0xff]  ;;  %v279_v9 = vmul.f32 %v3486_v6, %v3486_v6 }
  0x54   : > { %v274_v5 = vmul.f32 %v3477_v2, %v3477_v2  ;;  %v277_v10 = vmul.f32 %v3489_v7, %v3489_v7  ;;  %v275_v11 = vmul.f32 %v3492_v8, %v3492_v8  ;;  %v3501_v12 = vld [vmem:[%s3454_s19 + $0x40] sm:$0xff]  ;;  %v3504_v13 = vld [vmem:[%s3454_s19 + $0x38] sm:$0xff]  ;;  %v3507_v14 = vld [vmem:[%s3454_s19 + $0x30] sm:$0xff] }
  0x55   : > { %314 = vadd.xlane.f32.xlu2 %v278_v3  ;;  %310 = vadd.xlane.f32.xlu1 %v276_v4  ;;  %v282_v15 = vmul.f32 %v3501_v12, %v3501_v12  ;;  %v281_v16 = vmul.f32 %v3504_v13, %v3504_v13  ;;  %v280_v17 = vmul.f32 %v3507_v14, %v3507_v14  ;;  %v3516_v18 = vld [vmem:[%s3454_s19 + $0x58] sm:$0xff]  ;;  %v3519_v19 = vld [vmem:[%s3454_s19 + $0x50] sm:$0xff]  ;;  %v3522_v20 = vld [vmem:[%s3454_s19 + $0x48] sm:$0xff] }
  0x56   : > { %306 = vadd.xlane.f32.xlu0 %v274_v5  ;;  %v285_v21 = vmul.f32 %v3516_v18, %v3516_v18  ;;  %v284_v22 = vmul.f32 %v3519_v19, %v3519_v19  ;;  %v283_v23 = vmul.f32 %v3522_v20, %v3522_v20  ;;  %v3531_v24 = vld [vmem:[%s3454_s19 + $0x70] sm:$0xff]  ;;  %v3534_v25 = vld [vmem:[%s3454_s19 + $0x68] sm:$0xff]  ;;  %v3537_v26 = vld [vmem:[%s3454_s19 + $0x60] sm:$0xff] }
  0x57   : > { %v288_v27 = vmul.f32 %v3531_v24, %v3531_v24  ;;  %v287_v28 = vmul.f32 %v3534_v25, %v3534_v25  ;;  %v286_v29 = vmul.f32 %v3537_v26, %v3537_v26  ;;  %v3546_v30 = vld [vmem:[%s3454_s19 + $0x88] sm:$0xff]  ;;  %v3549_v31 = vld [vmem:[%s3454_s19 + $0x80] sm:$0xff]  ;;  %v3552_v32 = vld [vmem:[%s3454_s19 + $0x78] sm:$0xff] }
  0x58   : > { %v291_v33 = vmul.f32 %v3546_v30, %v3546_v30  ;;  %v290_v34 = vmul.f32 %v3549_v31, %v3549_v31  ;;  %v289_v35 = vmul.f32 %v3552_v32, %v3552_v32  ;;  %v3561_v36 = vld [vmem:[%s3454_s19 + $0xa0] sm:$0xff]  ;;  %v3564_v37 = vld [vmem:[%s3454_s19 + $0x98] sm:$0xff]  ;;  %v3567_v38 = vld [vmem:[%s3454_s19 + $0x90] sm:$0xff] }
  0x59   : > { %v294_v39 = vmul.f32 %v3561_v36, %v3561_v36  ;;  %v293_v40 = vmul.f32 %v3564_v37, %v3564_v37  ;;  %v292_v41 = vmul.f32 %v3567_v38, %v3567_v38  ;;  %v3576_v42 = vld [vmem:[%s3454_s19 + $0xb8] sm:$0xff]  ;;  %v3579_v43 = vld [vmem:[%s3454_s19 + $0xb0] sm:$0xff]  ;;  %v3582_v44 = vld [vmem:[%s3454_s19 + $0xa8] sm:$0xff] }
  0x5a   : > { %v297_v45 = vmul.f32 %v3576_v42, %v3576_v42  ;;  %v296_v46 = vmul.f32 %v3579_v43, %v3579_v43  ;;  %v295_v47 = vmul.f32 %v3582_v44, %v3582_v44  ;;  %v3591_v48 = vld [vmem:[%s3454_s19 + $0xd0] sm:$0xff]  ;;  %v3594_v49 = vld [vmem:[%s3454_s19 + $0xc8] sm:$0xff]  ;;  %v3597_v50 = vld [vmem:[%s3454_s19 + $0xc0] sm:$0xff] }
  0x5b   : > { %v300_v51 = vmul.f32 %v3591_v48, %v3591_v48  ;;  %v299_v52 = vmul.f32 %v3594_v49, %v3594_v49  ;;  %v298_v53 = vmul.f32 %v3597_v50, %v3597_v50  ;;  %v3606_v54 = vld [vmem:[%s3454_s19 + $0xe8] sm:$0xff]  ;;  %v3609_v55 = vld [vmem:[%s3454_s19 + $0xe0] sm:$0xff]  ;;  %v3612_v56 = vld [vmem:[%s3454_s19 + $0xd8] sm:$0xff] }
  0x5c   : > { %v303_v57 = vmul.f32 %v3606_v54, %v3606_v54  ;;  %v302_v58 = vmul.f32 %v3609_v55, %v3609_v55  ;;  %v301_v59 = vmul.f32 %v3612_v56, %v3612_v56  ;;  %v3621_v60 = vld [vmem:[%s3454_s19 + $0xf8] sm:$0xff]  ;;  %v3624_v61 = vld [vmem:[%s3454_s19 + $0xf0] sm:$0xff] }
  0x5d   : > { %316 = vadd.xlane.f32.xlu2 %v279_v9  ;;  %312 = vadd.xlane.f32.xlu1 %v277_v10  ;;  %v305_v62 = vmul.f32 %v3621_v60, %v3621_v60  ;;  %v304_v63 = vmul.f32 %v3624_v61, %v3624_v61 }
  0x5e   : > { %308 = vadd.xlane.f32.xlu0 %v275_v11 }
  0x65   : > { %322 = vadd.xlane.f32.xlu2 %v282_v15  ;;  %320 = vadd.xlane.f32.xlu1 %v281_v16 }
  0x66   : > { %318 = vadd.xlane.f32.xlu0 %v280_v17 }
  0x6d   : > { %328 = vadd.xlane.f32.xlu2 %v285_v21  ;;  %326 = vadd.xlane.f32.xlu1 %v284_v22 }
  0x6e   : > { %324 = vadd.xlane.f32.xlu0 %v283_v23 }
  0x75   : > { %334 = vadd.xlane.f32.xlu2 %v288_v27  ;;  %332 = vadd.xlane.f32.xlu1 %v287_v28 }
  0x76   : > { %330 = vadd.xlane.f32.xlu0 %v286_v29 }
  0x7d   : > { %340 = vadd.xlane.f32.xlu2 %v291_v33  ;;  %338 = vadd.xlane.f32.xlu1 %v290_v34 }
  0x7e   : > { %336 = vadd.xlane.f32.xlu0 %v289_v35 }
  0x85   : > { %346 = vadd.xlane.f32.xlu2 %v294_v39  ;;  %344 = vadd.xlane.f32.xlu1 %v293_v40 }
  0x86   : > { %342 = vadd.xlane.f32.xlu0 %v292_v41 }
  0x8d   : > { %352 = vadd.xlane.f32.xlu2 %v297_v45  ;;  %350 = vadd.xlane.f32.xlu1 %v296_v46 }
  0x8e   : > { %348 = vadd.xlane.f32.xlu0 %v295_v47 }
  0x95   : > { %358 = vadd.xlane.f32.xlu2 %v300_v51  ;;  %356 = vadd.xlane.f32.xlu1 %v299_v52 }
  0x96   : > { %354 = vadd.xlane.f32.xlu0 %v298_v53 }
  0x9d   : > { %364 = vadd.xlane.f32.xlu2 %v303_v57  ;;  %362 = vadd.xlane.f32.xlu1 %v302_v58 }
  0x9e   : > { %360 = vadd.xlane.f32.xlu0 %v301_v59 }
  0xa5   : > { %368 = vadd.xlane.f32.xlu1 %v305_v62 }
  0xa6   : > { %366 = vadd.xlane.f32.xlu0 %v304_v63 }
  0xc8   : > { %v315_v3 = vpop.xlane.xlu2 %314  ;;  %v311_v4 = vpop.xlane.xlu1 %310 }
  0xc9   : > { %v374_v5 = vmax.f32 %v315_v3, 1e-24  ;;  %v3630_v9 = vmax.f32 %v311_v4, 1e-24  ;;  %v307_v10 = vpop.xlane.xlu0 %306 }
  0xca   : > { %v3632_v11 = vmax.f32 %v307_v10, 1e-24 }
  0xcb   : > { %2814 = vrsqrt.f32 %v374_v5  ;;  %vm448_vm0 = vweird.f32 %v374_v5  ;;  %vm428_vm1 = vweird.f32 %v3630_v9 }
  0xcc   : > { %2816 = vrsqrt.f32 %v3630_v9  ;;  %vm408_vm4 = vweird.f32 %v3632_v11 }
  0xcd   : > { %2818 = vrsqrt.f32 %v3632_v11 }
  0xd0   : > { %v317_v15 = vpop.xlane.xlu2 %316  ;;  %v313_v16 = vpop.xlane.xlu1 %312 }
  0xd1   : > { %v3636_v17 = vpop.eup %2814  ;;  %v3638_v21 = vmax.f32 %v317_v15, 1e-24  ;;  %v3640_v22 = vmax.f32 %v313_v16, 1e-24  ;;  %v309_v23 = vpop.xlane.xlu0 %308 }
  0xd2   : > { %v3642_v27 = vpop.eup %2816  ;;  %v443_v28 = vmul.f32 %v3636_v17, %v374_v5  ;;  %v3645_v29 = vmax.f32 %v309_v23, 1e-24  ;;  %vm449_vm2 = vweird.f32 %v3636_v17 }
  0xd3   : > { %v3647_v33 = vpop.eup %2818  ;;  %v423_v34 = vmul.f32 %v3642_v27, %v3630_v9  ;;  %2820 = vrsqrt.f32 %v3638_v21  ;;  %vm429_vm3 = vweird.f32 %v3642_v27  ;;  %vm458_vm5 = vweird.f32 %v3638_v21  ;;  %vm3689_vm10 = vmor %vm448_vm0, %vm449_vm2 }
  0xd4   : > { %v444_v35 = vmul.f32 %v3636_v17, %v443_v28  ;;  %v403_v39 = vmul.f32 %v3647_v33, %v3632_v11  ;;  %2822 = vrsqrt.f32 %v3640_v22  ;;  %vm409_vm6 = vweird.f32 %v3647_v33  ;;  %vm3703_vm12 = vmor %vm428_vm1, %vm429_vm3 }
  0xd5   : > { %v424_v40 = vmul.f32 %v3642_v27, %v423_v34  ;;  %2824 = vrsqrt.f32 %v3645_v29  ;;  %vm438_vm7 = vweird.f32 %v3640_v22  ;;  %vm418_vm9 = vweird.f32 %v3645_v29  ;;  %vm3722_vm13 = vmor %vm408_vm4, %vm409_vm6 }
  0xd6   : > { %v445_v41 = vmul.f32 0.5, %v444_v35  ;;  %v404_v45 = vmul.f32 %v3647_v33, %v403_v39 }
  0xd7   : > { %v425_v46 = vmul.f32 0.5, %v424_v40 }
  0xd8   : > { %v446_v47 = vsub.f32 1.5, %v445_v41  ;;  %v405_v51 = vmul.f32 0.5, %v404_v45  ;;  %v323_v52 = vpop.xlane.xlu2 %322  ;;  %v321_v53 = vpop.xlane.xlu1 %320 }
  0xd9   : > { %v3659_v57 = vpop.eup %2820  ;;  %v426_v58 = vsub.f32 1.5, %v425_v46  ;;  %v3662_v59 = vmax.f32 %v323_v52, 1e-24  ;;  %v319_v62 = vpop.xlane.xlu0 %318  ;;  %v3674_v16 = vmax.f32 %v321_v53, 1e-24 }
  0xda   : > { %v3664_v63 = vpop.eup %2822  ;;  %v453_v3 = vmul.f32 %v3659_v57, %v3638_v21  ;;  %v406_v10 = vsub.f32 1.5, %v405_v51  ;;  %v447_v23 = vmul.f32 %v3636_v17, %v446_v47  ;;  %vm459_vm8 = vweird.f32 %v3659_v57 }
  0xdb   : > { %v2825_v4 = vpop.eup %2824  ;;  %v433_v15 = vmul.f32 %v3664_v63, %v3640_v22  ;;  %2826 = vrsqrt.f32 %v3662_v59  ;;  %v427_v35 = vmul.f32 %v3642_v27, %v426_v58  ;;  %vm439_vm11 = vweird.f32 %v3664_v63  ;;  %vm460_vm15 = vmor %vm458_vm5, %vm459_vm8 }
  0xdc   : > { %v454_v28 = vmul.f32 %v3659_v57, %v453_v3  ;;  %v413_v34 = vmul.f32 %v2825_v4, %v3645_v29  ;;  %v407_v46 = vmul.f32 %v3647_v33, %v406_v10  ;;  %2828 = vrsqrt.f32 %v3674_v16  ;;  %vm440_vm0 = vmor %vm438_vm7, %vm439_vm11 }
  0xdd   : > { %v434_v39 = vmul.f32 %v3664_v63, %v433_v15  ;;  %v451_v51 = vsel %vm3689_vm10, %v3636_v17, %v447_v23  ;;  %v3707_v58 = vmax.f32 %v319_v62, 1e-24  ;;  %v431_v17 = vsel %vm3703_vm12, %v3642_v27, %v427_v35 }
  0xde   : > { %v455_v40 = vmul.f32 0.5, %v454_v28  ;;  %v414_v41 = vmul.f32 %v2825_v4, %v413_v34  ;;  %vm419_vm14 = vweird.f32 %v2825_v4  ;;  %v726_v35 = vmul.f32 %v451_v51, %v3471_v0 }
  0xdf   : > { %v435_v47 = vmul.f32 0.5, %v434_v39  ;;  %2830 = vrsqrt.f32 %v3707_v58  ;;  %v724_v21 = vmul.f32 %v431_v17, %v3474_v1  ;;  %vm420_vm1 = vmor %vm418_vm9, %vm419_vm14  ;;  %vm488_vm2 = vweird.f32 %v3662_v59 }
  0xe0   : > { %v456_v52 = vsub.f32 1.5, %v455_v40  ;;  %v415_v53 = vmul.f32 0.5, %v414_v41  ;;  %v329_v3 = vpop.xlane.xlu2 %328  ;;  %v327_v10 = vpop.xlane.xlu1 %326  ;;  %v411_v41 = vsel %vm3722_vm13, %v3647_v33, %v407_v46  ;;  %vm478_vm3 = vweird.f32 %v3674_v16 }
  0xe1   : > { %v3709_v15 = vpop.eup %2826  ;;  %v436_v23 = vsub.f32 1.5, %v435_v47  ;;  %v3714_v28 = vmax.f32 %v329_v3, 1e-24  ;;  %v3716_v9 = vmax.f32 %v327_v10, 1e-24  ;;  %v325_v34 = vpop.xlane.xlu0 %324  ;;  %v722_v22 = vmul.f32 %v411_v41, %v3477_v2 }
  0xe2   : > { %v457_v39 = vmul.f32 %v3659_v57, %v456_v52  ;;  %v416_v40 = vsub.f32 1.5, %v415_v53  ;;  %v483_v27 = vmul.f32 %v3709_v15, %v3662_v59  ;;  %v3746_v33 = vpop.eup %2828  ;;  %v3760_v3 = vmax.f32 %v325_v34, 1e-24 }
  0xe3   : > { %v437_v11 = vmul.f32 %v3664_v63, %v436_v23  ;;  %2832 = vrsqrt.f32 %v3714_v28  ;;  %v473_v52 = vmul.f32 %v3746_v33, %v3674_v16  ;;  %vm489_vm4 = vweird.f32 %v3709_v15 }
  0xe4   : > { %v461_v45 = vsel %vm460_vm15, %v3659_v57, %v457_v39  ;;  %v417_v0 = vmul.f32 %v2825_v4, %v416_v40  ;;  %v484_v47 = vmul.f32 %v3709_v15, %v483_v27  ;;  %2834 = vrsqrt.f32 %v3716_v9  ;;  %vm3818_vm12 = vmor %vm488_vm2, %vm489_vm4 }
  0xe5   : > { %v727_v46 = vmul.f32 %v461_v45, %v3486_v6  ;;  %v441_v51 = vsel %vm440_vm0, %v3664_v63, %v437_v11  ;;  %v474_v29 = vmul.f32 %v3746_v33, %v473_v52  ;;  %v3763_v23 = vpop.eup %2830  ;;  %2836 = vrsqrt.f32 %v3760_v3 }
  0xe6   : > { %v725_v57 = vmul.f32 %v441_v51, %v3489_v7  ;;  %v421_v5 = vsel %vm420_vm1, %v2825_v4, %v417_v0  ;;  %v485_v6 = vmul.f32 0.5, %v484_v47  ;;  %v463_v34 = vmul.f32 %v3763_v23, %v3707_v58 }
  0xe7   : > { %v2587_v53 = vpack.c.bf16 %v727_v46, %v726_v35  ;;  %v723_v1 = vmul.f32 %v421_v5, %v3492_v8  ;;  %v475_v8 = vmul.f32 0.5, %v474_v29  ;;  %vm479_vm5 = vweird.f32 %v3746_v33 }
  0xe8   : > { %v2582_v63 = vpack.c.bf16 %v725_v57, %v724_v21  ;;  %v335_v10 = vpop.xlane.xlu2 %334  ;;  %v333_v17 = vpop.xlane.xlu1 %332  ;;  %v486_v40 = vsub.f32 1.5, %v485_v6  ;;  %v464_v41 = vmul.f32 %v3763_v23, %v463_v34  ;;  %vm468_vm6 = vweird.f32 %v3707_v58  ;;  %vm3798_vm8 = vmor %vm478_vm3, %vm479_vm5 }
  0xe9   : > { %2655 = vst [vmem:[#allocation4 + $0x68] sm:$0xff] %v2587_v53   ;;  %v2577_v2 = vpack.c.bf16 %v723_v1, %v722_v22  ;;  %v3766_v7 = vmax.f32 %v335_v10, 1e-24  ;;  %v331_v4 = vpop.xlane.xlu0 %330  ;;  %v3768_v62 = vpop.eup %2832  ;;  %v476_v35 = vsub.f32 1.5, %v475_v8  ;;  %vm518_vm7 = vweird.f32 %v3714_v28 }
  0xea   : > { %2654 = vst [vmem:[#allocation4 + $0x48] sm:$0xff] %v2582_v63   ;;  %v3774_v39 = vpop.eup %2834  ;;  %v513_v27 = vmul.f32 %v3768_v62, %v3714_v28  ;;  %v3787_v0 = vmax.f32 %v333_v17, 1e-24  ;;  %v465_v21 = vmul.f32 0.5, %v464_v41  ;;  %v3791_v51 = vmax.f32 %v331_v4, 1e-24 }
  0xeb   : > { %2578 = vst [vmem:[#allocation4] sm:$0xff] %v2577_v2   ;;  %2838 = vrsqrt.f32 %v3766_v7  ;;  %v503_v11 = vmul.f32 %v3774_v39, %v3716_v9  ;;  %v477_v47 = vmul.f32 %v3746_v33, %v476_v35  ;;  %v3793_v22 = vpop.eup %2836  ;;  %v487_v57 = vmul.f32 %v3709_v15, %v486_v40 }
  0xec   : > { %v514_v45 = vmul.f32 %v3768_v62, %v513_v27  ;;  %vm469_vm9 = vweird.f32 %v3763_v23  ;;  %2840 = vrsqrt.f32 %v3787_v0  ;;  %v466_v1 = vsub.f32 1.5, %v465_v21 }
  0xed   : > { %v504_v46 = vmul.f32 %v3774_v39, %v503_v11  ;;  %v481_v53 = vsel %vm3798_vm8, %v3746_v33, %v477_v47  ;;  %v493_v63 = vmul.f32 %v3793_v22, %v3760_v3  ;;  %vm519_vm10 = vweird.f32 %v3768_v62  ;;  %vm470_vm13 = vmor %vm468_vm6, %vm469_vm9 }
  0xee   : > { %v515_v52 = vmul.f32 0.5, %v514_v45  ;;  %vm509_vm11 = vweird.f32 %v3774_v39  ;;  %2842 = vrsqrt.f32 %v3791_v51  ;;  %v467_v4 = vmul.f32 %v3763_v23, %v466_v1  ;;  %vm520_vm15 = vmor %vm518_vm7, %vm519_vm10 }
  0xef   : > { %v505_v6 = vmul.f32 0.5, %v504_v46  ;;  %v494_v34 = vmul.f32 %v3793_v22, %v493_v63  ;;  %v729_v27 = vmul.f32 %v481_v53, %v3504_v13  ;;  %vm508_vm14 = vweird.f32 %v3716_v9 }
  0xf0   : > { %v341_v29 = vpop.xlane.xlu2 %340  ;;  %v339_v16 = vpop.xlane.xlu1 %338  ;;  %v516_v17 = vsub.f32 1.5, %v515_v52  ;;  %v471_v41 = vsel %vm470_vm13, %v3763_v23, %v467_v4  ;;  %v491_v9 = vsel %vm3818_vm12, %v3709_v15, %v487_v57  ;;  %vm510_vm0 = vmor %vm508_vm14, %vm509_vm11  ;;  %vm499_vm1 = vweird.f32 %v3793_v22 }
  0xf1   : > { %v3809_v10 = vpop.eup %2838  ;;  %v337_v2 = vpop.xlane.xlu0 %336  ;;  %v506_v8 = vsub.f32 1.5, %v505_v6  ;;  %v3833_v35 = vmax.f32 %v341_v29, 1e-24  ;;  %v495_v11 = vmul.f32 0.5, %v494_v34  ;;  %v728_v47 = vmul.f32 %v471_v41, %v3507_v14 }
  0xf2   : > { %v543_v40 = vmul.f32 %v3809_v10, %v3766_v7  ;;  %v517_v59 = vmul.f32 %v3768_v62, %v516_v17  ;;  %v3842_v58 = vpop.eup %2840  ;;  %vm498_vm2 = vweird.f32 %v3760_v3  ;;  %vm548_vm3 = vweird.f32 %v3766_v7 }
  0xf3   : > { %v507_v13 = vmul.f32 %v3774_v39, %v506_v8  ;;  %2844 = vrsqrt.f32 %v3833_v35  ;;  %v496_v46 = vsub.f32 1.5, %v495_v11  ;;  %v2592_v52 = vpack.c.bf16 %v729_v27, %v728_v47  ;;  %vm500_vm4 = vmor %vm498_vm2, %vm499_vm1 }
  0xf4   : > { %v544_v45 = vmul.f32 %v3809_v10, %v543_v40  ;;  %v521_v23 = vsel %vm520_vm15, %v3768_v62, %v517_v59  ;;  %v3855_v5 = vpop.eup %2842  ;;  %v533_v62 = vmul.f32 %v3842_v58, %v3787_v0  ;;  %v3866_v6 = vmax.f32 %v339_v16, 1e-24 }
  0xf5   : > { %v733_v28 = vmul.f32 %v521_v23, %v3516_v18  ;;  %v511_v21 = vsel %vm510_vm0, %v3774_v39, %v507_v13  ;;  %v497_v57 = vmul.f32 %v3793_v22, %v496_v46  ;;  %v523_v18 = vmul.f32 %v3855_v5, %v3791_v51  ;;  %2656 = vst [vmem:[#allocation4 + $0x78] sm:$0xff] %v2592_v52  }
  0xf6   : > { %v732_v15 = vmul.f32 %v511_v21, %v3519_v19  ;;  %v545_v14 = vmul.f32 0.5, %v544_v45  ;;  %v534_v19 = vmul.f32 %v3842_v58, %v533_v62  ;;  %v3868_v63 = vmax.f32 %v337_v2, 1e-24 }
  0xf7   : > { %v730_v17 = vmul.f32 %v491_v9, %v3501_v12  ;;  %v501_v3 = vsel %vm500_vm4, %v3793_v22, %v497_v57  ;;  %v524_v33 = vmul.f32 %v3855_v5, %v523_v18  ;;  %2846 = vrsqrt.f32 %v3866_v6 }
  0xf8   : > { %v347_v39 = vpop.xlane.xlu2 %346  ;;  %v345_v53 = vpop.xlane.xlu1 %344  ;;  %v2602_v1 = vpack.c.bf16 %v733_v28, %v732_v15  ;;  %v731_v34 = vmul.f32 %v501_v3, %v3522_v20  ;;  %v546_v40 = vsub.f32 1.5, %v545_v14  ;;  %v535_v27 = vmul.f32 0.5, %v534_v19 }
  0xf9   : > { %v343_v29 = vpop.xlane.xlu0 %342  ;;  %v3873_v4 = vmax.f32 %v347_v39, 1e-24  ;;  %v3875_v8 = vpop.eup %2844  ;;  %vm549_vm5 = vweird.f32 %v3809_v10  ;;  %vm538_vm6 = vweird.f32 %v3787_v0  ;;  %v525_v12 = vmul.f32 0.5, %v524_v33 }
  0xfa   : > { %2658 = vst [vmem:[#allocation4 + $0x50] sm:$0xff] %v2602_v1   ;;  %v573_v22 = vmul.f32 %v3875_v8, %v3833_v35  ;;  %v2597_v16 = vpack.c.bf16 %v731_v34, %v730_v17  ;;  %v536_v2 = vsub.f32 1.5, %v535_v27  ;;  %vm539_vm7 = vweird.f32 %v3842_v58  ;;  %vm3909_vm13 = vmor %vm548_vm3, %vm549_vm5 }
  0xfb   : > { %2848 = vrsqrt.f32 %v3868_v63  ;;  %v526_v59 = vsub.f32 1.5, %v525_v12  ;;  %vm529_vm8 = vweird.f32 %v3855_v5  ;;  %v547_v41 = vmul.f32 %v3809_v10, %v546_v40  ;;  %vm540_vm9 = vmor %vm538_vm6, %vm539_vm7 }
  0xfc   : > { %v574_v20 = vmul.f32 %v3875_v8, %v573_v22  ;;  %2850 = vrsqrt.f32 %v3873_v4  ;;  %2657 = vst [vmem:[#allocation4 + $0x8] sm:$0xff] %v2597_v16   ;;  %v537_v13 = vmul.f32 %v3842_v58, %v536_v2  ;;  %v3890_v11 = vmax.f32 %v345_v53, 1e-24 }
  0xfd   : > { %v3892_v45 = vmax.f32 %v343_v29, 1e-24  ;;  %v527_v9 = vmul.f32 %v3855_v5, %v526_v59  ;;  %vm528_vm10 = vweird.f32 %v3791_v51  ;;  %v3898_v21 = vpop.eup %2846  ;;  %vm578_vm12 = vweird.f32 %v3833_v35 }
  0xfe   : > { %v575_v47 = vmul.f32 0.5, %v574_v20  ;;  %v541_v46 = vsel %vm540_vm9, %v3842_v58, %v537_v13  ;;  %vm530_vm11 = vmor %vm528_vm10, %vm529_vm8  ;;  %2852 = vrsqrt.f32 %v3890_v11  ;;  %v563_v14 = vmul.f32 %v3898_v21, %v3866_v6 }
  0xff   : > { %v735_v52 = vmul.f32 %v541_v46, %v3534_v25  ;;  %v531_v58 = vsel %vm530_vm11, %v3855_v5, %v527_v9  ;;  %v551_v57 = vsel %vm3909_vm13, %v3809_v10, %v547_v41  ;;  %2854 = vrsqrt.f32 %v3892_v45 }
 0x100   : > { %v353_v23 = vpop.xlane.xlu2 %352  ;;  %v351_v28 = vpop.xlane.xlu1 %350  ;;  %v576_v15 = vsub.f32 1.5, %v575_v47  ;;  %v734_v7 = vmul.f32 %v531_v58, %v3537_v26  ;;  %vm579_vm14 = vweird.f32 %v3875_v8  ;;  %v564_v5 = vmul.f32 %v3898_v21, %v563_v14 }
 0x101   : > { %v349_v0 = vpop.xlane.xlu0 %348  ;;  %v3917_v62 = vpop.eup %2848  ;;  %v3924_v18 = vmax.f32 %v353_v23, 1e-24  ;;  %vm568_vm15 = vweird.f32 %v3866_v6  ;;  %v3938_v10 = vmul.f32 %v551_v57, %v3531_v24  ;;  %vm558_vm0 = vweird.f32 %v3868_v63  ;;  %vm3946_vm1 = vmor %vm578_vm12, %vm579_vm14 }
 0x102   : > { %v3926_v39 = vpop.eup %2850  ;;  %v577_v25 = vmul.f32 %v3875_v8, %v576_v15  ;;  %v553_v53 = vmul.f32 %v3917_v62, %v3868_v63  ;;  %v2607_v1 = vpack.c.bf16 %v735_v52, %v734_v7  ;;  %v565_v19 = vmul.f32 0.5, %v564_v5 }
 0x103   : > { %v603_v26 = vmul.f32 %v3926_v39, %v3873_v4  ;;  %2856 = vrsqrt.f32 %v3924_v18  ;;  %vm569_vm2 = vweird.f32 %v3898_v21  ;;  %v3952_v24 = vmax.f32 %v351_v28, 1e-24 }
 0x104   : > { %v554_v29 = vmul.f32 %v3917_v62, %v553_v53  ;;  %v3942_v17 = vpop.eup %2852  ;;  %2659 = vst [vmem:[#allocation4 + $0x40] sm:$0xff] %v2607_v1   ;;  %v3954_v34 = vmax.f32 %v349_v0, 1e-24  ;;  %v581_v40 = vsel %vm3946_vm1, %v3875_v8, %v577_v25  ;;  %v566_v27 = vsub.f32 1.5, %v565_v19  ;;  %vm570_vm5 = vmor %vm568_vm15, %vm569_vm2 }
 0x105   : > { %v604_v33 = vmul.f32 %v3926_v39, %v603_v26  ;;  %v593_v35 = vmul.f32 %v3942_v17, %v3890_v11  ;;  %v3961_v2 = vpop.eup %2854  ;;  %vm559_vm3 = vweird.f32 %v3917_v62  ;;  %vm598_vm4 = vweird.f32 %v3890_v11 }
 0x106   : > { %v555_v12 = vmul.f32 0.5, %v554_v29  ;;  %2858 = vrsqrt.f32 %v3952_v24  ;;  %v567_v41 = vmul.f32 %v3898_v21, %v566_v27  ;;  %v583_v9 = vmul.f32 %v3961_v2, %v3892_v45  ;;  %vm560_vm8 = vmor %vm558_vm0, %vm559_vm3 }
 0x107   : > { %v605_v59 = vmul.f32 0.5, %v604_v33  ;;  %v594_v13 = vmul.f32 %v3942_v17, %v593_v35  ;;  %v739_v23 = vmul.f32 %v581_v40, %v3546_v30  ;;  %vm588_vm6 = vweird.f32 %v3892_v45 }
 0x108   : > { %v359_v22 = vpop.xlane.xlu2 %358  ;;  %v357_v16 = vpop.xlane.xlu1 %356  ;;  %v556_v8 = vsub.f32 1.5, %v555_v12  ;;  %2860 = vrsqrt.f32 %v3954_v34  ;;  %v571_v46 = vsel %vm570_vm5, %v3898_v21, %v567_v41  ;;  %vm608_vm7 = vweird.f32 %v3873_v4 }
 0x109   : > { %v355_v20 = vpop.xlane.xlu0 %354  ;;  %v3970_v47 = vpop.eup %2856  ;;  %v3979_v28 = vmax.f32 %v359_v22, 1e-24  ;;  %v595_v51 = vmul.f32 0.5, %v594_v13  ;;  %v584_v30 = vmul.f32 %v3961_v2, %v583_v9  ;;  %v738_v52 = vmul.f32 %v571_v46, %v3549_v31 }
 0x10a   : > { %v557_v0 = vmul.f32 %v3917_v62, %v556_v8  ;;  %v606_v6 = vsub.f32 1.5, %v605_v59  ;;  %vm599_vm9 = vweird.f32 %v3942_v17  ;;  %v633_v21 = vmul.f32 %v3970_v47, %v3924_v18 }
 0x10b   : > { %v596_v15 = vsub.f32 1.5, %v595_v51  ;;  %v585_v14 = vmul.f32 0.5, %v584_v30  ;;  %2862 = vrsqrt.f32 %v3979_v28  ;;  %v2617_v31 = vpack.c.bf16 %v739_v23, %v738_v52  ;;  %vm600_vm12 = vmor %vm598_vm4, %vm599_vm9 }
 0x10c   : > { %v561_v58 = vsel %vm560_vm8, %v3917_v62, %v557_v0  ;;  %v3995_v57 = vpop.eup %2858  ;;  %vm609_vm10 = vweird.f32 %v3926_v39  ;;  %v634_v63 = vmul.f32 %v3970_v47, %v633_v21  ;;  %vm589_vm11 = vweird.f32 %v3961_v2 }
 0x10d   : > { %v737_v7 = vmul.f32 %v561_v58, %v3552_v32  ;;  %v597_v25 = vmul.f32 %v3942_v17, %v596_v15  ;;  %v586_v5 = vsub.f32 1.5, %v585_v14  ;;  %v623_v62 = vmul.f32 %v3995_v57, %v3952_v24  ;;  %2661 = vst [vmem:[#allocation4 + $0x70] sm:$0xff] %v2617_v31   ;;  %vm590_vm14 = vmor %vm588_vm6, %vm589_vm11 }
 0x10e   : > { %v4004_v1 = vpop.eup %2860  ;;  %v607_v32 = vmul.f32 %v3926_v39, %v606_v6  ;;  %v635_v19 = vmul.f32 0.5, %v634_v63  ;;  %vm638_vm13 = vweird.f32 %v3924_v18  ;;  %vm639_vm15 = vweird.f32 %v3970_v47  ;;  %vm4048_vm2 = vmor %vm608_vm7, %vm609_vm10 }
 0x10f   : > { %v2612_v26 = vpack.c.bf16 %v737_v7, %v3938_v10  ;;  %v601_v29 = vsel %vm600_vm12, %v3942_v17, %v597_v25  ;;  %v587_v3 = vmul.f32 %v3961_v2, %v586_v5  ;;  %v624_v33 = vmul.f32 %v3995_v57, %v623_v62  ;;  %vm4038_vm0 = vmor %vm638_vm13, %vm639_vm15 }
 0x110   : > { %v363_v53 = vpop.xlane.xlu1 %362  ;;  %v613_v40 = vmul.f32 %v4004_v1, %v3954_v34  ;;  %v741_v10 = vmul.f32 %v601_v29, %v3564_v37  ;;  %v636_v11 = vsub.f32 1.5, %v635_v19  ;;  %v4024_v27 = vmax.f32 %v357_v16, 1e-24 }
 0x111   : > { %2660 = vst [vmem:[#allocation4 + $0x38] sm:$0xff] %v2612_v26   ;;  %v361_v17 = vpop.xlane.xlu0 %360  ;;  %v4026_v12 = vpop.eup %2862  ;;  %v591_v35 = vsel %vm590_vm14, %v3961_v2, %v587_v3  ;;  %v625_v22 = vmul.f32 0.5, %v624_v33  ;;  %v4030_v41 = vmax.f32 %v355_v20, 1e-24  ;;  %vm629_vm1 = vweird.f32 %v3995_v57 }
 0x112   : > { %v614_v59 = vmul.f32 %v4004_v1, %v613_v40  ;;  %v740_v37 = vmul.f32 %v591_v35, %v3567_v38  ;;  %v637_v45 = vmul.f32 %v3970_v47, %v636_v11  ;;  %v663_v8 = vmul.f32 %v4026_v12, %v3979_v28  ;;  %v365_v20 = vpop.xlane.xlu2 %364 }
 0x113   : > { %v626_v13 = vsub.f32 1.5, %v625_v22  ;;  %2864 = vrsqrt.f32 %v4024_v27  ;;  %vm628_vm3 = vweird.f32 %v3952_v24  ;;  %v611_v23 = vsel %vm4048_vm2, %v3926_v39, %v607_v32 }
 0x114   : > { %v615_v2 = vmul.f32 0.5, %v614_v59  ;;  %v2622_v18 = vpack.c.bf16 %v741_v10, %v740_v37  ;;  %v641_v9 = vsel %vm4038_vm0, %v3970_v47, %v637_v45  ;;  %2866 = vrsqrt.f32 %v4030_v41  ;;  %vm630_vm5 = vmor %vm628_vm3, %vm629_vm1 }
 0x115   : > { %v627_v46 = vmul.f32 %v3995_v57, %v626_v13  ;;  %vm619_vm4 = vweird.f32 %v4004_v1  ;;  %v745_v51 = vmul.f32 %v641_v9, %v3576_v42  ;;  %v664_v24 = vmul.f32 %v4026_v12, %v663_v8 }
 0x116   : > { %v616_v4 = vsub.f32 1.5, %v615_v2  ;;  %2662 = vst [vmem:[#allocation4 + $0x60] sm:$0xff] %v2622_v18   ;;  %v4066_v47 = vmax.f32 %v365_v20, 1e-24  ;;  %v4068_v30 = vmax.f32 %v363_v53, 1e-24  ;;  %vm618_vm6 = vweird.f32 %v3954_v34 }
 0x117   : > { %v631_v39 = vsel %vm630_vm5, %v3995_v57, %v627_v46  ;;  %v4073_v6 = vmax.f32 %v361_v17, 1e-24  ;;  %vm620_vm7 = vmor %vm618_vm6, %vm619_vm4  ;;  %v742_v15 = vmul.f32 %v611_v23, %v3561_v36  ;;  %v665_v7 = vmul.f32 0.5, %v664_v24 }
 0x118   : > { %v369_v0 = vpop.xlane.xlu1 %368  ;;  %v617_v52 = vmul.f32 %v4004_v1, %v616_v4  ;;  %v744_v21 = vmul.f32 %v631_v39, %v3579_v43  ;;  %2868 = vrsqrt.f32 %v4066_v47  ;;  %vm668_vm8 = vweird.f32 %v3979_v28 }
 0x119   : > { %v4077_v42 = vmax.f32 %v369_v0, 1e-24  ;;  %v4079_v58 = vpop.eup %2864  ;;  %2870 = vrsqrt.f32 %v4068_v30  ;;  %v367_v63 = vpop.xlane.xlu0 %366  ;;  %vm669_vm9 = vweird.f32 %v4026_v12  ;;  %vm658_vm10 = vweird.f32 %v4024_v27 }
 0x11a   : > { %v621_v14 = vsel %vm620_vm7, %v4004_v1, %v617_v52  ;;  %v4084_v57 = vpop.eup %2866  ;;  %v2632_v34 = vpack.c.bf16 %v745_v51, %v744_v21  ;;  %v653_v43 = vmul.f32 %v4079_v58, %v4024_v27  ;;  %2872 = vrsqrt.f32 %v4073_v6  ;;  %vm4164_vm5 = vmor %vm668_vm8, %vm669_vm9 }
 0x11b   : > { %v743_v31 = vmul.f32 %v621_v14, %v3582_v44  ;;  %v643_v25 = vmul.f32 %v4084_v57, %v4030_v41  ;;  %2874 = vrsqrt.f32 %v4077_v42  ;;  %v4098_v62 = vmax.f32 %v367_v63, 1e-24 }
 0x11c   : > { %2664 = vst [vmem:[#allocation4 + $0x20] sm:$0xff] %v2632_v34   ;;  %v654_v5 = vmul.f32 %v4079_v58, %v653_v43  ;;  %v666_v1 = vsub.f32 1.5, %v665_v7  ;;  %vm818_vm11 = vcmask 7168   ;;  %vm648_vm12 = vweird.f32 %v4030_v41 }
 0x11d   : > { %v2627_v36 = vpack.c.bf16 %v743_v31, %v742_v15  ;;  %v644_v44 = vmul.f32 %v4084_v57, %v643_v25  ;;  %2876 = vrsqrt.f32 %v4098_v62  ;;  %v3247_v3 = vmov 0.0  }
 0x11e   : > { %v4100_v53 = vpop.eup %2868  ;;  %v655_v26 = vmul.f32 0.5, %v654_v5  ;;  %819 = vst.msk [vmem:[#allocation2] sm:$0xff] %vm818_vm11, %v3247_v3  ;;  %vm659_vm13 = vweird.f32 %v4079_v58  ;;  %vm698_vm14 = vweird.f32 %v4066_v47  ;;  %vm649_vm15 = vweird.f32 %v4084_v57 }
 0x11f   : > { %2663 = vst [vmem:[#allocation4 + $0x18] sm:$0xff] %v2627_v36   ;;  %v4102_v32 = vpop.eup %2870  ;;  %v645_v19 = vmul.f32 0.5, %v644_v44  ;;  %v693_v29 = vmul.f32 %v4100_v53, %v4066_v47  ;;  %vm688_vm0 = vweird.f32 %v4068_v30  ;;  %v667_v22 = vmul.f32 %v4026_v12, %v666_v1  ;;  %vm660_vm1 = vmor %vm658_vm10, %vm659_vm13 }
 0x120   : > { %v656_v33 = vsub.f32 1.5, %v655_v26  ;;  %v683_v40 = vmul.f32 %v4102_v32, %v4068_v30  ;;  %820 = vst.msk [vmem:[#allocation2 + $0x8] sm:$0xff] %vm818_vm11, %v3247_v3  ;;  %v4116_v10 = vpop.eup %2872  ;;  %vm699_vm2 = vweird.f32 %v4100_v53  ;;  %vm650_vm3 = vmor %vm648_vm12, %vm649_vm15  ;;  %vm689_vm4 = vweird.f32 %v4102_v32 }
 0x121   : > { %v646_v11 = vsub.f32 1.5, %v645_v19  ;;  %v694_v17 = vmul.f32 %v4100_v53, %v693_v29  ;;  %821 = vst.msk [vmem:[#allocation2 + $0x10] sm:$0xff] %vm818_vm11, %v3247_v3  ;;  %v4123_v35 = vpop.eup %2874  ;;  %v673_v45 = vmul.f32 %v4116_v10, %v4073_v6  ;;  %vm678_vm6 = vweird.f32 %v4073_v6  ;;  %vm700_vm10 = vmor %vm698_vm14, %vm699_vm2 }
 0x122   : > { %v657_v59 = vmul.f32 %v4079_v58, %v656_v33  ;;  %v684_v37 = vmul.f32 %v4102_v32, %v683_v40  ;;  %822 = vst.msk [vmem:[#allocation2 + $0x18] sm:$0xff] %vm818_vm11, %v3247_v3  ;;  %v713_v13 = vmul.f32 %v4123_v35, %v4077_v42  ;;  %vm679_vm7 = vweird.f32 %v4116_v10  ;;  %vm690_vm8 = vmor %vm688_vm0, %vm689_vm4 }
 0x123   : > { %v647_v8 = vmul.f32 %v4084_v57, %v646_v11  ;;  %v695_v16 = vmul.f32 0.5, %v694_v17  ;;  %823 = vst.msk [vmem:[#allocation2 + $0x20] sm:$0xff] %vm818_vm11, %v3247_v3  ;;  %v674_v20 = vmul.f32 %v4116_v10, %v673_v45  ;;  %v2877_v38 = vpop.eup %2876  ;;  %vm719_vm9 = vweird.f32 %v4123_v35  ;;  %vm680_vm12 = vmor %vm678_vm6, %vm679_vm7 }
 0x124   : > { %v661_v2 = vsel %vm660_vm1, %v4079_v58, %v657_v59  ;;  %v685_v27 = vmul.f32 0.5, %v684_v37  ;;  %824 = vst.msk [vmem:[#allocation2 + $0x28] sm:$0xff] %vm818_vm11, %v3247_v3  ;;  %v714_v46 = vmul.f32 %v4123_v35, %v713_v13  ;;  %v703_v51 = vmul.f32 %v2877_v38, %v4098_v62 }
 0x125   : > { %v747_v18 = vmul.f32 %v661_v2, %v3594_v49  ;;  %v651_v9 = vsel %vm650_vm3, %v4084_v57, %v647_v8  ;;  %v696_v23 = vsub.f32 1.5, %v695_v16  ;;  %825 = vst.msk [vmem:[#allocation2 + $0x30] sm:$0xff] %vm818_vm11, %v3247_v3  ;;  %v675_v0 = vmul.f32 0.5, %v674_v20 }
 0x126   : > { %v746_v41 = vmul.f32 %v651_v9, %v3597_v50  ;;  %v686_v4 = vsub.f32 1.5, %v685_v27  ;;  %826 = vst.msk [vmem:[#allocation2 + $0x38] sm:$0xff] %vm818_vm11, %v3247_v3  ;;  %v715_v50 = vmul.f32 0.5, %v714_v46  ;;  %v704_v21 = vmul.f32 %v2877_v38, %v703_v51 }
 0x127   : > { %v697_v24 = vmul.f32 %v4100_v53, %v696_v23  ;;  %827 = vst.msk [vmem:[#allocation2 + $0x40] sm:$0xff] %vm818_vm11, %v3247_v3  ;;  %v676_v52 = vsub.f32 1.5, %v675_v0  ;;  %v671_v58 = vsel %vm4164_vm5, %v4026_v12, %v667_v22  ;;  %vm718_vm13 = vweird.f32 %v4077_v42 }
 0x128   : > { %v2637_v39 = vpack.c.bf16 %v747_v18, %v746_v41  ;;  %v687_v28 = vmul.f32 %v4102_v32, %v686_v4  ;;  %828 = vst.msk [vmem:[#allocation2 + $0x48] sm:$0xff] %vm818_vm11, %v3247_v3  ;;  %v716_v47 = vsub.f32 1.5, %v715_v50  ;;  %v705_v34 = vmul.f32 0.5, %v704_v21  ;;  %vm720_vm14 = vmor %vm718_vm13, %vm719_vm9 }
 0x129   : > { %v701_v15 = vsel %vm700_vm10, %v4100_v53, %v697_v24  ;;  %829 = vst.msk [vmem:[#allocation2 + $0x50] sm:$0xff] %vm818_vm11, %v3247_v3  ;;  %v677_v12 = vmul.f32 %v4116_v10, %v676_v52  ;;  %vm709_vm15 = vweird.f32 %v2877_v38  ;;  %vm708_vm0 = vweird.f32 %v4098_v62 }
 0x12a   : > { %2665 = vst [vmem:[#allocation4 + $0x10] sm:$0xff] %v2637_v39   ;;  %v751_v14 = vmul.f32 %v701_v15, %v3606_v54  ;;  %v691_v57 = vsel %vm690_vm8, %v4102_v32, %v687_v28  ;;  %v717_v30 = vmul.f32 %v4123_v35, %v716_v47  ;;  %v706_v7 = vsub.f32 1.5, %v705_v34  ;;  %vm710_vm1 = vmor %vm708_vm0, %vm709_vm15 }
 0x12b   : > { %v750_v31 = vmul.f32 %v691_v57, %v3609_v55  ;;  %830 = vst.msk [vmem:[#allocation2 + $0x58] sm:$0xff] %vm818_vm11, %v3247_v3  ;;  %v681_v54 = vsel %vm680_vm12, %v4116_v10, %v677_v12  ;;  %v748_v55 = vmul.f32 %v671_v58, %v3591_v48 }
 0x12c   : > { %831 = vst.msk [vmem:[#allocation2 + $0x60] sm:$0xff] %vm818_vm11, %v3247_v3  ;;  %v749_v6 = vmul.f32 %v681_v54, %v3612_v56  ;;  %v721_v63 = vsel %vm720_vm14, %v4123_v35, %v717_v30  ;;  %v707_v42 = vmul.f32 %v2877_v38, %v706_v7 }
 0x12d   : > { %v2647_v43 = vpack.c.bf16 %v751_v14, %v750_v31  ;;  %832 = vst.msk [vmem:[#allocation2 + $0x68] sm:$0xff] %vm818_vm11, %v3247_v3  ;;  %v753_v36 = vmul.f32 %v721_v63, %v3621_v60 }
 0x12e   : > { %833 = vst.msk [vmem:[#allocation2 + $0x70] sm:$0xff] %vm818_vm11, %v3247_v3  ;;  %v2642_v25 = vpack.c.bf16 %v749_v6, %v748_v55  ;;  %v711_v48 = vsel %vm710_vm1, %v2877_v38, %v707_v42 }
 0x12f   : > { %2667 = vst [vmem:[#allocation4 + $0x28] sm:$0xff] %v2647_v43   ;;  %v752_v56 = vmul.f32 %v711_v48, %v3624_v61 }
 0x130   : > { %834 = vst.msk [vmem:[#allocation2 + $0x78] sm:$0xff] %vm818_vm11, %v3247_v3 }
 0x131   : > { %2666 = vst [vmem:[#allocation4 + $0x30] sm:$0xff] %v2642_v25   ;;  %v2652_v5 = vpack.c.bf16 %v753_v36, %v752_v56 }
 0x132   : > { %835 = vst.msk [vmem:[#allocation2 + $0x80] sm:$0xff] %vm818_vm11, %v3247_v3 }
 0x133   : > { %836 = vst.msk [vmem:[#allocation2 + $0x88] sm:$0xff] %vm818_vm11, %v3247_v3 }
 0x134   : > { %837 = vst.msk [vmem:[#allocation2 + $0x90] sm:$0xff] %vm818_vm11, %v3247_v3 }
 0x135   : > { %2668 = vst [vmem:[#allocation4 + $0x58] sm:$0xff] %v2652_v5  }
 0x136   : > { %838 = vst.msk [vmem:[#allocation2 + $0x98] sm:$0xff] %vm818_vm11, %v3247_v3 }
 0x137   : > { %839 = vst.msk [vmem:[#allocation2 + $0xa0] sm:$0xff] %vm818_vm11, %v3247_v3 }
 0x138   : > { %840 = vst.msk [vmem:[#allocation2 + $0xa8] sm:$0xff] %vm818_vm11, %v3247_v3 }
 0x139   : > { %841 = vst.msk [vmem:[#allocation2 + $0xb0] sm:$0xff] %vm818_vm11, %v3247_v3 }
 0x13a   : > { %842 = vst.msk [vmem:[#allocation2 + $0xb8] sm:$0xff] %vm818_vm11, %v3247_v3 }
 0x13b   : > { %843 = vst.msk [vmem:[#allocation2 + $0xc0] sm:$0xff] %vm818_vm11, %v3247_v3 }
 0x13c   : > { %844 = vst.msk [vmem:[#allocation2 + $0xc8] sm:$0xff] %vm818_vm11, %v3247_v3 }
 0x13d   : > { %845 = vst.msk [vmem:[#allocation2 + $0xd0] sm:$0xff] %vm818_vm11, %v3247_v3 }
 0x13e   : > { %846 = vst.msk [vmem:[#allocation2 + $0xd8] sm:$0xff] %vm818_vm11, %v3247_v3 }
 0x13f   : > { %847 = vst.msk [vmem:[#allocation2 + $0xe0] sm:$0xff] %vm818_vm11, %v3247_v3 }
 0x140   : > { %848 = vst.msk [vmem:[#allocation2 + $0xe8] sm:$0xff] %vm818_vm11, %v3247_v3 }
 0x141   : > { %849 = vst.msk [vmem:[#allocation2 + $0xf0] sm:$0xff] %vm818_vm11, %v3247_v3 }
 0x142   : > { %850 = vst.msk [vmem:[#allocation2 + $0xf8] sm:$0xff] %vm818_vm11, %v3247_v3 }
 0x143   : > { %851 = vst [vmem:[#allocation3 + $0xb0] sm:$0xff] %v3247_v3 }
 0x144   : > { %852 = vst [vmem:[#allocation3] sm:$0xff] %v3247_v3 }
 0x145   : > { %853 = vst [vmem:[#allocation3 + $0xd8] sm:$0xff] %v3247_v3 }
 0x146   : > { %854 = vst [vmem:[#allocation3 + $0x18] sm:$0xff] %v3247_v3 }
 0x147   : > { %855 = vst [vmem:[#allocation3 + $0x50] sm:$0xff] %v3247_v3 }
 0x148   : > { %856 = vst [vmem:[#allocation3 + $0x68] sm:$0xff] %v3247_v3 }
 0x149   : > { %857 = vst [vmem:[#allocation3 + $0x30] sm:$0xff] %v3247_v3 }
 0x14a   : > { %858 = vst [vmem:[#allocation3 + $0x48] sm:$0xff] %v3247_v3 }
 0x14b   : > { %859 = vst [vmem:[#allocation3 + $0x80] sm:$0xff] %v3247_v3 }
 0x14c   : > { %860 = vst [vmem:[#allocation3 + $0x88] sm:$0xff] %v3247_v3 }
 0x14d   : > { %861 = vst [vmem:[#allocation3 + $0xe8] sm:$0xff] %v3247_v3 }
 0x14e   : > { %862 = vst [vmem:[#allocation3 + $0xb8] sm:$0xff] %v3247_v3 }
 0x14f   : > { %863 = vst [vmem:[#allocation3 + $0x60] sm:$0xff] %v3247_v3 }
 0x150   : > { %864 = vst [vmem:[#allocation3 + $0xf0] sm:$0xff] %v3247_v3 }
 0x151   : > { %865 = vst [vmem:[#allocation3 + $0x8] sm:$0xff] %v3247_v3 }
 0x152   : > { %866 = vst [vmem:[#allocation3 + $0x78] sm:$0xff] %v3247_v3 }
 0x153   : > { %867 = vst [vmem:[#allocation3 + $0x38] sm:$0xff] %v3247_v3 }
 0x154   : > { %868 = vst [vmem:[#allocation3 + $0x58] sm:$0xff] %v3247_v3 }
 0x155   : > { %869 = vst [vmem:[#allocation3 + $0x40] sm:$0xff] %v3247_v3 }
 0x156   : > { %870 = vst [vmem:[#allocation3 + $0xc8] sm:$0xff] %v3247_v3 }
 0x157   : > { %871 = vst [vmem:[#allocation3 + $0xe0] sm:$0xff] %v3247_v3 }
 0x158   : > { %872 = vst [vmem:[#allocation3 + $0x90] sm:$0xff] %v3247_v3 }
 0x159   : > { %873 = vst [vmem:[#allocation3 + $0x70] sm:$0xff] %v3247_v3 }
 0x15a   : > { %874 = vst [vmem:[#allocation3 + $0xc0] sm:$0xff] %v3247_v3 }
 0x15b   : > { %875 = vst [vmem:[#allocation3 + $0xa8] sm:$0xff] %v3247_v3 }
 0x15c   : > { %876 = vst [vmem:[#allocation3 + $0xd0] sm:$0xff] %v3247_v3 }
 0x15d   : > { %877 = vst [vmem:[#allocation3 + $0x10] sm:$0xff] %v3247_v3 }
 0x15e   : > { %878 = vst [vmem:[#allocation3 + $0x28] sm:$0xff] %v3247_v3 }
 0x15f   : > { %879 = vst [vmem:[#allocation3 + $0xa0] sm:$0xff] %v3247_v3 }
 0x160   : > { %880 = vst [vmem:[#allocation3 + $0xf8] sm:$0xff] %v3247_v3 }
 0x161   : > { %881 = vst [vmem:[#allocation3 + $0x20] sm:$0xff] %v3247_v3 }
 0x162   : > { %882 = vst [vmem:[#allocation3 + $0x98] sm:$0xff] %v3247_v3 }
 0x163 PF: > { %v4283_v60 = vld [vmem:[%s3461_s25 + $0x70] sm:$0xff]  ;;  %v4286_v61 = vld [vmem:[%s3461_s25 + $0x60] sm:$0xff]  ;;  %v4298_v26 = vld [vmem:[%s3461_s25 + $0x78] sm:$0xff]  ;;  %s4897_s29 = sld [smem:[#allocation15_spill]] }
 0x164   : > { %v4289_v44 = vld [vmem:[%s3461_s25 + $0x50] sm:$0xff]  ;;  %v913_v62 = vmul.f32 %v4283_v60, %v4283_v60  ;;  %v911_v53 = vmul.f32 %v4286_v61, %v4286_v61  ;;  %v4301_v32 = vld [vmem:[%s3461_s25 + $0x68] sm:$0xff]  ;;  %v4304_v19 = vld [vmem:[%s3461_s25 + $0x58] sm:$0xff]  ;;  %v914_v29 = vmul.f32 %v4298_v26, %v4298_v26 }
 0x165   : > { %v909_v1 = vmul.f32 %v4289_v44, %v4289_v44  ;;  %v912_v3 = vmul.f32 %v4301_v32, %v4301_v32  ;;  %v910_v33 = vmul.f32 %v4304_v19, %v4304_v19  ;;  %v4313_v40 = vld [vmem:[%s3461_s25 + $0x48] sm:$0xff]  ;;  %v4316_v10 = vld [vmem:[%s3461_s25 + $0x40] sm:$0xff]  ;;  %v4319_v11 = vld [vmem:[%s3461_s25 + $0x30] sm:$0xff] }
 0x166   : > { %943 = vadd.xlane.f32.xlu0 %v913_v62  ;;  %939 = vadd.xlane.f32.xlu1 %v911_v53  ;;  %v908_v17 = vmul.f32 %v4313_v40, %v4313_v40  ;;  %v907_v35 = vmul.f32 %v4316_v10, %v4316_v10  ;;  %v905_v22 = vmul.f32 %v4319_v11, %v4319_v11  ;;  %v4328_v59 = vld [vmem:[%s3461_s25 + $0x38] sm:$0xff]  ;;  %v4331_v37 = vld [vmem:[%s3461_s25 + $0x20] sm:$0xff]  ;;  %v4334_v45 = vld [vmem:[%s3461_s25 + $0x28] sm:$0xff] }
 0x167   : > { %935 = vadd.xlane.f32.xlu2 %v909_v1  ;;  %v906_v8 = vmul.f32 %v4328_v59, %v4328_v59  ;;  %v903_v16 = vmul.f32 %v4331_v37, %v4331_v37  ;;  %v904_v13 = vmul.f32 %v4334_v45, %v4334_v45  ;;  %v4343_v2 = vld [vmem:[%s3461_s25 + $0x18] sm:$0xff]  ;;  %v4346_v27 = vld [vmem:[%s3461_s25 + $0x10] sm:$0xff]  ;;  %v4349_v20 = vld [vmem:[%s3461_s25] sm:$0xff] }
 0x168   : > { %v902_v38 = vmul.f32 %v4343_v2, %v4343_v2  ;;  %v901_v18 = vmul.f32 %v4346_v27, %v4346_v27  ;;  %v899_v9 = vmul.f32 %v4349_v20, %v4349_v20  ;;  %v4358_v23 = vld [vmem:[%s3461_s25 + $0x8] sm:$0xff] }
 0x169   : > { %v900_v46 = vmul.f32 %v4358_v23, %v4358_v23  ;;  %p2551_p7 = scmp.ne.s32.totalorder %s4897_s29, 3 }
 0x16e   : > { %945 = vadd.xlane.f32.xlu0 %v914_v29  ;;  %941 = vadd.xlane.f32.xlu1 %v912_v3 }
 0x16f   : > { %937 = vadd.xlane.f32.xlu2 %v910_v33 }
 0x176   : > { %933 = vadd.xlane.f32.xlu1 %v908_v17  ;;  %931 = vadd.xlane.f32.xlu0 %v907_v35 }
 0x177   : > { %927 = vadd.xlane.f32.xlu2 %v905_v22 }
 0x17e   : > { %929 = vadd.xlane.f32.xlu0 %v906_v8  ;;  %923 = vadd.xlane.f32.xlu1 %v903_v16 }
 0x17f   : > { %925 = vadd.xlane.f32.xlu2 %v904_v13 }
 0x186   : > { %921 = vadd.xlane.f32.xlu1 %v902_v38  ;;  %919 = vadd.xlane.f32.xlu0 %v901_v18 }
 0x187   : > { %915 = vadd.xlane.f32.xlu2 %v899_v9 }
 0x18e   : > { %917 = vadd.xlane.f32.xlu0 %v900_v46 }
 0x1d9   : > { %v944_v41 = vpop.xlane.xlu0 %943  ;;  %v940_v4 = vpop.xlane.xlu1 %939 }
 0x1da   : > { %v961_v0 = vmax.f32 %v944_v41, 1e-24  ;;  %v4362_v51 = vmax.f32 %v940_v4, 1e-24  ;;  %v936_v49 = vpop.xlane.xlu2 %935 }
 0x1db   : > { %v4365_v24 = vmax.f32 %v936_v49, 1e-24 }
 0x1dc   : > { %2878 = vrsqrt.f32 %v961_v0  ;;  %vm1109_vm2 = vweird.f32 %v961_v0  ;;  %vm1089_vm6 = vweird.f32 %v4362_v51 }
 0x1dd   : > { %2880 = vrsqrt.f32 %v4362_v51  ;;  %vm1069_vm0 = vweird.f32 %v4365_v24 }
 0x1de   : > { %2882 = vrsqrt.f32 %v4365_v24 }
 0x1e1   : > { %v946_v50 = vpop.xlane.xlu0 %945  ;;  %v942_v39 = vpop.xlane.xlu1 %941 }
 0x1e2   : > { %v4367_v28 = vpop.eup %2878  ;;  %v962_v52 = vmax.f32 %v946_v50, 1e-24  ;;  %v4369_v21 = vmax.f32 %v942_v39, 1e-24  ;;  %v938_v58 = vpop.xlane.xlu2 %937 }
 0x1e3   : > { %v4371_v15 = vpop.eup %2880  ;;  %v1104_v47 = vmul.f32 %v4367_v28, %v961_v0  ;;  %v4375_v14 = vmax.f32 %v938_v58, 1e-24  ;;  %vm1110_vm11 = vweird.f32 %v4367_v28 }
 0x1e4   : > { %2884 = vrsqrt.f32 %v962_v52  ;;  %v1084_v12 = vmul.f32 %v4371_v15, %v4362_v51  ;;  %v4382_v31 = vpop.eup %2882  ;;  %vm1119_vm3 = vweird.f32 %v962_v52  ;;  %vm4408_vm5 = vmor %vm1109_vm2, %vm1110_vm11  ;;  %vm1099_vm10 = vweird.f32 %v4369_v21 }
 0x1e5   : > { %v1105_v57 = vmul.f32 %v4367_v28, %v1104_v47  ;;  %2886 = vrsqrt.f32 %v4369_v21  ;;  %v1064_v53 = vmul.f32 %v4382_v31, %v4365_v24  ;;  %vm1090_vm9 = vweird.f32 %v4371_v15 }
 0x1e6   : > { %2888 = vrsqrt.f32 %v4375_v14  ;;  %v1085_v55 = vmul.f32 %v4371_v15, %v1084_v12  ;;  %vm4458_vm13 = vmor %vm1089_vm6, %vm1090_vm9  ;;  %vm1079_vm14 = vweird.f32 %v4375_v14  ;;  %vm1070_vm1 = vweird.f32 %v4382_v31 }
 0x1e7   : > { %v1106_v34 = vmul.f32 0.5, %v1105_v57  ;;  %v1065_v18 = vmul.f32 %v4382_v31, %v1064_v53  ;;  %vm4489_vm2 = vmor %vm1069_vm0, %vm1070_vm1 }
 0x1e8   : > { %v1086_v62 = vmul.f32 0.5, %v1085_v55 }
 0x1e9   : > { %v934_v30 = vpop.xlane.xlu1 %933  ;;  %v932_v54 = vpop.xlane.xlu0 %931  ;;  %v1107_v42 = vsub.f32 1.5, %v1106_v34 }
 0x1ea   : > { %v2885_v7 = vpop.eup %2884  ;;  %v4385_v43 = vmax.f32 %v934_v30, 1e-24  ;;  %v4387_v6 = vmax.f32 %v932_v54, 1e-24  ;;  %v928_v36 = vpop.xlane.xlu2 %927  ;;  %v1087_v38 = vsub.f32 1.5, %v1086_v62  ;;  %v1066_v30 = vmul.f32 0.5, %v1065_v18 }
 0x1eb   : > { %v4389_v63 = vpop.eup %2886  ;;  %v1114_v25 = vmul.f32 %v2885_v7, %v962_v52  ;;  %v4403_v33 = vmax.f32 %v928_v36, 1e-24  ;;  %v1108_v17 = vmul.f32 %v4367_v28, %v1107_v42  ;;  %vm1120_vm4 = vweird.f32 %v2885_v7 }
 0x1ec   : > { %v4391_v48 = vpop.eup %2888  ;;  %v1094_v56 = vmul.f32 %v4389_v63, %v4369_v21  ;;  %2890 = vrsqrt.f32 %v4385_v43  ;;  %vm1121_vm7 = vmor %vm1119_vm3, %vm1120_vm4  ;;  %vm1100_vm8 = vweird.f32 %v4389_v63  ;;  %v1088_v54 = vmul.f32 %v4371_v15, %v1087_v38 }
 0x1ed   : > { %v1115_v5 = vmul.f32 %v2885_v7, %v1114_v25  ;;  %2892 = vrsqrt.f32 %v4387_v6  ;;  %v1074_v29 = vmul.f32 %v4391_v48, %v4375_v14  ;;  %v1112_v49 = vsel %vm4408_vm5, %v4367_v28, %v1108_v17  ;;  %vm4441_vm12 = vmor %vm1099_vm10, %vm1100_vm8 }
 0x1ee   : > { %v1095_v1 = vmul.f32 %v4389_v63, %v1094_v56  ;;  %2894 = vrsqrt.f32 %v4403_v33  ;;  %v1137_v12 = vmul.f32 %v1112_v49, %v4283_v60  ;;  %vm1080_vm15 = vweird.f32 %v4391_v48 }
 0x1ef   : > { %v1116_v3 = vmul.f32 0.5, %v1115_v5  ;;  %v1075_v9 = vmul.f32 %v4391_v48, %v1074_v29  ;;  %v1067_v29 = vsub.f32 1.5, %v1066_v30  ;;  %vm4476_vm11 = vmor %vm1079_vm14, %vm1080_vm15  ;;  %vm1059_vm3 = vweird.f32 %v4385_v43 }
 0x1f0   : > { %v1096_v35 = vmul.f32 0.5, %v1095_v1  ;;  %vm1049_vm5 = vweird.f32 %v4387_v6  ;;  %vm1029_vm8 = vweird.f32 %v4403_v33 }
 0x1f1   : > { %v1117_v22 = vsub.f32 1.5, %v1116_v3  ;;  %v930_v8 = vpop.xlane.xlu0 %929  ;;  %v924_v41 = vpop.xlane.xlu1 %923  ;;  %v1076_v57 = vmul.f32 0.5, %v1075_v9  ;;  %v1068_v9 = vmul.f32 %v4382_v31, %v1067_v29 }
 0x1f2   : > { %v4406_v16 = vpop.eup %2890  ;;  %v4414_v46 = vmax.f32 %v930_v8, 1e-24  ;;  %v1097_v0 = vsub.f32 1.5, %v1096_v35  ;;  %v926_v28 = vpop.xlane.xlu2 %925  ;;  %v4434_v34 = vmax.f32 %v924_v41, 1e-24 }
 0x1f3   : > { %v4416_v4 = vpop.eup %2892  ;;  %v1118_v50 = vmul.f32 %v2885_v7, %v1117_v22  ;;  %v1054_v39 = vmul.f32 %v4406_v16, %v4385_v43  ;;  %v4445_v25 = vmax.f32 %v926_v28, 1e-24  ;;  %v1077_v1 = vsub.f32 1.5, %v1076_v57 }
 0x1f4   : > { %2896 = vrsqrt.f32 %v4414_v46  ;;  %v1044_v58 = vmul.f32 %v4416_v4, %v4387_v6  ;;  %v1098_v55 = vmul.f32 %v4389_v63, %v1097_v0  ;;  %v4447_v36 = vpop.eup %2894  ;;  %vm1060_vm4 = vweird.f32 %v4406_v16  ;;  %v2558_v0 = vld [vmem:[#allocation4] sm:$0xff] }
 0x1f5   : > { %v1122_v47 = vsel %vm1121_vm7, %v2885_v7, %v1118_v50  ;;  %v1055_v56 = vmul.f32 %v4406_v16, %v1054_v39  ;;  %2898 = vrsqrt.f32 %v4434_v34  ;;  %v1024_v51 = vmul.f32 %v4447_v36, %v4403_v33  ;;  %vm4514_vm7 = vmor %vm1059_vm3, %vm1060_vm4 }
 0x1f6   : > { %v1138_v52 = vmul.f32 %v1122_v47, %v4298_v26  ;;  %v1045_v5 = vmul.f32 %v4416_v4, %v1044_v58  ;;  %v1102_v62 = vsel %vm4441_vm12, %v4389_v63, %v1098_v55  ;;  %v1092_v63 = vsel %vm4458_vm13, %v4371_v15, %v1088_v54 }
 0x1f7   : > { %2900 = vrsqrt.f32 %v4445_v25  ;;  %v1136_v17 = vmul.f32 %v1102_v62, %v4301_v32  ;;  %v1056_v14 = vmul.f32 0.5, %v1055_v56  ;;  %v1135_v13 = vmul.f32 %v1092_v63, %v4286_v61 }
 0x1f8   : > { %v1146_v7 = vpack.c.bf16 %v1138_v52, %v1137_v12  ;;  %v1046_v22 = vmul.f32 0.5, %v1045_v5  ;;  %v1078_v38 = vmul.f32 %v4391_v48, %v1077_v1  ;;  %v1025_v49 = vmul.f32 %v4447_v36, %v1024_v51 }
 0x1f9   : > { %v920_v3 = vpop.xlane.xlu0 %919  ;;  %v922_v35 = vpop.xlane.xlu1 %921  ;;  %v1145_v50 = vpack.c.bf16 %v1136_v17, %v1135_v13  ;;  %v1057_v58 = vsub.f32 1.5, %v1056_v14  ;;  %vm1050_vm6 = vweird.f32 %v4416_v4  ;;  %vm1030_vm9 = vweird.f32 %v4447_v36 }
 0x1fa   : > { %v4454_v53 = vpop.eup %2896  ;;  %1275 = vmatpush.bf16.xpose.msra.mxu0 %v1146_v7  ;;  %2669 = vmatpush.bf16.xpose.msra.mxu2 %v1146_v7  ;;  %v4482_v18 = vmax.f32 %v922_v35, 1e-24  ;;  %v4494_v39 = vmax.f32 %v920_v3, 1e-24  ;;  %v1047_v47 = vsub.f32 1.5, %v1046_v22  ;;  %v1082_v57 = vsel %vm4476_vm11, %v4391_v48, %v1078_v38  ;;  %v916_v30 = vpop.xlane.xlu2 %915  ;;  %vm4524_vm10 = vmor %vm1049_vm5, %vm1050_vm6 }
 0x1fb   : > { %v1034_v8 = vmul.f32 %v4454_v53, %v4414_v46  ;;  %v4485_v41 = vpop.eup %2898  ;;  %v1072_v48 = vsel %vm4489_vm2, %v4382_v31, %v1068_v9  ;;  %v1026_v52 = vmul.f32 0.5, %v1025_v49  ;;  %v1134_v43 = vmul.f32 %v1082_v57, %v4304_v19  ;;  %vm4555_vm14 = vmor %vm1029_vm8, %vm1030_vm9 }
 0x1fc   : > { %v1004_v24 = vmul.f32 %v4485_v41, %v4434_v34  ;;  %2902 = vrsqrt.f32 %v4482_v18  ;;  %v1048_v56 = vmul.f32 %v4416_v4, %v1047_v47  ;;  %v1058_v5 = vmul.f32 %v4406_v16, %v1057_v58 }
 0x1fd   : > { %v1035_v28 = vmul.f32 %v4454_v53, %v1034_v8  ;;  %v4500_v12 = vpop.eup %2900  ;;  %2904 = vrsqrt.f32 %v4494_v39  ;;  %v1133_v62 = vmul.f32 %v1072_v48, %v4289_v44  ;;  %v4530_v1 = vmax.f32 %v916_v30, 1e-24 }
 0x1fe   : > { %v1014_v42 = vmul.f32 %v4500_v12, %v4445_v25  ;;  %v1005_v21 = vmul.f32 %v4485_v41, %v1004_v24  ;;  %v1027_v29 = vsub.f32 1.5, %v1026_v52  ;;  %v1052_v6 = vsel %vm4524_vm10, %v4416_v4, %v1048_v56 }
 0x1ff   : > { %v1036_v55 = vmul.f32 0.5, %v1035_v28  ;;  %v1144_v63 = vpack.c.bf16 %v1134_v43, %v1133_v62  ;;  %v1062_v14 = vsel %vm4514_vm7, %v4406_v16, %v1058_v5  ;;  %vm1039_vm12 = vweird.f32 %v4414_v46 }
 0x200   : > { %v1015_v35 = vmul.f32 %v4500_v12, %v1014_v42  ;;  %vm1040_vm13 = vweird.f32 %v4454_v53  ;;  %v1006_v8 = vmul.f32 0.5, %v1005_v21  ;;  %2906 = vrsqrt.f32 %v4530_v1 }
 0x201   : > { %v918_v7 = vpop.xlane.xlu0 %917  ;;  %v1037_v17 = vsub.f32 1.5, %v1036_v55  ;;  %v1131_v16 = vmul.f32 %v1052_v6, %v4316_v10  ;;  %v1132_v33 = vmul.f32 %v1062_v14, %v4313_v40  ;;  %v1028_v38 = vmul.f32 %v4447_v36, %v1027_v29  ;;  %vm4563_vm15 = vmor %vm1039_vm12, %vm1040_vm13 }
 0x202   : > { %1276 = vmatpush.bf16.xpose.msra.mxu0 %v1145_v50  ;;  %2670 = vmatpush.bf16.xpose.msra.mxu2 %v1145_v50  ;;  %v4532_v3 = vmax.f32 %v918_v7, 1e-24  ;;  %v4534_v51 = vpop.eup %2902  ;;  %v1016_v13 = vmul.f32 0.5, %v1015_v35  ;;  %v1007_v49 = vsub.f32 1.5, %v1006_v8  ;;  %vm1009_vm0 = vweird.f32 %v4434_v34 }
 0x203   : > { %v4543_v22 = vpop.eup %2904  ;;  %v994_v4 = vmul.f32 %v4534_v51, %v4482_v18  ;;  %v1038_v9 = vmul.f32 %v4454_v53, %v1037_v17  ;;  %v1143_v58 = vpack.c.bf16 %v1132_v33, %v1131_v16  ;;  %v1032_v24 = vsel %vm4555_vm14, %v4447_v36, %v1028_v38 }
 0x204   : > { %2908 = vrsqrt.f32 %v4532_v3  ;;  %v984_v46 = vmul.f32 %v4543_v22, %v4494_v39  ;;  %v1017_v28 = vsub.f32 1.5, %v1016_v13  ;;  %vm1010_vm1 = vweird.f32 %v4485_v41 }
 0x205   : > { %v995_v50 = vmul.f32 %v4534_v51, %v994_v4  ;;  %v1042_v48 = vsel %vm4563_vm15, %v4454_v53, %v1038_v9  ;;  %vm1019_vm11 = vweird.f32 %v4445_v25  ;;  %vm1020_vm2 = vweird.f32 %v4500_v12  ;;  %vm4585_vm3 = vmor %vm1009_vm0, %vm1010_vm1  ;;  %v2564_v53 = vld [vmem:[#allocation4 + $0x40] sm:$0xff] }
 0x206   : > { %v4568_v47 = vpop.eup %2906  ;;  %v985_v57 = vmul.f32 %v4543_v22, %v984_v46  ;;  %v1129_v36 = vmul.f32 %v1032_v24, %v4319_v11  ;;  %v1130_v54 = vmul.f32 %v1042_v48, %v4328_v59  ;;  %v1008_v42 = vmul.f32 %v4485_v41, %v1007_v49  ;;  %vm1021_vm4 = vmor %vm1019_vm11, %vm1020_vm2  ;;  %v2565_v49 = vld [vmem:[#allocation4 + $0x38] sm:$0xff]  ;;  %v2562_v48 = vld [vmem:[#allocation4 + $0x8] sm:$0xff] }
 0x207   : > { %v996_v43 = vmul.f32 0.5, %v995_v50  ;;  %v964_v30 = vmul.f32 %v4568_v47, %v4530_v1  ;;  %v1018_v25 = vmul.f32 %v4500_v12, %v1017_v28  ;;  %vm999_vm5 = vweird.f32 %v4482_v18  ;;  %v2559_v50 = vld [vmem:[#allocation4 + $0x48] sm:$0xff]  ;;  %v2568_v24 = vld [vmem:[#allocation4 + $0x18] sm:$0xff] }
 0x208   : > { %v986_v34 = vmul.f32 0.5, %v985_v57  ;;  %v1142_v5 = vpack.c.bf16 %v1130_v54, %v1129_v36  ;;  %v1012_v21 = vsel %vm4585_vm3, %v4485_v41, %v1008_v42  ;;  %vm1000_vm6 = vweird.f32 %v4534_v51  ;;  %v2560_v28 = vld [vmem:[#allocation4 + $0x68] sm:$0xff]  ;;  %v2561_v57 = vld [vmem:[#allocation4 + $0x78] sm:$0xff] }
 0x209   : > { %v997_v7 = vsub.f32 1.5, %v996_v43  ;;  %v965_v56 = vmul.f32 %v4568_v47, %v964_v30  ;;  %v1022_v29 = vsel %vm1021_vm4, %v4500_v12, %v1018_v25  ;;  %vm989_vm7 = vweird.f32 %v4494_v39  ;;  %vm4603_vm8 = vmor %vm999_vm5, %vm1000_vm6  ;;  %v2563_v43 = vld [vmem:[#allocation4 + $0x50] sm:$0xff] }
 0x20a   : > { %1277 = vmatpush.bf16.xpose.msra.mxu0 %v1144_v63  ;;  %2671 = vmatpush.bf16.xpose.msra.mxu2 %v1144_v63  ;;  %v2909_v52 = vpop.eup %2908  ;;  %v987_v31 = vsub.f32 1.5, %v986_v34  ;;  %vm990_vm10 = vweird.f32 %v4543_v22  ;;  %v1127_v63 = vmul.f32 %v1012_v21, %v4331_v37  ;;  %v1128_v17 = vmul.f32 %v1022_v29, %v4334_v45  ;;  %v2570_v30 = vld [vmem:[#allocation4 + $0x10] sm:$0xff] }
 0x20b   : > { %v974_v55 = vmul.f32 %v2909_v52, %v4532_v3  ;;  %v966_v12 = vmul.f32 0.5, %v965_v56  ;;  %v998_v6 = vmul.f32 %v4534_v51, %v997_v7  ;;  %vm991_vm9 = vmor %vm989_vm7, %vm990_vm10  ;;  %vm969_vm12 = vweird.f32 %v4530_v1  ;;  %v2571_v34 = vld [vmem:[#allocation4 + $0x30] sm:$0xff] }
 0x20c   : > { %v988_v18 = vmul.f32 %v4543_v22, %v987_v31  ;;  %v1141_v14 = vpack.c.bf16 %v1128_v17, %v1127_v63  ;;  %vm970_vm13 = vweird.f32 %v4568_v47  ;;  %vm979_vm14 = vweird.f32 %v4532_v3 }
 0x20d   : > { %v975_v62 = vmul.f32 %v2909_v52, %v974_v55  ;;  %v967_v39 = vsub.f32 1.5, %v966_v12  ;;  %v1002_v16 = vsel %vm4603_vm8, %v4534_v51, %v998_v6  ;;  %vm980_vm15 = vweird.f32 %v2909_v52  ;;  %vm971_vm0 = vmor %vm969_vm12, %vm970_vm13 }
 0x20e   : > { %v992_v4 = vsel %vm991_vm9, %v4543_v22, %v988_v18  ;;  %v1126_v15 = vmul.f32 %v1002_v16, %v4343_v2  ;;  %vm981_vm1 = vmor %vm979_vm14, %vm980_vm15  ;;  %v1724_v36 = vpack.c.bf16 %v4298_v26, %v4283_v60  ;;  %v1723_v54 = vpack.c.bf16 %v4301_v32, %v4286_v61  ;;  %v2572_v60 = vld [vmem:[#allocation4 + $0x28] sm:$0xff] }
 0x20f   : > { %v976_v41 = vmul.f32 0.5, %v975_v62  ;;  %v1125_v33 = vmul.f32 %v992_v4, %v4346_v27  ;;  %v968_v22 = vmul.f32 %v4568_v47, %v967_v39  ;;  %v1722_v55 = vpack.c.bf16 %v4304_v19, %v4289_v44  ;;  %v2573_v19 = vld [vmem:[#allocation4 + $0x58] sm:$0xff] }
 0x210   : > { %1725 = vmatpush.bf16.msra.mxu1 %v1724_v36  ;;  %2677 = vmatpush.bf16.msra.mxu3 %v1724_v36  ;;  %v1721_v42 = vpack.c.bf16 %v4313_v40, %v4316_v10  ;;  %v1720_v61 = vpack.c.bf16 %v4328_v59, %v4319_v11  ;;  %v1719_v26 = vpack.c.bf16 %v4334_v45, %v4331_v37  ;;  %vm1652_vm11 = vcmask 7168  }
 0x211   : > { %v977_v8 = vsub.f32 1.5, %v976_v41  ;;  %v1140_v46 = vpack.c.bf16 %v1126_v15, %v1125_v33  ;;  %v972_v51 = vsel %vm971_vm0, %v4568_v47, %v968_v22  ;;  %v2567_v47 = vld [vmem:[#allocation4 + $0x60] sm:$0xff]  ;;  %v1718_v44 = vpack.c.bf16 %v4343_v2, %v4346_v27 }
 0x212   : > { %1278 = vmatpush.bf16.xpose.msra.mxu0 %v1143_v58  ;;  %2672 = vmatpush.bf16.xpose.msra.mxu2 %v1143_v58  ;;  %v1123_v38 = vmul.f32 %v972_v51, %v4349_v20  ;;  %v2566_v58 = vld [vmem:[#allocation4 + $0x70] sm:$0xff]  ;;  %v1717_v32 = vpack.c.bf16 %v4358_v23, %v4349_v20 }
 0x213   : > { %v978_v13 = vmul.f32 %v2909_v52, %v977_v8 }
 0x214   : > { %1726 = vmatpush.bf16.msra.mxu1 %v1723_v54  ;;  %2678 = vmatpush.bf16.msra.mxu3 %v1723_v54 }
 0x215   : > { %v982_v1 = vsel %vm981_vm1, %v2909_v52, %v978_v13  ;;  %v2569_v52 = vld [vmem:[#allocation4 + $0x20] sm:$0xff] }
 0x216   : > { %v1124_v3 = vmul.f32 %v982_v1, %v4358_v23 }
 0x218   : > { %v1139_v9 = vpack.c.bf16 %v1124_v3, %v1123_v38  ;;  %1727 = vmatpush.bf16.msra.mxu1 %v1722_v55  ;;  %2679 = vmatpush.bf16.msra.mxu3 %v1722_v55 }
 0x21a   : > { %1279 = vmatpush.bf16.xpose.msra.mxu0 %v1142_v5  ;;  %2673 = vmatpush.bf16.xpose.msra.mxu2 %v1142_v5 }
 0x21c   : > { %1728 = vmatpush.bf16.msra.mxu1 %v1721_v42  ;;  %2680 = vmatpush.bf16.msra.mxu3 %v1721_v42 }
 0x220   : > { %1729 = vmatpush.bf16.msra.mxu1 %v1720_v61  ;;  %2681 = vmatpush.bf16.msra.mxu3 %v1720_v61 }
 0x222   : > { %1280 = vmatpush.bf16.xpose.msra.mxu0 %v1141_v14  ;;  %2674 = vmatpush.bf16.xpose.msra.mxu2 %v1141_v14 }
 0x224   : > { %1730 = vmatpush.bf16.msra.mxu1 %v1719_v26  ;;  %2682 = vmatpush.bf16.msra.mxu3 %v1719_v26 }
 0x228   : > { %1731 = vmatpush.bf16.msra.mxu1 %v1718_v44  ;;  %2683 = vmatpush.bf16.msra.mxu3 %v1718_v44 }
 0x22a   : > { %1281 = vmatpush.bf16.xpose.msra.mxu0 %v1140_v46  ;;  %2675 = vmatpush.bf16.xpose.msra.mxu2 %v1140_v46 }
 0x22c   : > { %1732 = vmatpush.bf16.msra.mxu1 %v1717_v32  ;;  %2684 = vmatpush.bf16.msra.mxu3 %v1717_v32 }
 0x232   : > { %1282 = vmatpush.bf16.xpose.msra.mxu0 %v1139_v9  ;;  %2676 = vmatpush.bf16.xpose.msra.mxu2 %v1139_v9 }
 0x239   : > { %1283 = vmatmul.bf16.vlgmr.msra.gmra.mxu0 %v2558_v0  ;;  %1318 = vmatmul.bf16.vlgmr.msra.gmra.mxu2 %v2565_v49 }
 0x249   : > { %1288 = vmatmul.bf16.gmra.mxu0 %v2559_v50  ;;  %1323 = vmatmul.bf16.gmra.mxu2 %v2566_v58 }
 0x259   : > { %1293 = vmatmul.bf16.gmra.mxu0 %v2560_v28  ;;  %1328 = vmatmul.bf16.gmra.mxu2 %v2567_v47 }
 0x269   : > { %1298 = vmatmul.bf16.gmra.mxu0 %v2561_v57  ;;  %1333 = vmatmul.bf16.gmra.mxu2 %v2568_v24 }
 0x279   : > { %1303 = vmatmul.bf16.gmra.mxu0 %v2562_v48  ;;  %1338 = vmatmul.bf16.gmra.mxu2 %v2569_v52 }
 0x289   : > { %1308 = vmatmul.bf16.gmra.mxu0 %v2563_v43  ;;  %1343 = vmatmul.bf16.gmra.mxu2 %v2570_v30 }
 0x299   : > { %1313 = vmatmul.bf16.gmra.mxu0 %v2564_v53  ;;  %1348 = vmatmul.bf16.gmra.mxu2 %v2571_v34 }
 0x2a9   : > { %1353 = vmatmul.bf16.gmra.mxu2 %v2572_v60 }
 0x2b6   : > { %v1284_v40 = vpop.f32.mrf.mxu0 }
 0x2b9   : > { %1358 = vmatmul.bf16.gmra.mxu2 %v2573_v19 }
 0x2bc   : > { %v1319_v10 = vpop.f32.mrf.mxu2 }
 0x2be   : > { %v1286_v11 = vpop.f32.mrf.mxu0 }
 0x2bf   : > { %v1364_v59 = vpack.c.bf16 %v1286_v11, %v1284_v40 }
 0x2c1   : > { %v1380_v37 = vunpack.c.l.bf16 %v1364_v59  ;;  %v1381_v45 = vunpack.c.h.bf16 %v1364_v59 }
 0x2c3   : > { %v1412_v25 = vmul.f32 1.442695, %v1380_v37  ;;  %v1414_v7 = vmul.f32 1.442695, %v1381_v45 }
 0x2c4   : > { %v1321_v56 = vpop.f32.mrf.mxu2 }
 0x2c5   : > { %2910 = vpow2.f32 %v1412_v25  ;;  %v1371_v2 = vpack.c.bf16 %v1321_v56, %v1319_v10 }
 0x2c6   : > { %2912 = vpow2.f32 %v1414_v7  ;;  %v1289_v27 = vpop.f32.mrf.mxu0 }
 0x2c7   : > { %v1394_v5 = vunpack.c.l.bf16 %v1371_v2  ;;  %v1395_v20 = vunpack.c.h.bf16 %v1371_v2 }
 0x2c9   : > { %v1440_v23 = vmul.f32 1.442695, %v1394_v5  ;;  %v1442_v31 = vmul.f32 1.442695, %v1395_v20 }
 0x2cb   : > { %v2911_v62 = vpop.eup %2910  ;;  %2914 = vpow2.f32 %v1440_v23 }
 0x2cc   : > { %v2913_v21 = vpop.eup %2912  ;;  %2916 = vpow2.f32 %v1442_v31  ;;  %v1324_v29 = vpop.f32.mrf.mxu2 }
 0x2cd   : > { %v1476_v63 = vpack.c.bf16 %v2913_v21, %v2911_v62 }
 0x2ce   : > { %v1291_v17 = vpop.f32.mrf.mxu0 }
 0x2cf   : > { %v1365_v35 = vpack.c.bf16 %v1291_v17, %v1289_v27  ;;  %1733 = vmatmul.bf16.vlgmr.msra.gmra.mxu1 %v1476_v63  ;;  %v1524_v41 = vunpack.c.l.bf16 %v1476_v63  ;;  %v1525_v12 = vunpack.c.h.bf16 %v1476_v63 }
 0x2d1   : > { %v2915_v18 = vpop.eup %2914  ;;  %v1382_v6 = vunpack.c.l.bf16 %v1365_v35  ;;  %v1383_v14 = vunpack.c.h.bf16 %v1365_v35  ;;  %1556 = vadd.xlane.f32.xlu1 %v1524_v41  ;;  %1558 = vadd.xlane.f32.xlu2 %v1525_v12 }
 0x2d2   : > { %v2917_v8 = vpop.eup %2916 }
 0x2d3   : > { %v1416_v39 = vmul.f32 1.442695, %v1382_v6  ;;  %v1418_v4 = vmul.f32 1.442695, %v1383_v14  ;;  %v4638_v16 = vpack.c.bf16 %v2917_v8, %v2915_v18 }
 0x2d4   : > { %v1326_v33 = vpop.f32.mrf.mxu2 }
 0x2d5   : > { %2918 = vpow2.f32 %v1416_v39  ;;  %v1372_v15 = vpack.c.bf16 %v1326_v33, %v1324_v29  ;;  %v1538_v22 = vunpack.c.l.bf16 %v4638_v16  ;;  %v1539_v1 = vunpack.c.h.bf16 %v4638_v16 }
 0x2d6   : > { %2920 = vpow2.f32 %v1418_v4  ;;  %v1294_v13 = vpop.f32.mrf.mxu0 }
 0x2d7   : > { %v1396_v46 = vunpack.c.l.bf16 %v1372_v15  ;;  %v1397_v51 = vunpack.c.h.bf16 %v1372_v15  ;;  %1584 = vadd.xlane.f32.xlu0 %v1538_v22 }
 0x2d9   : > { %v1444_v38 = vmul.f32 1.442695, %v1396_v46  ;;  %v1446_v3 = vmul.f32 1.442695, %v1397_v51  ;;  %1586 = vadd.xlane.f32.xlu1 %v1539_v1 }
 0x2db   : > { %v2919_v9 = vpop.eup %2918  ;;  %2922 = vpow2.f32 %v1444_v38 }
 0x2dc   : > { %v2921_v0 = vpop.eup %2920  ;;  %2924 = vpow2.f32 %v1446_v3  ;;  %v1329_v49 = vpop.f32.mrf.mxu2 }
 0x2dd   : > { %v1477_v50 = vpack.c.bf16 %v2921_v0, %v2919_v9 }
 0x2de   : > { %v1296_v58 = vpop.f32.mrf.mxu0 }
 0x2df   : > { %v1366_v28 = vpack.c.bf16 %v1296_v58, %v1294_v13  ;;  %1738 = vmatmul.bf16.gmra.mxu1 %v1477_v50  ;;  %v1526_v47 = vunpack.c.l.bf16 %v1477_v50  ;;  %v1527_v57 = vunpack.c.h.bf16 %v1477_v50 }
 0x2e1   : > { %v2923_v24 = vpop.eup %2922  ;;  %v1384_v48 = vunpack.c.l.bf16 %v1366_v28  ;;  %v1385_v52 = vunpack.c.h.bf16 %v1366_v28  ;;  %1560 = vadd.xlane.f32.xlu0 %v1526_v47  ;;  %1562 = vadd.xlane.f32.xlu1 %v1527_v57 }
 0x2e2   : > { %v2925_v43 = vpop.eup %2924 }
 0x2e3   : > { %v1420_v30 = vmul.f32 1.442695, %v1384_v48  ;;  %v1422_v36 = vmul.f32 1.442695, %v1385_v52  ;;  %v4642_v54 = vpack.c.bf16 %v2925_v43, %v2923_v24 }
 0x2e4   : > { %v1331_v53 = vpop.f32.mrf.mxu2 }
 0x2e5   : > { %2926 = vpow2.f32 %v1420_v30  ;;  %v1373_v34 = vpack.c.bf16 %v1331_v53, %v1329_v49  ;;  %v1540_v55 = vunpack.c.l.bf16 %v4642_v54  ;;  %v1541_v26 = vunpack.c.h.bf16 %v4642_v54 }
 0x2e6   : > { %2928 = vpow2.f32 %v1422_v36  ;;  %v1299_v42 = vpop.f32.mrf.mxu0 }
 0x2e7   : > { %v1398_v60 = vunpack.c.l.bf16 %v1373_v34  ;;  %v1399_v61 = vunpack.c.h.bf16 %v1373_v34  ;;  %1588 = vadd.xlane.f32.xlu2 %v1540_v55 }
 0x2e9   : > { %v1448_v44 = vmul.f32 1.442695, %v1398_v60  ;;  %v1450_v32 = vmul.f32 1.442695, %v1399_v61  ;;  %1590 = vadd.xlane.f32.xlu0 %v1541_v26 }
 0x2eb   : > { %v2927_v19 = vpop.eup %2926  ;;  %2930 = vpow2.f32 %v1448_v44 }
 0x2ec   : > { %v2929_v40 = vpop.eup %2928  ;;  %2932 = vpow2.f32 %v1450_v32  ;;  %v1334_v10 = vpop.f32.mrf.mxu2 }
 0x2ed   : > { %v1478_v11 = vpack.c.bf16 %v2929_v40, %v2927_v19 }
 0x2ee   : > { %v1301_v59 = vpop.f32.mrf.mxu0 }
 0x2ef   : > { %v1367_v37 = vpack.c.bf16 %v1301_v59, %v1299_v42  ;;  %1743 = vmatmul.bf16.gmra.mxu1 %v1478_v11  ;;  %v1528_v45 = vunpack.c.l.bf16 %v1478_v11  ;;  %v1529_v25 = vunpack.c.h.bf16 %v1478_v11 }
 0x2f1   : > { %v2931_v7 = vpop.eup %2930  ;;  %v1386_v56 = vunpack.c.l.bf16 %v1367_v37  ;;  %v1387_v2 = vunpack.c.h.bf16 %v1367_v37  ;;  %1564 = vadd.xlane.f32.xlu2 %v1528_v45  ;;  %1566 = vadd.xlane.f32.xlu0 %v1529_v25 }
 0x2f2   : > { %v2933_v27 = vpop.eup %2932 }
 0x2f3   : > { %v1424_v5 = vmul.f32 1.442695, %v1386_v56  ;;  %v1426_v20 = vmul.f32 1.442695, %v1387_v2  ;;  %v1485_v23 = vpack.c.bf16 %v2933_v27, %v2931_v7 }
 0x2f4   : > { %v1336_v31 = vpop.f32.mrf.mxu2 }
 0x2f5   : > { %2934 = vpow2.f32 %v1424_v5  ;;  %v1374_v62 = vpack.c.bf16 %v1336_v31, %v1334_v10  ;;  %1778 = vmatmul.bf16.vlgmr.msra.gmra.mxu3 %v1485_v23  ;;  %v1542_v21 = vunpack.c.l.bf16 %v1485_v23  ;;  %v1543_v35 = vunpack.c.h.bf16 %v1485_v23 }
 0x2f6   : > { %2936 = vpow2.f32 %v1426_v20  ;;  %v1304_v29 = vpop.f32.mrf.mxu0 }
 0x2f7   : > { %v1400_v63 = vunpack.c.l.bf16 %v1374_v62  ;;  %v1401_v17 = vunpack.c.h.bf16 %v1374_v62  ;;  %1592 = vadd.xlane.f32.xlu1 %v1542_v21 }
 0x2f9   : > { %v1452_v41 = vmul.f32 1.442695, %v1400_v63  ;;  %v1454_v12 = vmul.f32 1.442695, %v1401_v17  ;;  %1594 = vadd.xlane.f32.xlu2 %v1543_v35 }
 0x2fb   : > { %v2935_v18 = vpop.eup %2934  ;;  %2938 = vpow2.f32 %v1452_v41 }
 0x2fc   : > { %v2937_v6 = vpop.eup %2936  ;;  %2940 = vpow2.f32 %v1454_v12  ;;  %v1339_v14 = vpop.f32.mrf.mxu2 }
 0x2fd   : > { %v1479_v8 = vpack.c.bf16 %v2937_v6, %v2935_v18 }
 0x2fe   : > { %v1306_v39 = vpop.f32.mrf.mxu0 }
 0x2ff   : > { %v1368_v4 = vpack.c.bf16 %v1306_v39, %v1304_v29  ;;  %1748 = vmatmul.bf16.gmra.mxu1 %v1479_v8  ;;  %v1530_v33 = vunpack.c.l.bf16 %v1479_v8  ;;  %v1531_v15 = vunpack.c.h.bf16 %v1479_v8 }
 0x301   : > { %v2939_v22 = vpop.eup %2938  ;;  %v1388_v13 = vunpack.c.l.bf16 %v1368_v4  ;;  %v1389_v46 = vunpack.c.h.bf16 %v1368_v4  ;;  %1568 = vadd.xlane.f32.xlu1 %v1530_v33  ;;  %1570 = vadd.xlane.f32.xlu2 %v1531_v15 }
 0x302   : > { %v2941_v51 = vpop.eup %2940 }
 0x303   : > { %v1428_v1 = vmul.f32 1.442695, %v1388_v13  ;;  %v1430_v38 = vmul.f32 1.442695, %v1389_v46  ;;  %v1486_v3 = vpack.c.bf16 %v2941_v51, %v2939_v22 }
 0x304   : > { %v1341_v9 = vpop.f32.mrf.mxu2 }
 0x305   : > { %2942 = vpow2.f32 %v1428_v1  ;;  %v1375_v0 = vpack.c.bf16 %v1341_v9, %v1339_v14  ;;  %1783 = vmatmul.bf16.gmra.mxu3 %v1486_v3  ;;  %v1544_v49 = vunpack.c.l.bf16 %v1486_v3  ;;  %v1545_v47 = vunpack.c.h.bf16 %v1486_v3 }
 0x306   : > { %2944 = vpow2.f32 %v1430_v38  ;;  %v1309_v50 = vpop.f32.mrf.mxu0 }
 0x307   : > { %v1402_v58 = vunpack.c.l.bf16 %v1375_v0  ;;  %v1403_v28 = vunpack.c.h.bf16 %v1375_v0  ;;  %1596 = vadd.xlane.f32.xlu0 %v1544_v49 }
 0x309   : > { %v1456_v57 = vmul.f32 1.442695, %v1402_v58  ;;  %v1458_v24 = vmul.f32 1.442695, %v1403_v28  ;;  %1598 = vadd.xlane.f32.xlu1 %v1545_v47 }
 0x30b   : > { %v2943_v48 = vpop.eup %2942  ;;  %2946 = vpow2.f32 %v1456_v57 }
 0x30c   : > { %v2945_v52 = vpop.eup %2944  ;;  %2948 = vpow2.f32 %v1458_v24  ;;  %v1344_v43 = vpop.f32.mrf.mxu2 }
 0x30d   : > { %v1480_v30 = vpack.c.bf16 %v2945_v52, %v2943_v48 }
 0x30e   : > { %v1311_v36 = vpop.f32.mrf.mxu0 }
 0x30f   : > { %v1369_v53 = vpack.c.bf16 %v1311_v36, %v1309_v50  ;;  %1753 = vmatmul.bf16.gmra.mxu1 %v1480_v30  ;;  %v1532_v34 = vunpack.c.l.bf16 %v1480_v30  ;;  %v1533_v55 = vunpack.c.h.bf16 %v1480_v30 }
 0x311   : > { %v2947_v42 = vpop.eup %2946  ;;  %v1390_v60 = vunpack.c.l.bf16 %v1369_v53  ;;  %v1391_v61 = vunpack.c.h.bf16 %v1369_v53  ;;  %1572 = vadd.xlane.f32.xlu0 %v1532_v34  ;;  %1574 = vadd.xlane.f32.xlu1 %v1533_v55  ;;  %v1492_v53 = vld [vmem:[#allocation2] sm:$0xff]  ;;  %v1493_v55 = vld [vmem:[#allocation2 + $0x8] sm:$0xff] }
 0x312   : > { %v2949_v26 = vpop.eup %2948 }
 0x313   : > { %v1432_v44 = vmul.f32 1.442695, %v1390_v60  ;;  %v1434_v32 = vmul.f32 1.442695, %v1391_v61  ;;  %v1487_v19 = vpack.c.bf16 %v2949_v26, %v2947_v42 }
 0x314   : > { %v1346_v40 = vpop.f32.mrf.mxu2 }
 0x315   : > { %2950 = vpow2.f32 %v1432_v44  ;;  %v1376_v10 = vpack.c.bf16 %v1346_v40, %v1344_v43  ;;  %1788 = vmatmul.bf16.gmra.mxu3 %v1487_v19  ;;  %v1546_v11 = vunpack.c.l.bf16 %v1487_v19  ;;  %v1547_v25 = vunpack.c.h.bf16 %v1487_v19 }
 0x316   : > { %2952 = vpow2.f32 %v1434_v32  ;;  %v1314_v59 = vpop.f32.mrf.mxu0 }
 0x317   : > { %v1404_v37 = vunpack.c.l.bf16 %v1376_v10  ;;  %v1405_v45 = vunpack.c.h.bf16 %v1376_v10  ;;  %1600 = vadd.xlane.f32.xlu2 %v1546_v11 }
 0x319   : > { %v1460_v7 = vmul.f32 1.442695, %v1404_v37  ;;  %v1462_v56 = vmul.f32 1.442695, %v1405_v45  ;;  %1602 = vadd.xlane.f32.xlu0 %v1547_v25  ;;  %v1685_v25 = vld [vmem:[#allocation3 + $0xb0] sm:$0xff] }
 0x31b   : > { %v2951_v2 = vpop.eup %2950  ;;  %2954 = vpow2.f32 %v1460_v7  ;;  %v1507_v7 = vld [vmem:[#allocation2 + $0x78] sm:$0xff] }
 0x31c   : > { %v2953_v27 = vpop.eup %2952  ;;  %2956 = vpow2.f32 %v1462_v56  ;;  %v1349_v5 = vpop.f32.mrf.mxu2 }
 0x31d   : > { %v1481_v20 = vpack.c.bf16 %v2953_v27, %v2951_v2 }
 0x31e   : > { %v1316_v23 = vpop.f32.mrf.mxu0 }
 0x31f   : > { %v1370_v31 = vpack.c.bf16 %v1316_v23, %v1314_v59  ;;  %1758 = vmatmul.bf16.gmra.mxu1 %v1481_v20  ;;  %v1534_v62 = vunpack.c.l.bf16 %v1481_v20  ;;  %v1535_v21 = vunpack.c.h.bf16 %v1481_v20 }
 0x321   : > { %v2955_v29 = vpop.eup %2954  ;;  %v1392_v63 = vunpack.c.l.bf16 %v1370_v31  ;;  %v1393_v17 = vunpack.c.h.bf16 %v1370_v31  ;;  %1576 = vadd.xlane.f32.xlu2 %v1534_v62  ;;  %1578 = vadd.xlane.f32.xlu0 %v1535_v21  ;;  %v1686_v62 = vld [vmem:[#allocation3] sm:$0xff]  ;;  %v1494_v21 = vld [vmem:[#allocation2 + $0x10] sm:$0xff] }
 0x322   : > { %v2957_v35 = vpop.eup %2956 }
 0x323   : > { %v1436_v41 = vmul.f32 1.442695, %v1392_v63  ;;  %v1438_v12 = vmul.f32 1.442695, %v1393_v17  ;;  %v1488_v18 = vpack.c.bf16 %v2957_v35, %v2955_v29  ;;  %v1495_v63 = vld [vmem:[#allocation2 + $0x18] sm:$0xff] }
 0x324   : > { %v1351_v6 = vpop.f32.mrf.mxu2 }
 0x325   : > { %2958 = vpow2.f32 %v1436_v41  ;;  %v1377_v14 = vpack.c.bf16 %v1351_v6, %v1349_v5  ;;  %1793 = vmatmul.bf16.gmra.mxu3 %v1488_v18  ;;  %v1548_v8 = vunpack.c.l.bf16 %v1488_v18  ;;  %v1549_v33 = vunpack.c.h.bf16 %v1488_v18 }
 0x326   : > { %2960 = vpow2.f32 %v1438_v12 }
 0x327   : > { %v1406_v39 = vunpack.c.l.bf16 %v1377_v14  ;;  %v1407_v4 = vunpack.c.h.bf16 %v1377_v14  ;;  %1604 = vadd.xlane.f32.xlu1 %v1548_v8 }
 0x329   : > { %v1464_v15 = vmul.f32 1.442695, %v1406_v39  ;;  %v1466_v22 = vmul.f32 1.442695, %v1407_v4  ;;  %1606 = vadd.xlane.f32.xlu2 %v1549_v33  ;;  %v1687_v4 = vld [vmem:[#allocation3 + $0xd8] sm:$0xff]  ;;  %v1509_v33 = vld [vmem:[#allocation2 + $0x88] sm:$0xff] }
 0x32b   : > { %v2959_v13 = vpop.eup %2958  ;;  %2962 = vpow2.f32 %v1464_v15 }
 0x32c   : > { %v2961_v46 = vpop.eup %2960  ;;  %2964 = vpow2.f32 %v1466_v22  ;;  %v1354_v51 = vpop.f32.mrf.mxu2 }
 0x32d   : > { %v1482_v1 = vpack.c.bf16 %v2961_v46, %v2959_v13 }
 0x32f   : > { %1763 = vmatmul.bf16.gmra.mxu1 %v1482_v1  ;;  %v1536_v38 = vunpack.c.l.bf16 %v1482_v1  ;;  %v1537_v3 = vunpack.c.h.bf16 %v1482_v1  ;;  %v1688_v1 = vld [vmem:[#allocation3 + $0x18] sm:$0xff] }
 0x331   : > { %v2963_v9 = vpop.eup %2962  ;;  %1580 = vadd.xlane.f32.xlu1 %v1536_v38  ;;  %1582 = vadd.xlane.f32.xlu2 %v1537_v3  ;;  %v1496_v38 = vld [vmem:[#allocation2 + $0x20] sm:$0xff]  ;;  %v1497_v3 = vld [vmem:[#allocation2 + $0x28] sm:$0xff] }
 0x332   : > { %v2965_v0 = vpop.eup %2964 }
 0x333   : > { %v1489_v49 = vpack.c.bf16 %v2965_v0, %v2963_v9 }
 0x334   : > { %v1356_v50 = vpop.f32.mrf.mxu2 }
 0x335   : > { %v1378_v58 = vpack.c.bf16 %v1356_v50, %v1354_v51  ;;  %1798 = vmatmul.bf16.gmra.mxu3 %v1489_v49  ;;  %v1550_v28 = vunpack.c.l.bf16 %v1489_v49  ;;  %v1551_v24 = vunpack.c.h.bf16 %v1489_v49 }
 0x337   : > { %v1408_v47 = vunpack.c.l.bf16 %v1378_v58  ;;  %v1409_v57 = vunpack.c.h.bf16 %v1378_v58  ;;  %1608 = vadd.xlane.f32.xlu0 %v1550_v28 }
 0x339   : > { %v1468_v48 = vmul.f32 1.442695, %v1408_v47  ;;  %v1470_v52 = vmul.f32 1.442695, %v1409_v57  ;;  %1610 = vadd.xlane.f32.xlu1 %v1551_v24  ;;  %v1510_v47 = vld [vmem:[#allocation2 + $0x90] sm:$0xff] }
 0x33a   : > { %v1689_v24 = vld [vmem:[#allocation3 + $0x50] sm:$0xff] }
 0x33b   : > { %2966 = vpow2.f32 %v1468_v48  ;;  %v1511_v48 = vld [vmem:[#allocation2 + $0x98] sm:$0xff] }
 0x33c   : > { %2968 = vpow2.f32 %v1470_v52  ;;  %v1359_v43 = vpop.f32.mrf.mxu2 }
 0x33f   : > { %1768 = vmatmul.bf16.gmra.mxu1 %v4638_v16  ;;  %v1506_v16 = vld [vmem:[#allocation2 + $0x70] sm:$0xff] }
 0x341   : > { %v2967_v30 = vpop.eup %2966 }
 0x342   : > { %v2969_v36 = vpop.eup %2968 }
 0x343   : > { %v1490_v34 = vpack.c.bf16 %v2969_v36, %v2967_v30 }
 0x344   : > { %v1557_v42 = vpop.xlane.xlu1 %1556  ;;  %v1361_v60 = vpop.f32.mrf.mxu2 }
 0x345   : > { %v1620_v61 = vadd.f32 %v1557_v42, %v1492_v53  ;;  %v1379_v26 = vpack.c.bf16 %v1361_v60, %v1359_v43  ;;  %1803 = vmatmul.bf16.gmra.mxu3 %v1490_v34  ;;  %v1553_v44 = vunpack.c.h.bf16 %v1490_v34  ;;  %v1552_v32 = vunpack.c.l.bf16 %v1490_v34  ;;  %v1559_v19 = vpop.xlane.xlu2 %1558  ;;  %v1690_v34 = vld [vmem:[#allocation3 + $0x68] sm:$0xff]  ;;  %v1499_v42 = vld [vmem:[#allocation2 + $0x38] sm:$0xff] }
 0x346   : > { %v1621_v40 = vadd.f32 %v1559_v19, %v1493_v55  ;;  %v1498_v55 = vld [vmem:[#allocation2 + $0x30] sm:$0xff]  ;;  %v1703_v19 = vld [vmem:[#allocation3 + $0x40] sm:$0xff] }
 0x347   : > { %1653 = vst.msk [vmem:[#allocation2] sm:$0xff] %vm1652_vm11, %v1620_v61  ;;  %v1410_v10 = vunpack.c.l.bf16 %v1379_v26  ;;  %v1411_v11 = vunpack.c.h.bf16 %v1379_v26  ;;  %1614 = vadd.xlane.f32.xlu0 %v1553_v44  ;;  %1612 = vadd.xlane.f32.xlu2 %v1552_v32 }
 0x348   : > { %1654 = vst.msk [vmem:[#allocation2 + $0x8] sm:$0xff] %vm1652_vm11, %v1621_v40 }
 0x349   : > { %v1472_v59 = vmul.f32 1.442695, %v1410_v10  ;;  %v1474_v37 = vmul.f32 1.442695, %v1411_v11  ;;  %v1512_v11 = vld [vmem:[#allocation2 + $0xa0] sm:$0xff] }
 0x34a   : > { %v1585_v45 = vpop.xlane.xlu0 %1584 }
 0x34b   : > { %2970 = vpow2.f32 %v1472_v59  ;;  %v1634_v56 = vadd.f32 %v1585_v45, %v1506_v16  ;;  %v1513_v45 = vld [vmem:[#allocation2 + $0xa8] sm:$0xff] }
 0x34c   : > { %2972 = vpow2.f32 %v1474_v37  ;;  %v1734_v2 = vpop.f32.mrf.mxu1  ;;  %v1587_v27 = vpop.xlane.xlu1 %1586  ;;  %v1691_v37 = vld [vmem:[#allocation3 + $0x30] sm:$0xff] }
 0x34d   : > { %1667 = vst.msk [vmem:[#allocation2 + $0x70] sm:$0xff] %vm1652_vm11, %v1634_v56  ;;  %v1814_v5 = vadd.f32 %v1734_v2, %v1685_v25  ;;  %v1635_v20 = vadd.f32 %v1587_v27, %v1507_v7 }
 0x34f   : > { %1846 = vst [vmem:[#allocation3 + $0xb0] sm:$0xff] %v1814_v5  ;;  %1773 = vmatmul.bf16.gmra.mxu1 %v4642_v54  ;;  %v1508_v54 = vld [vmem:[#allocation2 + $0x80] sm:$0xff]  ;;  %v1704_v5 = vld [vmem:[#allocation3 + $0xc8] sm:$0xff] }
 0x350   : > { %1668 = vst.msk [vmem:[#allocation2 + $0x78] sm:$0xff] %vm1652_vm11, %v1635_v20 }
 0x351   : > { %v2971_v23 = vpop.eup %2970 }
 0x352   : > { %v2973_v31 = vpop.eup %2972 }
 0x353   : > { %v1491_v29 = vpack.c.bf16 %v2973_v31, %v2971_v23  ;;  %v1692_v31 = vld [vmem:[#allocation3 + $0x48] sm:$0xff] }
 0x354   : > { %v1736_v17 = vpop.f32.mrf.mxu1  ;;  %v1561_v35 = vpop.xlane.xlu0 %1560 }
 0x355   : > { %v1815_v41 = vadd.f32 %v1736_v17, %v1686_v62  ;;  %v1622_v12 = vadd.f32 %v1561_v35, %v1494_v21  ;;  %1808 = vmatmul.bf16.gmra.mxu3 %v1491_v29  ;;  %v1555_v18 = vunpack.c.h.bf16 %v1491_v29  ;;  %v1554_v6 = vunpack.c.l.bf16 %v1491_v29  ;;  %v1563_v14 = vpop.xlane.xlu1 %1562  ;;  %v1500_v62 = vld [vmem:[#allocation2 + $0x40] sm:$0xff]  ;;  %v1501_v21 = vld [vmem:[#allocation2 + $0x48] sm:$0xff] }
 0x356   : > { %v1623_v8 = vadd.f32 %v1563_v14, %v1495_v63  ;;  %v1514_v14 = vld [vmem:[#allocation2 + $0xb0] sm:$0xff] }
 0x357   : > { %1847 = vst [vmem:[#allocation3] sm:$0xff] %v1815_v41  ;;  %1618 = vadd.xlane.f32.xlu2 %v1555_v18  ;;  %1616 = vadd.xlane.f32.xlu1 %v1554_v6 }
 0x358   : > { %1655 = vst.msk [vmem:[#allocation2 + $0x10] sm:$0xff] %vm1652_vm11, %v1622_v12  ;;  %v1705_v12 = vld [vmem:[#allocation3 + $0xe0] sm:$0xff] }
 0x359   : > { %1656 = vst.msk [vmem:[#allocation2 + $0x18] sm:$0xff] %vm1652_vm11, %v1623_v8 }
 0x35a   : > { %v1589_v39 = vpop.xlane.xlu2 %1588 }
 0x35b   : > { %v1636_v15 = vadd.f32 %v1589_v39, %v1508_v54  ;;  %v1693_v39 = vld [vmem:[#allocation3 + $0x80] sm:$0xff] }
 0x35c   : > { %v1739_v22 = vpop.f32.mrf.mxu1  ;;  %v1591_v13 = vpop.xlane.xlu0 %1590 }
 0x35d   : > { %1669 = vst.msk [vmem:[#allocation2 + $0x80] sm:$0xff] %vm1652_vm11, %v1636_v15  ;;  %v1816_v46 = vadd.f32 %v1739_v22, %v1687_v4  ;;  %v1637_v51 = vadd.f32 %v1591_v13, %v1509_v33  ;;  %v1515_v4 = vld [vmem:[#allocation2 + $0xb8] sm:$0xff] }
 0x35f   : > { %1848 = vst [vmem:[#allocation3 + $0xd8] sm:$0xff] %v1816_v46 }
 0x360   : > { %1670 = vst.msk [vmem:[#allocation2 + $0x88] sm:$0xff] %vm1652_vm11, %v1637_v51  ;;  %v1706_v51 = vld [vmem:[#allocation3 + $0x90] sm:$0xff] }
 0x364   : > { %v1741_v9 = vpop.f32.mrf.mxu1  ;;  %v1565_v0 = vpop.xlane.xlu2 %1564 }
 0x365   : > { %v1817_v49 = vadd.f32 %v1741_v9, %v1688_v1  ;;  %v1624_v50 = vadd.f32 %v1565_v0, %v1496_v38  ;;  %v1567_v58 = vpop.xlane.xlu0 %1566  ;;  %v1502_v9 = vld [vmem:[#allocation2 + $0x50] sm:$0xff]  ;;  %v1503_v0 = vld [vmem:[#allocation2 + $0x58] sm:$0xff] }
 0x366   : > { %v1625_v28 = vadd.f32 %v1567_v58, %v1497_v3  ;;  %v1694_v3 = vld [vmem:[#allocation3 + $0x88] sm:$0xff] }
 0x367   : > { %1849 = vst [vmem:[#allocation3 + $0x18] sm:$0xff] %v1817_v49 }
 0x368   : > { %1657 = vst.msk [vmem:[#allocation2 + $0x20] sm:$0xff] %vm1652_vm11, %v1624_v50 }
 0x369   : > { %1658 = vst.msk [vmem:[#allocation2 + $0x28] sm:$0xff] %vm1652_vm11, %v1625_v28 }
 0x36a   : > { %v1593_v57 = vpop.xlane.xlu1 %1592 }
 0x36b   : > { %v1638_v52 = vadd.f32 %v1593_v57, %v1510_v47  ;;  %v1707_v57 = vld [vmem:[#allocation3 + $0x70] sm:$0xff] }
 0x36c   : > { %v1744_v43 = vpop.f32.mrf.mxu1  ;;  %v1595_v30 = vpop.xlane.xlu2 %1594 }
 0x36d   : > { %1671 = vst.msk [vmem:[#allocation2 + $0x90] sm:$0xff] %vm1652_vm11, %v1638_v52  ;;  %v1818_v36 = vadd.f32 %v1744_v43, %v1689_v24  ;;  %v1639_v53 = vadd.f32 %v1595_v30, %v1511_v48  ;;  %v1516_v52 = vld [vmem:[#allocation2 + $0xc0] sm:$0xff] }
 0x36f   : > { %1850 = vst [vmem:[#allocation3 + $0x50] sm:$0xff] %v1818_v36  ;;  %v1695_v36 = vld [vmem:[#allocation3 + $0xe8] sm:$0xff] }
 0x370   : > { %1672 = vst.msk [vmem:[#allocation2 + $0x98] sm:$0xff] %vm1652_vm11, %v1639_v53  ;;  %v1517_v53 = vld [vmem:[#allocation2 + $0xc8] sm:$0xff] }
 0x374   : > { %v1746_v60 = vpop.f32.mrf.mxu1  ;;  %v1569_v61 = vpop.xlane.xlu1 %1568 }
 0x375   : > { %v1819_v26 = vadd.f32 %v1746_v60, %v1690_v34  ;;  %v1626_v44 = vadd.f32 %v1569_v61, %v1498_v55  ;;  %v1571_v32 = vpop.xlane.xlu2 %1570 }
 0x376   : > { %v1627_v40 = vadd.f32 %v1571_v32, %v1499_v42 }
 0x377   : > { %1851 = vst [vmem:[#allocation3 + $0x68] sm:$0xff] %v1819_v26  ;;  %v1708_v26 = vld [vmem:[#allocation3 + $0xc0] sm:$0xff] }
 0x378   : > { %1659 = vst.msk [vmem:[#allocation2 + $0x30] sm:$0xff] %vm1652_vm11, %v1626_v44  ;;  %v1779_v10 = vpop.f32.mrf.mxu3 }
 0x379   : > { %v1832_v16 = vadd.f32 %v1779_v10, %v1703_v19  ;;  %1660 = vst.msk [vmem:[#allocation2 + $0x38] sm:$0xff] %vm1652_vm11, %v1627_v40  ;;  %v1696_v19 = vld [vmem:[#allocation3 + $0xb8] sm:$0xff]  ;;  %v1504_v40 = vld [vmem:[#allocation2 + $0x60] sm:$0xff]  ;;  %v1505_v10 = vld [vmem:[#allocation2 + $0x68] sm:$0xff] }
 0x37a   : > { %v1597_v59 = vpop.xlane.xlu0 %1596 }
 0x37b   : > { %1864 = vst [vmem:[#allocation3 + $0x40] sm:$0xff] %v1832_v16  ;;  %v1640_v25 = vadd.f32 %v1597_v59, %v1512_v11 }
 0x37c   : > { %v1749_v7 = vpop.f32.mrf.mxu1  ;;  %v1599_v56 = vpop.xlane.xlu1 %1598 }
 0x37d   : > { %1673 = vst.msk [vmem:[#allocation2 + $0xa0] sm:$0xff] %vm1652_vm11, %v1640_v25  ;;  %v1820_v2 = vadd.f32 %v1749_v7, %v1691_v37  ;;  %v1641_v27 = vadd.f32 %v1599_v56, %v1513_v45  ;;  %v1709_v25 = vld [vmem:[#allocation3 + $0xa8] sm:$0xff] }
 0x37f   : > { %1852 = vst [vmem:[#allocation3 + $0x30] sm:$0xff] %v1820_v2  ;;  %v1518_v2 = vld [vmem:[#allocation2 + $0xd0] sm:$0xff] }
 0x380   : > { %1674 = vst.msk [vmem:[#allocation2 + $0xa8] sm:$0xff] %vm1652_vm11, %v1641_v27  ;;  %v1781_v20 = vpop.f32.mrf.mxu3 }
 0x381   : > { %v1833_v23 = vadd.f32 %v1781_v20, %v1704_v5  ;;  %v1697_v20 = vld [vmem:[#allocation3 + $0x60] sm:$0xff] }
 0x383   : > { %1865 = vst [vmem:[#allocation3 + $0xc8] sm:$0xff] %v1833_v23  ;;  %v1519_v23 = vld [vmem:[#allocation2 + $0xd8] sm:$0xff] }
 0x384   : > { %v1751_v29 = vpop.f32.mrf.mxu1  ;;  %v1573_v63 = vpop.xlane.xlu0 %1572 }
 0x385   : > { %v1821_v17 = vadd.f32 %v1751_v29, %v1692_v31  ;;  %v1628_v35 = vadd.f32 %v1573_v63, %v1500_v62  ;;  %v1575_v41 = vpop.xlane.xlu1 %1574 }
 0x386   : > { %v1629_v18 = vadd.f32 %v1575_v41, %v1501_v21 }
 0x387   : > { %1853 = vst [vmem:[#allocation3 + $0x48] sm:$0xff] %v1821_v17  ;;  %v1710_v17 = vld [vmem:[#allocation3 + $0xd0] sm:$0xff] }
 0x388   : > { %1661 = vst.msk [vmem:[#allocation2 + $0x40] sm:$0xff] %vm1652_vm11, %v1628_v35  ;;  %v1784_v6 = vpop.f32.mrf.mxu3 }
 0x389   : > { %v1834_v8 = vadd.f32 %v1784_v6, %v1705_v12  ;;  %1662 = vst.msk [vmem:[#allocation2 + $0x48] sm:$0xff] %vm1652_vm11, %v1629_v18  ;;  %v1698_v12 = vld [vmem:[#allocation3 + $0xf0] sm:$0xff] }
 0x38a   : > { %v1601_v54 = vpop.xlane.xlu2 %1600 }
 0x38b   : > { %1866 = vst [vmem:[#allocation3 + $0xe0] sm:$0xff] %v1834_v8  ;;  %v1642_v33 = vadd.f32 %v1601_v54, %v1514_v14  ;;  %v1711_v14 = vld [vmem:[#allocation3 + $0x10] sm:$0xff]  ;;  %v1521_v54 = vld [vmem:[#allocation2 + $0xe8] sm:$0xff] }
 0x38c   : > { %v1754_v15 = vpop.f32.mrf.mxu1  ;;  %v1603_v22 = vpop.xlane.xlu0 %1602 }
 0x38d   : > { %1675 = vst.msk [vmem:[#allocation2 + $0xb0] sm:$0xff] %vm1652_vm11, %v1642_v33  ;;  %v1822_v13 = vadd.f32 %v1754_v15, %v1693_v39  ;;  %v1643_v46 = vadd.f32 %v1603_v22, %v1515_v4  ;;  %v1520_v39 = vld [vmem:[#allocation2 + $0xe0] sm:$0xff]  ;;  %v1699_v22 = vld [vmem:[#allocation3 + $0x8] sm:$0xff] }
 0x38f   : > { %1854 = vst [vmem:[#allocation3 + $0x80] sm:$0xff] %v1822_v13 }
 0x390   : > { %1676 = vst.msk [vmem:[#allocation2 + $0xb8] sm:$0xff] %vm1652_vm11, %v1643_v46  ;;  %v1786_v1 = vpop.f32.mrf.mxu3 }
 0x391   : > { %v1835_v38 = vadd.f32 %v1786_v1, %v1706_v51 }
 0x393   : > { %1867 = vst [vmem:[#allocation3 + $0x90] sm:$0xff] %v1835_v38  ;;  %v1712_v38 = vld [vmem:[#allocation3 + $0x28] sm:$0xff] }
 0x394   : > { %v1756_v49 = vpop.f32.mrf.mxu1  ;;  %v1577_v50 = vpop.xlane.xlu2 %1576 }
 0x395   : > { %v1823_v58 = vadd.f32 %v1756_v49, %v1694_v3  ;;  %v1630_v28 = vadd.f32 %v1577_v50, %v1502_v9  ;;  %v1579_v47 = vpop.xlane.xlu0 %1578 }
 0x396   : > { %v1631_v24 = vadd.f32 %v1579_v47, %v1503_v0  ;;  %v1700_v0 = vld [vmem:[#allocation3 + $0x78] sm:$0xff] }
 0x397   : > { %1855 = vst [vmem:[#allocation3 + $0x88] sm:$0xff] %v1823_v58  ;;  %v1713_v58 = vld [vmem:[#allocation3 + $0xa0] sm:$0xff]  ;;  %v1523_v47 = vld [vmem:[#allocation2 + $0xf8] sm:$0xff] }
 0x398   : > { %1663 = vst.msk [vmem:[#allocation2 + $0x50] sm:$0xff] %vm1652_vm11, %v1630_v28  ;;  %v1789_v48 = vpop.f32.mrf.mxu3 }
 0x399   : > { %v1836_v43 = vadd.f32 %v1789_v48, %v1707_v57  ;;  %1664 = vst.msk [vmem:[#allocation2 + $0x58] sm:$0xff] %vm1652_vm11, %v1631_v24  ;;  %v1522_v57 = vld [vmem:[#allocation2 + $0xf0] sm:$0xff] }
 0x39a   : > { %v1605_v30 = vpop.xlane.xlu1 %1604 }
 0x39b   : > { %1868 = vst [vmem:[#allocation3 + $0x70] sm:$0xff] %v1836_v43  ;;  %v1644_v34 = vadd.f32 %v1605_v30, %v1516_v52  ;;  %v1701_v43 = vld [vmem:[#allocation3 + $0x38] sm:$0xff] }
 0x39c   : > { %v1759_v55 = vpop.f32.mrf.mxu1  ;;  %v1607_v42 = vpop.xlane.xlu2 %1606 }
 0x39d   : > { %1677 = vst.msk [vmem:[#allocation2 + $0xc0] sm:$0xff] %vm1652_vm11, %v1644_v34  ;;  %v1824_v60 = vadd.f32 %v1759_v55, %v1695_v36  ;;  %v1645_v61 = vadd.f32 %v1607_v42, %v1517_v53  ;;  %v1714_v55 = vld [vmem:[#allocation3 + $0xf8] sm:$0xff] }
 0x39f   : > { %1856 = vst [vmem:[#allocation3 + $0xe8] sm:$0xff] %v1824_v60 }
 0x3a0   : > { %1678 = vst.msk [vmem:[#allocation2 + $0xc8] sm:$0xff] %vm1652_vm11, %v1645_v61  ;;  %v1791_v44 = vpop.f32.mrf.mxu3  ;;  %v1702_v61 = vld [vmem:[#allocation3 + $0x58] sm:$0xff] }
 0x3a1   : > { %v1837_v32 = vadd.f32 %v1791_v44, %v1708_v26 }
 0x3a3   : > { %1869 = vst [vmem:[#allocation3 + $0xc0] sm:$0xff] %v1837_v32  ;;  %v1715_v32 = vld [vmem:[#allocation3 + $0x20] sm:$0xff] }
 0x3a4   : > { %v1761_v11 = vpop.f32.mrf.mxu1  ;;  %v1581_v16 = vpop.xlane.xlu1 %1580 }
 0x3a5   : > { %v1825_v59 = vadd.f32 %v1761_v11, %v1696_v19  ;;  %v1632_v37 = vadd.f32 %v1581_v16, %v1504_v40  ;;  %v1583_v45 = vpop.xlane.xlu2 %1582 }
 0x3a6   : > { %v1633_v7 = vadd.f32 %v1583_v45, %v1505_v10  ;;  %v1716_v10 = vld [vmem:[#allocation3 + $0x98] sm:$0xff] }
 0x3a7   : > { %1857 = vst [vmem:[#allocation3 + $0xb8] sm:$0xff] %v1825_v59 }
 0x3a8   : > { %1665 = vst.msk [vmem:[#allocation2 + $0x60] sm:$0xff] %vm1652_vm11, %v1632_v37  ;;  %v1794_v56 = vpop.f32.mrf.mxu3 }
 0x3a9   : > { %v1838_v27 = vadd.f32 %v1794_v56, %v1709_v25  ;;  %1666 = vst.msk [vmem:[#allocation2 + $0x68] sm:$0xff] %vm1652_vm11, %v1633_v7 }
 0x3aa   : > { %v1609_v5 = vpop.xlane.xlu0 %1608 }
 0x3ab   : > { %1870 = vst [vmem:[#allocation3 + $0xa8] sm:$0xff] %v1838_v27  ;;  %v1646_v31 = vadd.f32 %v1609_v5, %v1518_v2 }
 0x3ac   : > { %v1764_v62 = vpop.f32.mrf.mxu1  ;;  %v1611_v21 = vpop.xlane.xlu1 %1610 }
 0x3ad   : > { %1679 = vst.msk [vmem:[#allocation2 + $0xd0] sm:$0xff] %vm1652_vm11, %v1646_v31  ;;  %v1826_v29 = vadd.f32 %v1764_v62, %v1697_v20  ;;  %v1647_v63 = vadd.f32 %v1611_v21, %v1519_v23 }
 0x3af   : > { %1858 = vst [vmem:[#allocation3 + $0x60] sm:$0xff] %v1826_v29 }
 0x3b0   : > { %1680 = vst.msk [vmem:[#allocation2 + $0xd8] sm:$0xff] %vm1652_vm11, %v1647_v63  ;;  %v1796_v35 = vpop.f32.mrf.mxu3 }
 0x3b1   : > { %v1839_v41 = vadd.f32 %v1796_v35, %v1710_v17 }
 0x3b3   : > { %1871 = vst [vmem:[#allocation3 + $0xd0] sm:$0xff] %v1839_v41 }
 0x3b4   : > { %v1766_v18 = vpop.f32.mrf.mxu1 }
 0x3b5   : > { %v1827_v6 = vadd.f32 %v1766_v18, %v1698_v12 }
 0x3b7   : > { %1859 = vst [vmem:[#allocation3 + $0xf0] sm:$0xff] %v1827_v6 }
 0x3b8   : > { %v1799_v8 = vpop.f32.mrf.mxu3 }
 0x3b9   : > { %v1840_v4 = vadd.f32 %v1799_v8, %v1711_v14 }
 0x3ba   : > { %v1615_v33 = vpop.xlane.xlu0 %1614  ;;  %v1613_v15 = vpop.xlane.xlu2 %1612 }
 0x3bb   : > { %1872 = vst [vmem:[#allocation3 + $0x10] sm:$0xff] %v1840_v4  ;;  %v1649_v13 = vadd.f32 %v1615_v33, %v1521_v54  ;;  %v1648_v46 = vadd.f32 %v1613_v15, %v1520_v39 }
 0x3bc   : > { %v1769_v51 = vpop.f32.mrf.mxu1 }
 0x3bd   : > { %1682 = vst.msk [vmem:[#allocation2 + $0xe8] sm:$0xff] %vm1652_vm11, %v1649_v13  ;;  %v1828_v1 = vadd.f32 %v1769_v51, %v1699_v22 }
 0x3be   : > { %1681 = vst.msk [vmem:[#allocation2 + $0xe0] sm:$0xff] %vm1652_vm11, %v1648_v46 }
 0x3bf   : > { %1860 = vst [vmem:[#allocation3 + $0x8] sm:$0xff] %v1828_v1 }
 0x3c0   : > { %v1801_v3 = vpop.f32.mrf.mxu3 }
 0x3c1   : > { %v1841_v9 = vadd.f32 %v1801_v3, %v1712_v38 }
 0x3c3   : > { %1873 = vst [vmem:[#allocation3 + $0x28] sm:$0xff] %v1841_v9 }
 0x3c4   : > { %v1771_v49 = vpop.f32.mrf.mxu1 }
 0x3c5   : > { %v1829_v50 = vadd.f32 %v1771_v49, %v1700_v0 }
 0x3c7   : > { %1861 = vst [vmem:[#allocation3 + $0x78] sm:$0xff] %v1829_v50 }
 0x3c8   : > { %v1804_v28 = vpop.f32.mrf.mxu3 }
 0x3c9   : > { %v1842_v24 = vadd.f32 %v1804_v28, %v1713_v58 }
 0x3ca   : > { %v1619_v48 = vpop.xlane.xlu2 %1618  ;;  %v1617_v52 = vpop.xlane.xlu1 %1616 }
 0x3cb   : > { %1874 = vst [vmem:[#allocation3 + $0xa0] sm:$0xff] %v1842_v24  ;;  %v1651_v30 = vadd.f32 %v1619_v48, %v1523_v47  ;;  %v1650_v36 = vadd.f32 %v1617_v52, %v1522_v57 }
 0x3cc   : > { %v1774_v53 = vpop.f32.mrf.mxu1 }
 0x3cd   : > { %1684 = vst.msk [vmem:[#allocation2 + $0xf8] sm:$0xff] %vm1652_vm11, %v1651_v30  ;;  %v1830_v34 = vadd.f32 %v1774_v53, %v1701_v43 }
 0x3ce   : > { %1683 = vst.msk [vmem:[#allocation2 + $0xf0] sm:$0xff] %vm1652_vm11, %v1650_v36 }
 0x3cf   : > { %1862 = vst [vmem:[#allocation3 + $0x38] sm:$0xff] %v1830_v34 }
 0x3d0   : > { %v1806_v42 = vpop.f32.mrf.mxu3 }
 0x3d1   : > { %v1843_v60 = vadd.f32 %v1806_v42, %v1714_v55 }
 0x3d3   : > { %1875 = vst [vmem:[#allocation3 + $0xf8] sm:$0xff] %v1843_v60 }
 0x3d4   : > { %v1776_v26 = vpop.f32.mrf.mxu1 }
 0x3d5   : > { %v1831_v44 = vadd.f32 %v1776_v26, %v1702_v61 }
 0x3d7   : > { %1863 = vst [vmem:[#allocation3 + $0x58] sm:$0xff] %v1831_v44 }
 0x3d8   : > { %v1809_v19 = vpop.f32.mrf.mxu3 }
 0x3d9   : > { %v1844_v40 = vadd.f32 %v1809_v19, %v1715_v32 }
 0x3db   : > { %1876 = vst [vmem:[#allocation3 + $0x20] sm:$0xff] %v1844_v40 }
 0x3df   : > { %1881 = sbr.rel (%p2551_p7) target bundleno = 1208 (0x4b8), region = 44 }
 0x3e0   : > { %v1811_v11 = vpop.f32.mrf.mxu3 }
 0x3e1   : > { %v1845_v16 = vadd.f32 %v1811_v11, %v1716_v10 }
 0x3e3   : > { %1877 = vst [vmem:[#allocation3 + $0x98] sm:$0xff] %v1845_v16 }
 0x3e4   : > { %v1918_v59 = vld [vmem:[#allocation2 + $0x20] sm:$0xff]  ;;  %v1916_v37 = vld [vmem:[#allocation2 + $0x10] sm:$0xff]  ;;  %v3248_v25 = vmov 0   ;;  %v1919_v7 = vld [vmem:[#allocation2 + $0x28] sm:$0xff] }
 0x3e5   : > { %v1914_v45 = vld [vmem:[#allocation2] sm:$0xff]  ;;  %2976 = vset.pattern.permute.xlu2 %v3248_v25  ;;  %2975 = vset.pattern.permute.xlu1 %v3248_v25  ;;  %2977 = vrcp.f32 %v1918_v59  ;;  %v1917_v56 = vld [vmem:[#allocation2 + $0x18] sm:$0xff]  ;;  %v1915_v2 = vld [vmem:[#allocation2 + $0x8] sm:$0xff] }
 0x3e6   : > { %2974 = vset.pattern.permute.xlu0 %v3248_v25  ;;  %2979 = vrcp.f32 %v1916_v37  ;;  %v1922_v23 = vld [vmem:[#allocation2 + $0x40] sm:$0xff]  ;;  %v1921_v62 = vld [vmem:[#allocation2 + $0x38] sm:$0xff]  ;;  %v1920_v29 = vld [vmem:[#allocation2 + $0x30] sm:$0xff] }
 0x3e7   : > { %2981 = vrcp.f32 %v1914_v45  ;;  %v1925_v17 = vld [vmem:[#allocation2 + $0x58] sm:$0xff]  ;;  %v1924_v41 = vld [vmem:[#allocation2 + $0x50] sm:$0xff]  ;;  %v1923_v18 = vld [vmem:[#allocation2 + $0x48] sm:$0xff] }
 0x3e8   : > { %2983 = vrcp.f32 %v1919_v7  ;;  %v1928_v14 = vld [vmem:[#allocation2 + $0x70] sm:$0xff]  ;;  %v1927_v54 = vld [vmem:[#allocation2 + $0x68] sm:$0xff]  ;;  %v1926_v4 = vld [vmem:[#allocation2 + $0x60] sm:$0xff] }
 0x3e9   : > { %2985 = vrcp.f32 %v1917_v56  ;;  %v1931_v15 = vld [vmem:[#allocation2 + $0x88] sm:$0xff]  ;;  %v1930_v13 = vld [vmem:[#allocation2 + $0x80] sm:$0xff]  ;;  %v1929_v51 = vld [vmem:[#allocation2 + $0x78] sm:$0xff] }
 0x3ea   : > { %2987 = vrcp.f32 %v1915_v2  ;;  %v1934_v38 = vld [vmem:[#allocation2 + $0xa0] sm:$0xff]  ;;  %v1933_v9 = vld [vmem:[#allocation2 + $0x98] sm:$0xff]  ;;  %v1932_v49 = vld [vmem:[#allocation2 + $0x90] sm:$0xff] }
 0x3eb   : > { %v2978_v27 = vpop.eup %2977  ;;  %2989 = vrcp.f32 %v1922_v23  ;;  %v1937_v58 = vld [vmem:[#allocation2 + $0xb8] sm:$0xff]  ;;  %v1936_v47 = vld [vmem:[#allocation2 + $0xb0] sm:$0xff]  ;;  %v1935_v24 = vld [vmem:[#allocation2 + $0xa8] sm:$0xff] }
 0x3ec   : > { %v2980_v5 = vpop.eup %2979  ;;  %2064 = vperm.xlu2 %2976, %v2978_v27   ;;  %2991 = vrcp.f32 %v1921_v62  ;;  %v1940_v52 = vld [vmem:[#allocation2 + $0xd0] sm:$0xff]  ;;  %v1939_v30 = vld [vmem:[#allocation2 + $0xc8] sm:$0xff]  ;;  %v1938_v53 = vld [vmem:[#allocation2 + $0xc0] sm:$0xff] }
 0x3ed   : > { %v2982_v20 = vpop.eup %2981  ;;  %2054 = vperm.xlu1 %2975, %v2980_v5   ;;  %2993 = vrcp.f32 %v1920_v29  ;;  %v1943_v55 = vld [vmem:[#allocation2 + $0xe8] sm:$0xff]  ;;  %v1942_v60 = vld [vmem:[#allocation2 + $0xe0] sm:$0xff]  ;;  %v1941_v26 = vld [vmem:[#allocation2 + $0xd8] sm:$0xff] }
 0x3ee   : > { %2044 = vperm.xlu0 %2974, %v2982_v20   ;;  %v2984_v31 = vpop.eup %2983  ;;  %2995 = vrcp.f32 %v1925_v17  ;;  %v1945_v19 = vld [vmem:[#allocation2 + $0xf8] sm:$0xff]  ;;  %v1944_v10 = vld [vmem:[#allocation2 + $0xf0] sm:$0xff]  ;;  %v1886_v45 = vld [vmem:[%s3454_s19 + $0x20] sm:$0xff] }
 0x3ef   : > { %v2986_v21 = vpop.eup %2985  ;;  %2997 = vrcp.f32 %v1924_v41  ;;  %v2014_v37 = vld [vmem:[#allocation3 + $0x50] sm:$0xff]  ;;  %v1982_v7 = vmul.f32 1.1, %v1886_v45  ;;  %v2015_v5 = vld [vmem:[#allocation3 + $0x68] sm:$0xff]  ;;  %v1890_v17 = vld [vmem:[%s3454_s19 + $0x40] sm:$0xff] }
 0x3f0   : > { %v2988_v63 = vpop.eup %2987  ;;  %2999 = vrcp.f32 %v1923_v18  ;;  %v1887_v20 = vld [vmem:[%s3454_s19 + $0x28] sm:$0xff]  ;;  %v1986_v41 = vmul.f32 1.1, %v1890_v17 }
 0x3f1   : > { %v2990_v35 = vpop.eup %2989  ;;  %3001 = vrcp.f32 %v1928_v14  ;;  %v2021_v14 = vld [vmem:[#allocation3 + $0xb8] sm:$0xff]  ;;  %v2017_v45 = vld [vmem:[#allocation3 + $0x48] sm:$0xff] }
 0x3f2   : > { %v2992_v12 = vpop.eup %2991  ;;  %3003 = vrcp.f32 %v1927_v54  ;;  %v2012_v54 = vld [vmem:[#allocation3 + $0xd8] sm:$0xff] }
 0x3f3   : > { %v2994_v6 = vpop.eup %2993  ;;  %3005 = vrcp.f32 %v1926_v4 }
 0x3f4   : > { %2069 = vperm.xlu2 %2976, %v2984_v31   ;;  %v2996_v8 = vpop.eup %2995  ;;  %3007 = vrcp.f32 %v1931_v15  ;;  %v1983_v31 = vmul.f32 1.1, %v1887_v20  ;;  %v1882_v15 = vld [vmem:[%s3454_s19] sm:$0xff] }
 0x3f5   : > { %2059 = vperm.xlu1 %2975, %v2986_v21   ;;  %v2998_v39 = vpop.eup %2997  ;;  %3009 = vrcp.f32 %v1930_v13 }
 0x3f6   : > { %2049 = vperm.xlu0 %2974, %v2988_v63   ;;  %v3000_v33 = vpop.eup %2999  ;;  %3011 = vrcp.f32 %v1929_v51  ;;  %v2018_v63 = vld [vmem:[#allocation3 + $0x80] sm:$0xff] }
 0x3f7   : > { %v3002_v22 = vpop.eup %3001  ;;  %3013 = vrcp.f32 %v1934_v38 }
 0x3f8   : > { %v3004_v46 = vpop.eup %3003  ;;  %3015 = vrcp.f32 %v1933_v9  ;;  %v1978_v9 = vmul.f32 1.1, %v1882_v15 }
 0x3f9   : > { %v3006_v1 = vpop.eup %3005  ;;  %3017 = vrcp.f32 %v1932_v49 }
 0x3fa   : > { %v3008_v3 = vpop.eup %3007  ;;  %3019 = vrcp.f32 %v1937_v58 }
 0x3fb   : > { %v3010_v0 = vpop.eup %3009  ;;  %3021 = vrcp.f32 %v1936_v47  ;;  %v2024_v47 = vld [vmem:[#allocation3 + $0x8] sm:$0xff] }
 0x3fc   : > { %2084 = vperm.xlu2 %2976, %v2990_v35   ;;  %v3012_v50 = vpop.eup %3011  ;;  %3023 = vrcp.f32 %v1935_v24 }
 0x3fd   : > { %2079 = vperm.xlu1 %2975, %v2992_v12   ;;  %v3014_v28 = vpop.eup %3013  ;;  %3025 = vrcp.f32 %v1940_v52  ;;  %v1885_v52 = vld [vmem:[%s3454_s19 + $0x18] sm:$0xff] }
 0x3fe   : > { %2074 = vperm.xlu0 %2974, %v2994_v6   ;;  %v3016_v57 = vpop.eup %3015  ;;  %3027 = vrcp.f32 %v1939_v30  ;;  %v2011_v30 = vld [vmem:[#allocation3] sm:$0xff] }
 0x3ff   : > { %v3018_v48 = vpop.eup %3017  ;;  %3029 = vrcp.f32 %v1938_v53 }
 0x400   : > { %v3020_v43 = vpop.eup %3019  ;;  %3031 = vrcp.f32 %v1943_v55 }
 0x401   : > { %v3022_v36 = vpop.eup %3021  ;;  %3033 = vrcp.f32 %v1942_v60 }
 0x402   : > { %v3024_v34 = vpop.eup %3023  ;;  %3035 = vrcp.f32 %v1941_v26 }
 0x403   : > { %v3026_v42 = vpop.eup %3025  ;;  %3037 = vrcp.f32 %v1945_v19 }
 0x404   : > { %2099 = vperm.xlu2 %2976, %v2996_v8   ;;  %v3028_v61 = vpop.eup %3027  ;;  %3039 = vrcp.f32 %v1944_v10  ;;  %v1893_v8 = vld [vmem:[%s3454_s19 + $0x58] sm:$0xff] }
 0x405   : > { %2094 = vperm.xlu1 %2975, %v2998_v39   ;;  %v3030_v44 = vpop.eup %3029  ;;  %v1884_v39 = vld [vmem:[%s3454_s19 + $0x10] sm:$0xff] }
 0x406   : > { %2089 = vperm.xlu0 %2974, %v3000_v33   ;;  %v3032_v32 = vpop.eup %3031  ;;  %v2010_v33 = vld [vmem:[#allocation3 + $0xb0] sm:$0xff]  ;;  %v1980_v51 = vmul.f32 1.1, %v1884_v39 }
 0x407   : > { %v3034_v40 = vpop.eup %3033 }
 0x408   : > { %v3036_v11 = vpop.eup %3035 }
 0x409   : > { %v3038_v16 = vpop.eup %3037 }
 0x40a   : > { %v3040_v59 = vpop.eup %3039 }
 0x40c   : > { %2114 = vperm.xlu2 %2976, %v3002_v22   ;;  %v1989_v22 = vmul.f32 1.1, %v1893_v8  ;;  %v2020_v8 = vld [vmem:[#allocation3 + $0xe8] sm:$0xff] }
 0x40d   : > { %2109 = vperm.xlu1 %2975, %v3004_v46  }
 0x40e   : > { %2104 = vperm.xlu0 %2974, %v3006_v1  }
 0x414   : > { %2129 = vperm.xlu2 %2976, %v3008_v3  }
 0x415   : > { %2124 = vperm.xlu1 %2975, %v3010_v0  }
 0x416   : > { %2119 = vperm.xlu0 %2974, %v3012_v50  }
 0x41c   : > { %2144 = vperm.xlu2 %2976, %v3014_v28  }
 0x41d   : > { %2139 = vperm.xlu1 %2975, %v3016_v57   ;;  %v1896_v57 = vld [vmem:[%s3454_s19 + $0x70] sm:$0xff] }
 0x41e   : > { %2134 = vperm.xlu0 %2974, %v3018_v48   ;;  %v2013_v48 = vld [vmem:[#allocation3 + $0x18] sm:$0xff]  ;;  %v1992_v53 = vmul.f32 1.1, %v1896_v57 }
 0x424   : > { %2159 = vperm.xlu2 %2976, %v3020_v43  }
 0x425   : > { %2154 = vperm.xlu1 %2975, %v3022_v36   ;;  %v1883_v36 = vld [vmem:[%s3454_s19 + $0x8] sm:$0xff] }
 0x426   : > { %2149 = vperm.xlu0 %2974, %v3024_v34  }
 0x42c   : > { %2174 = vperm.xlu2 %2976, %v3026_v42   ;;  %v1981_v42 = vmul.f32 1.1, %v1885_v52 }
 0x42d   : > { %2169 = vperm.xlu1 %2975, %v3028_v61  }
 0x42e   : > { %2164 = vperm.xlu0 %2974, %v3030_v44   ;;  %v1979_v44 = vmul.f32 1.1, %v1883_v36 }
 0x434   : > { %2189 = vperm.xlu2 %2976, %v3032_v32  }
 0x435   : > { %2184 = vperm.xlu1 %2975, %v3034_v40  }
 0x436   : > { %2179 = vperm.xlu0 %2974, %v3036_v11  }
 0x43d   : > { %2199 = vperm.xlu1 %2975, %v3038_v16   ;;  %v2027_v16 = vld [vmem:[#allocation3 + $0x58] sm:$0xff] }
 0x43e   : > { %2194 = vperm.xlu0 %2974, %v3040_v59   ;;  %v1899_v59 = vld [vmem:[%s3454_s19 + $0x88] sm:$0xff] }
 0x446   : > { %v2065_v25 = vpop.permute.xlu2 %2064 }
 0x447   : > { %v2206_v56 = vmul.f32 %v2065_v25, %v2014_v37  ;;  %v1889_v25 = vld [vmem:[%s3454_s19 + $0x38] sm:$0xff] }
 0x449   : > { %v2238_v2 = vmul.f32 0.1, %v2206_v56  ;;  %v2016_v56 = vld [vmem:[#allocation3 + $0x30] sm:$0xff] }
 0x44b   : > { %v2270_v27 = vsub.f32 %v1982_v7, %v2238_v2  ;;  %v1888_v2 = vld [vmem:[%s3454_s19 + $0x30] sm:$0xff] }
 0x44d   : > { %2302 = vst [vmem:[%s3467_s26 + $0x20] sm:$0xff] %v2270_v27  ;;  %v1995_v27 = vmul.f32 1.1, %v1899_v59 }
 0x44e   : > { %v2070_v23 = vpop.permute.xlu2 %2069 }
 0x44f   : > { %v2207_v62 = vmul.f32 %v2070_v23, %v2015_v5  ;;  %v1985_v23 = vmul.f32 1.1, %v1889_v25 }
 0x451   : > { %v2239_v21 = vmul.f32 0.1, %v2207_v62 }
 0x453   : > { %v2271_v29 = vsub.f32 %v1983_v31, %v2239_v21 }
 0x455   : > { %2303 = vst [vmem:[%s3467_s26 + $0x28] sm:$0xff] %v2271_v29  ;;  %v1984_v29 = vmul.f32 1.1, %v1888_v2 }
 0x456   : > { %v2085_v35 = vpop.permute.xlu2 %2084 }
 0x457   : > { %v2210_v12 = vmul.f32 %v2085_v35, %v2018_v63 }
 0x459   : > { %v2242_v18 = vmul.f32 0.1, %v2210_v12 }
 0x45b   : > { %v2274_v6 = vsub.f32 %v1986_v41, %v2242_v18  ;;  %v2030_v18 = vld [vmem:[#allocation3 + $0xe0] sm:$0xff] }
 0x45d   : > { %2306 = vst [vmem:[%s3467_s26 + $0x40] sm:$0xff] %v2274_v6  ;;  %v1902_v6 = vld [vmem:[%s3454_s19 + $0xa0] sm:$0xff] }
 0x45e   : > { %v2100_v4 = vpop.permute.xlu2 %2099  ;;  %v1998_v15 = vmul.f32 1.1, %v1902_v6 }
 0x45f   : > { %v2213_v13 = vmul.f32 %v2100_v4, %v2021_v14  ;;  %v2055_v46 = vpop.permute.xlu1 %2054  ;;  %v2019_v4 = vld [vmem:[#allocation3 + $0x88] sm:$0xff] }
 0x460   : > { %v2204_v1 = vmul.f32 %v2055_v46, %v2012_v54  ;;  %v2045_v38 = vpop.permute.xlu0 %2044  ;;  %v1892_v54 = vld [vmem:[%s3454_s19 + $0x50] sm:$0xff] }
 0x461   : > { %v2245_v3 = vmul.f32 0.1, %v2213_v13  ;;  %v2202_v0 = vmul.f32 %v2045_v38, %v2010_v33  ;;  %v1891_v33 = vld [vmem:[%s3454_s19 + $0x48] sm:$0xff]  ;;  %v1988_v46 = vmul.f32 1.1, %v1892_v54 }
 0x462   : > { %v2236_v49 = vmul.f32 0.1, %v2204_v1 }
 0x463   : > { %v2277_v50 = vsub.f32 %v1989_v22, %v2245_v3  ;;  %v2234_v58 = vmul.f32 0.1, %v2202_v0  ;;  %v1987_v3 = vmul.f32 1.1, %v1891_v33 }
 0x464   : > { %v2268_v28 = vsub.f32 %v1980_v51, %v2236_v49 }
 0x465   : > { %2309 = vst [vmem:[%s3467_s26 + $0x58] sm:$0xff] %v2277_v50  ;;  %v2266_v24 = vsub.f32 %v1978_v9, %v2234_v58 }
 0x466   : > { %2300 = vst [vmem:[%s3467_s26 + $0x10] sm:$0xff] %v2268_v28  ;;  %v2115_v43 = vpop.permute.xlu2 %2114  ;;  %v2033_v28 = vld [vmem:[#allocation3 + $0xc0] sm:$0xff] }
 0x467   : > { %2298 = vst [vmem:[%s3467_s26] sm:$0xff] %v2266_v24  ;;  %v2216_v34 = vmul.f32 %v2115_v43, %v2024_v47  ;;  %v2060_v55 = vpop.permute.xlu1 %2059  ;;  %v1905_v47 = vld [vmem:[%s3454_s19 + $0xb8] sm:$0xff]  ;;  %v2023_v24 = vld [vmem:[#allocation3 + $0xf0] sm:$0xff]  ;;  %v2022_v43 = vld [vmem:[#allocation3 + $0x60] sm:$0xff] }
 0x468   : > { %v2205_v60 = vmul.f32 %v2060_v55, %v2013_v48  ;;  %v2050_v61 = vpop.permute.xlu0 %2049  ;;  %v1895_v48 = vld [vmem:[%s3454_s19 + $0x68] sm:$0xff]  ;;  %v2001_v36 = vmul.f32 1.1, %v1905_v47  ;;  %v1904_v47 = vld [vmem:[%s3454_s19 + $0xb0] sm:$0xff] }
 0x469   : > { %v2248_v26 = vmul.f32 0.1, %v2216_v34  ;;  %v2203_v32 = vmul.f32 %v2050_v61, %v2011_v30  ;;  %v1894_v30 = vld [vmem:[%s3454_s19 + $0x60] sm:$0xff]  ;;  %v1991_v55 = vmul.f32 1.1, %v1895_v48 }
 0x46a   : > { %v2237_v19 = vmul.f32 0.1, %v2205_v60 }
 0x46b   : > { %v2280_v40 = vsub.f32 %v1992_v53, %v2248_v26  ;;  %v2235_v10 = vmul.f32 0.1, %v2203_v32  ;;  %v1990_v26 = vmul.f32 1.1, %v1894_v30 }
 0x46c   : > { %v2269_v11 = vsub.f32 %v1981_v42, %v2237_v19 }
 0x46d   : > { %2312 = vst [vmem:[%s3467_s26 + $0x70] sm:$0xff] %v2280_v40  ;;  %v2267_v37 = vsub.f32 %v1979_v44, %v2235_v10 }
 0x46e   : > { %2301 = vst [vmem:[%s3467_s26 + $0x18] sm:$0xff] %v2269_v11  ;;  %v2130_v7 = vpop.permute.xlu2 %2129  ;;  %v2036_v11 = vld [vmem:[#allocation3 + $0x10] sm:$0xff] }
 0x46f   : > { %2299 = vst [vmem:[%s3467_s26 + $0x8] sm:$0xff] %v2267_v37  ;;  %v2219_v5 = vmul.f32 %v2130_v7, %v2027_v16  ;;  %v2080_v20 = vpop.permute.xlu1 %2079  ;;  %v1908_v16 = vld [vmem:[%s3454_s19 + $0xd0] sm:$0xff]  ;;  %v2026_v37 = vld [vmem:[#allocation3 + $0x38] sm:$0xff] }
 0x470   : > { %v2209_v31 = vmul.f32 %v2080_v20, %v2017_v45  ;;  %v2075_v62 = vpop.permute.xlu0 %2074  ;;  %v1898_v45 = vld [vmem:[%s3454_s19 + $0x80] sm:$0xff]  ;;  %v2025_v7 = vld [vmem:[#allocation3 + $0x78] sm:$0xff]  ;;  %v2004_v2 = vmul.f32 1.1, %v1908_v16 }
 0x471   : > { %v2251_v21 = vmul.f32 0.1, %v2219_v5  ;;  %v2208_v63 = vmul.f32 %v2075_v62, %v2016_v56  ;;  %v1897_v56 = vld [vmem:[%s3454_s19 + $0x78] sm:$0xff]  ;;  %v1994_v20 = vmul.f32 1.1, %v1898_v45 }
 0x472   : > { %v2241_v17 = vmul.f32 0.1, %v2209_v31 }
 0x473   : > { %v2283_v35 = vsub.f32 %v1995_v27, %v2251_v21  ;;  %v2240_v41 = vmul.f32 0.1, %v2208_v63  ;;  %v1993_v21 = vmul.f32 1.1, %v1897_v56  ;;  %v2038_v56 = vld [vmem:[#allocation3 + $0xa0] sm:$0xff] }
 0x474   : > { %v2273_v12 = vsub.f32 %v1985_v23, %v2241_v17 }
 0x475   : > { %2315 = vst [vmem:[%s3467_s26 + $0x88] sm:$0xff] %v2283_v35  ;;  %v2272_v14 = vsub.f32 %v1984_v29, %v2240_v41 }
 0x476   : > { %2305 = vst [vmem:[%s3467_s26 + $0x38] sm:$0xff] %v2273_v12  ;;  %v2145_v39 = vpop.permute.xlu2 %2144  ;;  %v2039_v12 = vld [vmem:[#allocation3 + $0xf8] sm:$0xff] }
 0x477   : > { %2304 = vst [vmem:[%s3467_s26 + $0x30] sm:$0xff] %v2272_v14  ;;  %v2222_v22 = vmul.f32 %v2145_v39, %v2030_v18  ;;  %v2095_v13 = vpop.permute.xlu1 %2094  ;;  %v1911_v18 = vld [vmem:[%s3454_s19 + $0xe8] sm:$0xff]  ;;  %v2028_v39 = vld [vmem:[#allocation3 + $0x40] sm:$0xff] }
 0x478   : > { %v2212_v51 = vmul.f32 %v2095_v13, %v2020_v8  ;;  %v2090_v1 = vpop.permute.xlu0 %2089  ;;  %v2029_v14 = vld [vmem:[#allocation3 + $0xc8] sm:$0xff]  ;;  %v1901_v8 = vld [vmem:[%s3454_s19 + $0x98] sm:$0xff]  ;;  %v2007_v33 = vmul.f32 1.1, %v1911_v18 }
 0x479   : > { %v2254_v38 = vmul.f32 0.1, %v2222_v22  ;;  %v2211_v9 = vmul.f32 %v2090_v1, %v2019_v4  ;;  %v1900_v4 = vld [vmem:[%s3454_s19 + $0x90] sm:$0xff]  ;;  %v1997_v13 = vmul.f32 1.1, %v1901_v8  ;;  %v1913_v18 = vld [vmem:[%s3454_s19 + $0xf8] sm:$0xff] }
 0x47a   : > { %v2244_v0 = vmul.f32 0.1, %v2212_v51 }
 0x47b   : > { %v2286_v49 = vsub.f32 %v1998_v15, %v2254_v38  ;;  %v2243_v50 = vmul.f32 0.1, %v2211_v9  ;;  %v1996_v38 = vmul.f32 1.1, %v1900_v4 }
 0x47c   : > { %v2276_v58 = vsub.f32 %v1988_v46, %v2244_v0 }
 0x47d   : > { %2318 = vst [vmem:[%s3467_s26 + $0xa0] sm:$0xff] %v2286_v49  ;;  %v2275_v57 = vsub.f32 %v1987_v3, %v2243_v50 }
 0x47e   : > { %2308 = vst [vmem:[%s3467_s26 + $0x50] sm:$0xff] %v2276_v58  ;;  %v2160_v52 = vpop.permute.xlu2 %2159 }
 0x47f   : > { %2307 = vst [vmem:[%s3467_s26 + $0x48] sm:$0xff] %v2275_v57  ;;  %v2225_v53 = vmul.f32 %v2160_v52, %v2033_v28  ;;  %v2110_v34 = vpop.permute.xlu1 %2109  ;;  %v2032_v28 = vld [vmem:[#allocation3 + $0x70] sm:$0xff]  ;;  %v2000_v52 = vmul.f32 1.1, %v1904_v47 }
 0x480   : > { %v2215_v42 = vmul.f32 %v2110_v34, %v2023_v24  ;;  %v2105_v60 = vpop.permute.xlu0 %2104  ;;  %v2031_v57 = vld [vmem:[#allocation3 + $0x90] sm:$0xff]  ;;  %v1903_v24 = vld [vmem:[%s3454_s19 + $0xa8] sm:$0xff] }
 0x481   : > { %v2257_v61 = vmul.f32 0.1, %v2225_v53  ;;  %v2214_v44 = vmul.f32 %v2105_v60, %v2022_v43 }
 0x482   : > { %v2247_v32 = vmul.f32 0.1, %v2215_v42 }
 0x483   : > { %v2289_v19 = vsub.f32 %v2001_v36, %v2257_v61  ;;  %v2246_v40 = vmul.f32 0.1, %v2214_v44  ;;  %v1999_v36 = vmul.f32 1.1, %v1903_v24  ;;  %v2035_v61 = vld [vmem:[#allocation3 + $0xd0] sm:$0xff]  ;;  %v2034_v44 = vld [vmem:[#allocation3 + $0xa8] sm:$0xff] }
 0x484   : > { %v2279_v10 = vsub.f32 %v1991_v55, %v2247_v32  ;;  %v1906_v32 = vld [vmem:[%s3454_s19 + $0xc0] sm:$0xff] }
 0x485   : > { %2321 = vst [vmem:[%s3467_s26 + $0xb8] sm:$0xff] %v2289_v19  ;;  %v2278_v59 = vsub.f32 %v1990_v26, %v2246_v40  ;;  %v1907_v26 = vld [vmem:[%s3454_s19 + $0xc8] sm:$0xff]  ;;  %v2002_v16 = vmul.f32 1.1, %v1906_v32 }
 0x486   : > { %2311 = vst [vmem:[%s3467_s26 + $0x68] sm:$0xff] %v2279_v10  ;;  %v2175_v25 = vpop.permute.xlu2 %2174  ;;  %v2003_v40 = vmul.f32 1.1, %v1907_v26 }
 0x487   : > { %2310 = vst [vmem:[%s3467_s26 + $0x60] sm:$0xff] %v2278_v59  ;;  %v2228_v27 = vmul.f32 %v2175_v25, %v2036_v11  ;;  %v2125_v5 = vpop.permute.xlu1 %2124 }
 0x488   : > { %v2218_v23 = vmul.f32 %v2125_v5, %v2026_v37  ;;  %v2120_v31 = vpop.permute.xlu0 %2119  ;;  %v1909_v5 = vld [vmem:[%s3454_s19 + $0xd8] sm:$0xff] }
 0x489   : > { %v2260_v62 = vmul.f32 0.1, %v2228_v27  ;;  %v2217_v29 = vmul.f32 %v2120_v31, %v2025_v7  ;;  %v2037_v27 = vld [vmem:[#allocation3 + $0x28] sm:$0xff] }
 0x48a   : > { %v2250_v63 = vmul.f32 0.1, %v2218_v23 }
 0x48b   : > { %v2292_v17 = vsub.f32 %v2004_v2, %v2260_v62  ;;  %v2249_v35 = vmul.f32 0.1, %v2217_v29  ;;  %v1910_v2 = vld [vmem:[%s3454_s19 + $0xe0] sm:$0xff] }
 0x48c   : > { %v2282_v41 = vsub.f32 %v1994_v20, %v2250_v63  ;;  %v2006_v23 = vmul.f32 1.1, %v1910_v2 }
 0x48d   : > { %2324 = vst [vmem:[%s3467_s26 + $0xd0] sm:$0xff] %v2292_v17  ;;  %v2281_v6 = vsub.f32 %v1993_v21, %v2249_v35  ;;  %v2005_v21 = vmul.f32 1.1, %v1909_v5 }
 0x48e   : > { %2314 = vst [vmem:[%s3467_s26 + $0x80] sm:$0xff] %v2282_v41  ;;  %v2190_v54 = vpop.permute.xlu2 %2189 }
 0x48f   : > { %2313 = vst [vmem:[%s3467_s26 + $0x78] sm:$0xff] %v2281_v6  ;;  %v2231_v15 = vmul.f32 %v2190_v54, %v2039_v12  ;;  %v2140_v22 = vpop.permute.xlu1 %2139  ;;  %v2041_v12 = vld [vmem:[#allocation3 + $0x98] sm:$0xff]  ;;  %v2040_v6 = vld [vmem:[#allocation3 + $0x20] sm:$0xff]  ;;  %v2009_v54 = vmul.f32 1.1, %v1913_v18 }
 0x490   : > { %v2221_v46 = vmul.f32 %v2140_v22, %v2029_v14  ;;  %v2135_v51 = vpop.permute.xlu0 %2134  ;;  %v1912_v14 = vld [vmem:[%s3454_s19 + $0xf0] sm:$0xff] }
 0x491   : > { %v2263_v1 = vmul.f32 0.1, %v2231_v15  ;;  %v2220_v3 = vmul.f32 %v2135_v51, %v2028_v39 }
 0x492   : > { %v2253_v9 = vmul.f32 0.1, %v2221_v46 }
 0x493   : > { %v2295_v0 = vsub.f32 %v2007_v33, %v2263_v1  ;;  %v2252_v49 = vmul.f32 0.1, %v2220_v3  ;;  %v2008_v33 = vmul.f32 1.1, %v1912_v14 }
 0x494   : > { %v2285_v50 = vsub.f32 %v1997_v13, %v2253_v9 }
 0x495   : > { %2327 = vst [vmem:[%s3467_s26 + $0xe8] sm:$0xff] %v2295_v0  ;;  %v2284_v58 = vsub.f32 %v1996_v38, %v2252_v49 }
 0x496   : > { %2317 = vst [vmem:[%s3467_s26 + $0x98] sm:$0xff] %v2285_v50 }
 0x497   : > { %2316 = vst [vmem:[%s3467_s26 + $0x90] sm:$0xff] %v2284_v58  ;;  %v2155_v48 = vpop.permute.xlu1 %2154 }
 0x498   : > { %v2224_v43 = vmul.f32 %v2155_v48, %v2032_v28  ;;  %v2150_v30 = vpop.permute.xlu0 %2149 }
 0x499   : > { %v2223_v53 = vmul.f32 %v2150_v30, %v2031_v57 }
 0x49a   : > { %v2256_v34 = vmul.f32 0.1, %v2224_v43 }
 0x49b   : > { %v2255_v55 = vmul.f32 0.1, %v2223_v53 }
 0x49c   : > { %v2288_v42 = vsub.f32 %v2000_v52, %v2256_v34 }
 0x49d   : > { %v2287_v60 = vsub.f32 %v1999_v36, %v2255_v55 }
 0x49e   : > { %2320 = vst [vmem:[%s3467_s26 + $0xb0] sm:$0xff] %v2288_v42 }
 0x49f   : > { %2319 = vst [vmem:[%s3467_s26 + $0xa8] sm:$0xff] %v2287_v60  ;;  %v2170_v19 = vpop.permute.xlu1 %2169 }
 0x4a0   : > { %v2227_v10 = vmul.f32 %v2170_v19, %v2035_v61  ;;  %v2165_v11 = vpop.permute.xlu0 %2164 }
 0x4a1   : > { %v2226_v59 = vmul.f32 %v2165_v11, %v2034_v44 }
 0x4a2   : > { %v2259_v37 = vmul.f32 0.1, %v2227_v10 }
 0x4a3   : > { %v2258_v45 = vmul.f32 0.1, %v2226_v59 }
 0x4a4   : > { %v2291_v25 = vsub.f32 %v2003_v40, %v2259_v37 }
 0x4a5   : > { %v2290_v7 = vsub.f32 %v2002_v16, %v2258_v45 }
 0x4a6   : > { %2323 = vst [vmem:[%s3467_s26 + $0xc8] sm:$0xff] %v2291_v25 }
 0x4a7   : > { %2322 = vst [vmem:[%s3467_s26 + $0xc0] sm:$0xff] %v2290_v7  ;;  %v2185_v20 = vpop.permute.xlu1 %2184 }
 0x4a8   : > { %v2230_v31 = vmul.f32 %v2185_v20, %v2038_v56  ;;  %v2180_v62 = vpop.permute.xlu0 %2179 }
 0x4a9   : > { %v2229_v29 = vmul.f32 %v2180_v62, %v2037_v27 }
 0x4aa   : > { %v2262_v63 = vmul.f32 0.1, %v2230_v31 }
 0x4ab   : > { %v2261_v17 = vmul.f32 0.1, %v2229_v29 }
 0x4ac   : > { %v2294_v35 = vsub.f32 %v2006_v23, %v2262_v63 }
 0x4ad   : > { %v2293_v41 = vsub.f32 %v2005_v21, %v2261_v17 }
 0x4ae   : > { %2326 = vst [vmem:[%s3467_s26 + $0xe0] sm:$0xff] %v2294_v35 }
 0x4af   : > { %2325 = vst [vmem:[%s3467_s26 + $0xd8] sm:$0xff] %v2293_v41  ;;  %v2200_v8 = vpop.permute.xlu1 %2199 }
 0x4b0   : > { %v2233_v39 = vmul.f32 %v2200_v8, %v2041_v12  ;;  %v2195_v4 = vpop.permute.xlu0 %2194 }
 0x4b1   : > { %v2232_v15 = vmul.f32 %v2195_v4, %v2040_v6 }
 0x4b2   : > { %v2265_v22 = vmul.f32 0.1, %v2233_v39 }
 0x4b3   : > { %v2264_v13 = vmul.f32 0.1, %v2232_v15 }
 0x4b4   : > { %v2297_v46 = vsub.f32 %v2009_v54, %v2265_v22 }
 0x4b5   : > { %v2296_v51 = vsub.f32 %v2008_v33, %v2264_v13 }
 0x4b6   : > { %2329 = vst [vmem:[%s3467_s26 + $0xf8] sm:$0xff] %v2297_v46 }
 0x4b7   : > { %2328 = vst [vmem:[%s3467_s26 + $0xf0] sm:$0xff] %v2296_v51 }
 0x4b8 PF: > { %s4898_s3 = sld [smem:[#allocation16_spill]]  ;;  %s2345_s27 = sshll.u32 %s3467_s26, 4  ;;  %s2346_s27 = int_to_ptr.vmem [resolvable:$true] %s2345_s27 }
 0x4b9   : > { %s4899_s4 = sld [smem:[#allocation17_spill]]  ;;  %s2331_s17 = scalar_lea.sflag [#allocation7], %s3450_s12 }
 0x4ba   : > { %s4901_s16 = sld [smem:[#allocation25_spill]] }
 0x4be   : > { %s2553_s23 = sshll.u32 %s4898_s3, 5 }
 0x4bf   : > { %s2554_s6 = sshll.u32 %s4899_s4, 6 }
 0x4c0   : > { %s2342_s7 = sadd.s32 %s2554_s6, %s2553_s23  ;;  %s4902_s30 = smov %s4901_s16 }
 0x4c1   : > { %s2555_s0 = sshll.u32 %s2342_s7, 3  ;;  %s3121_s26 = scalar_lea.hbm %s4902_s30, 1024 }
 0x4c2   : > { %s2344_s18 = scalar_lea.hbm %s4901_s16, %s2555_s0 }
 0x4c3   : > { %s2347_s19 = sshll.u32 %s2344_s18, 4  ;;  %s2348_s19 = int_to_ptr.hbm [resolvable:$true] %s2347_s19 }
 0x4c4   : > { %s3115_s24 = sshra.s32 %s2348_s19, 4  ;;  %s3116_s24 = int_to_ptr.hbm [resolvable:$true] %s3115_s24 }
 0x4c5   : > { %s3117_s25 = scalar_lea.hbm %s3116_s24, 256  ;;  %p3122_p6 = scmp.lt.s32.totalorder %s3116_s24, %s4902_s30 }
 0x4c6   : > { %p3118_p0 = scmp.ne.s32.totalorder %s3116_s24, %s3117_s25  ;;  %p3123_p11 = scmp.lt.s32.totalorder %s3121_s26, %s3117_s25 }
 0x4c8   : > { %p3119_p4 = pnand %p3118_p0, %p3357_p8  ;;  %p3124_p12 = por %p3123_p11, %p3122_p6 }
 0x4ca   : > { %p3120_p5 = pneg %p3119_p4 }
 0x4cc   : > { %p3125_p1 = pnand %p3124_p12, %p3120_p5 }
 0x4ce   : > { %3128 = shalt.err (!%p3125_p1)
}
 0x4cf   : > { %s3249_s12 = smov 128   ;;  %s3250_s23 = smov 8  }
 0x4d0   : > { %2689 = dma.vmem_to_hbm [thread:$0]  (%p3357_p8), %s2346_s27, 4096, %s2348_s19, %s2331_s17, %s3249_s12, %s3249_s12, %s3250_s23  }
 0x4d1 PF: > { %s4903_s6 = sld [smem:[#allocation14_spill]]  ;;  %p2703_p3 = scmp.ge.s32.totalorder %s3243_s21, 2 }
 0x4d3   : > { %p2699_p13 = pnand %p2703_p3, %p3361_p9 }
 0x4d5   : > { %p2700_p2 = pneg %p2699_p13 }
 0x4d7   : > { %s2362_s0 = sand.u32 1, %s4903_s6  }
 0x4d8   : > { %s2363_s8 = scalar_lea.sflag [#allocation7], %s2362_s0 }
 0x4d9   : > { %3190 = dma.done.wait (%p2700_p2), %s2363_s8, 4096  }
 0x4da   : > { %3192 = vsyncadd (%p2700_p2), %s2363_s8, 4294963200  ;;  %s21_s21 = sadd.s32 1, %s3243_s21   ;;  %s4906_s22 = smov %s3433_s9 }
 0x4db   : > { %p4767_p10 = scmp.ge.s32.totalorder %s21_s21, 18   ;;  %s4907_s27 = sld [smem:[#allocation18_spill]] }
 0x4dc   : > { %s4908_s16 = sld [smem:[#allocation19_spill]]  ;;  %s4911_s9 = smov %s3199_s10 }
 0x4dd   : > { %s4909_s18 = sld [smem:[#allocation22_spill]]  ;;  %s4912_s10 = smov %s3203_s11 }
 0x4de   : > { %s4910_s19 = sld [smem:[#allocation23_spill]]  ;;  %s4913_s11 = smov %s3438_s15 }
 0x4df   : > { %s4914_s12 = smov %s3211_s13  ;;  %s4915_s13 = smov %s3215_s14 }
 0x4e0   : > { %s4916_s14 = smov %s4906_s22  ;;  %s4918_s17 = smov %s3239_s20 }
 0x4e1   : > { %s4917_s15 = smov %s4907_s27  ;;  %s4919_s20 = smov %s4929_s5 }
 0x4e2   :  { %20 = sbr.rel (!%p4767_p10) target bundleno = 15 (0xf), region = 94 }
 0x4e7   :  { %2369 = vsyncpa [#allocation6], 1 }
 0x4e8   :  { %2371 = vsyncpa [#allocation6 + $0x1], 1 }
 0x4e9   :  { %2372 = vsyncpa [#allocation9], 1 }
 0x4ea   :  { %2374 = vsyncpa [#allocation9 + $0x1], 1 }
 0x4eb   :  { %2375 = vsyncpa [#allocation7], 1 }
 0x4ec   :  { %2377 = vsyncpa [#allocation7 + $0x1], 1 }

</bundles_post_ra>
